<compile_context>
chip_gen: v7x
topology: tpu7x:2x2x1
jax: 0.10.0
libtpu: 0.0.40
codegen_flags: <defaults>
</compile_context>

<pallas_src>
import math

import numpy as np

import jax
import jax.numpy as jnp
from jax.experimental import pallas as pl
from jax.experimental.pallas import tpu as pltpu


# ----------------------------- small helpers -----------------------------

def normalize_adjacency_np(a):
    deg = a.sum(axis=1)
    dinv = deg ** -0.5
    return (dinv[:, None] * a) * dinv[None, :]


def positional_embedding(T, d_model):
    position = np.arange(T, dtype=np.float32)[:, None]
    div_term = np.exp(np.arange(0, d_model, 2, dtype=np.float32)
                      * -(math.log(10000.0) / d_model))
    pe = np.zeros((T, d_model), np.float32)
    pe[:, 0::2] = np.sin(position * div_term)
    pe[:, 1::2] = np.cos(position * div_term)
    return jnp.asarray(pe)


# ----------------------------- fused Pallas kernel -----------------------------

def make_fused_kernel(a_np):
    """a_np: (N, N) numpy normalized adjacency (module constant -> static scalars)."""

    def kernel(x_ref, mk_ref, pe_ref, wtok_ref, wtime_ref, *rest):
        o_ref = rest[-1]
        blk1 = rest[0:11]
        blk2 = rest[11:22]
        lw13_ref, lb13_ref, lw2_ref, lb2_ref = rest[22:26]

        N = x_ref.shape[1]          # nodes (flattened-row index within this batch)
        S = x_ref.shape[2]          # sequence length
        Bm = mk_ref.shape[0]        # original batch count (marks table)
        b = pl.program_id(0)

        def timeblock(x, w13_ref, b13_ref, w2_ref, b2_ref):
            """relu((x*W13 + b13) + sigmoid(x*W2 + b2)); taps folded into K."""
            To = x.shape[0] - 2
            slab = jnp.concatenate([x[0:To], x[1:To + 1], x[2:To + 2]],
                                   axis=1).astype(jnp.bfloat16)         # (To, 3*Cin)
            a = jnp.dot(slab, w13_ref[...],
                        preferred_element_type=jnp.float32) + b13_ref[...]
            g = jnp.dot(slab, w2_ref[...],
                        preferred_element_type=jnp.float32) + b2_ref[...]
            return jnp.maximum(a + jax.nn.sigmoid(g), 0.0)              # (To, Cout) f32

        def stgcn_block(xs, refs):
            w13a, b13a, w2a, b2a, theta, w13b, b13b, w2b, b2b, scale, shift = refs
            t1 = [timeblock(xs[n], w13a, b13a, w2a, b2a) for n in range(N)]
            outs = []
            for i in range(N):
                # node mix: lfs_i = sum_j A_hat[i, j] * t1_j  (static scalars, VPU FMAs)
                lfs = t1[0] * float(a_np[i, 0])
                for j in range(1, N):
                    lfs = lfs + t1[j] * float(a_np[i, j])
                # spatial projection + relu
                t2 = jnp.maximum(
                    jnp.dot(lfs.astype(jnp.bfloat16), theta[...],
                            preferred_element_type=jnp.float32), 0.0)
                # second temporal conv + eval-mode BN (per-node scale/shift)
                t3 = timeblock(t2, w13b, b13b, w2b, b2b)
                outs.append(t3 * scale[i] + shift[i])
            return outs

        # ---------------- DataEmbedding (token conv + timeF linear + PE) ----------------
        wtime = wtime_ref[...]                                           # (Fm, D) bf16
        te_opts = [jnp.dot(mk_ref[bb].astype(jnp.bfloat16), wtime,
                           preferred_element_type=jnp.float32)
                   for bb in range(Bm)]                                  # B x (S, D) f32
        pe = pe_ref[...]                                                 # (S, D)
        w0 = wtok_ref[0:1, :]
        w1 = wtok_ref[1:2, :]
        w2t = wtok_ref[2:3, :]

        xs0 = []
        for n in range(N):
            col = x_ref[0, n]                                            # (S, 1)
            # circular taps built in-VMEM (no taps array in HBM)
            prev = jnp.concatenate([col[S - 1:S], col[0:S - 1]], axis=0)
            nxt = jnp.concatenate([col[1:S], col[0:1]], axis=0)
            tok = prev * w0 + col * w1 + nxt * w2t                       # (S, D) VPU MACs
            # torch pairing: flattened row (b*N + n) uses marks row (b*N + n) % B
            row = b * N + n
            te = te_opts[0] * (row % Bm == 0).astype(jnp.float32)
            for bb in range(1, Bm):
                te = te + te_opts[bb] * (row % Bm == bb).astype(jnp.float32)
            xs0.append(tok + te + pe)                                    # (S, D) f32

        # ---------------- two STGCN blocks + last TimeBlock ----------------
        xs1 = stgcn_block(xs0, blk1)
        xs2 = stgcn_block(xs1, blk2)
        for n in range(N):
            o_ref[0, n] = timeblock(xs2[n], lw13_ref, lb13_ref, lw2_ref, lb2_ref
                                    ).astype(o_ref.dtype)

    return kernel


# ----------------------------- forward (wrapper) -----------------------------

def forecast(params, x_enc, x_mark_enc, pred_len):
    """x_enc: (B, S, N) f32, x_mark_enc: (B, S, Fm) f32 -> (B, pred_len, N) f32."""
    B, S, N = x_enc.shape
    To3 = S - 2 * 5
    Cout = params["last"]["w13"].shape[1]

    # module constant: adjacency = ones((N, N)) normalized (static scalars)
    a_np = normalize_adjacency_np(np.ones((N, N), np.float32))

    # torch: unsqueeze(x_enc, 3).reshape(B*N, S, 1) -- raw row-major reinterpretation.
    x_cols = x_enc.reshape(B, N, S, 1)

    block_keys = ("w13a", "b13a", "w2a", "b2a", "theta",
                  "w13b", "b13b", "w2b", "b2b", "bn_scale", "bn_shift")
    b1_args = tuple(params["block1"][k] for k in block_keys)
    b2_args = tuple(params["block2"][k] for k in block_keys)
    last_args = (params["last"]["w13"], params["last"]["b13"],
                 params["last"]["w2"], params["last"]["b2"])
    args = (x_cols, x_mark_enc, params["pe"], params["wtok"], params["wtime"],
            *b1_args, *b2_args, *last_args)

    def full_spec(a):
        nd = a.ndim
        return pl.BlockSpec(a.shape, lambda *_: (0,) * nd)

    in_specs = [pl.BlockSpec((1, N, S, 1), lambda b: (b, 0, 0, 0))]
    in_specs += [full_spec(a) for a in args[1:]]

    out3 = pl.pallas_call(
        make_fused_kernel(a_np),
        out_shape=jax.ShapeDtypeStruct((B, N, To3, Cout), jnp.float32),
        grid=(B,),
        in_specs=in_specs,
        out_specs=pl.BlockSpec((1, N, To3, Cout), lambda b: (b, 0, 0, 0)),
        compiler_params=pltpu.CompilerParams(dimension_semantics=("parallel",)),
    )(*args)

    # torch: out3.reshape(B,-1,N).permute(0,2,1) -> Linear -> permute(0,2,1).
    # This (4, 384) @ (384, 4) epilogue is far too small for its own kernel -> XLA.
    R = out3.reshape(B, To3 * Cout, N)                     # raw reshape == torch's
    out4 = (jnp.einsum("pf,bfn->bpn", params["fully_w"], R)
            + params["fully_b"][None, :, None])
    return out4[:, -pred_len:, :]


# ----------------------------- pure-JAX reference -----------------------------

def reference_forecast(params, x_enc, x_mark_enc, pred_len):
    B, S, N = x_enc.shape
    D = params["wtok"].shape[1]
    a_hat = jnp.asarray(normalize_adjacency_np(np.ones((N, N), np.float32)))

    xr = x_enc.reshape(B * N, S)
    prev = jnp.roll(xr, 1, axis=1)
    nxt = jnp.roll(xr, -1, axis=1)
    wtok = params["wtok"]
    tok = prev[..., None] * wtok[0] + xr[..., None] * wtok[1] + nxt[..., None] * wtok[2]
    marks_rows = x_mark_enc[jnp.arange(B * N) % B]
    te = jnp.einsum("rsf,fd->rsd", marks_rows.astype(jnp.bfloat16), params["wtime"],
                    preferred_element_type=jnp.float32)
    x0 = (tok + te + params["pe"][None]).reshape(B, N, S, D)

    def timeblock(x, w13, b13, w2, b2):
        To = x.shape[2] - 2
        slab = jnp.concatenate([x[:, :, 0:To], x[:, :, 1:To + 1], x[:, :, 2:To + 2]],
                               axis=-1).astype(jnp.bfloat16)
        a = jnp.einsum("bntk,ko->bnto", slab, w13, preferred_element_type=jnp.float32) + b13
        g = jnp.einsum("bntk,ko->bnto", slab, w2, preferred_element_type=jnp.float32) + b2
        return jnp.maximum(a + jax.nn.sigmoid(g), 0.0)

    def stgcn(x, bp):
        t1 = timeblock(x, bp["w13a"], bp["b13a"], bp["w2a"], bp["b2a"])
        lfs = jnp.einsum("ij,bjtc->bitc", a_hat, t1)
        t2 = jnp.maximum(jnp.einsum("bitc,cs->bits", lfs.astype(jnp.bfloat16), bp["theta"],
                                    preferred_element_type=jnp.float32), 0.0)
        t3 = timeblock(t2, bp["w13b"], bp["b13b"], bp["w2b"], bp["b2b"])
        return t3 * bp["bn_scale"][None] + bp["bn_shift"][None]

    out1 = stgcn(x0, params["block1"])
    out2 = stgcn(out1, params["block2"])
    out3 = timeblock(out2, params["last"]["w13"], params["last"]["b13"],
                     params["last"]["w2"], params["last"]["b2"])
    R = out3.reshape(B, -1, N)
    out4 = (jnp.einsum("pf,bfn->bpn", params["fully_w"], R)
            + params["fully_b"][None, :, None])
    return out4[:, -pred_len:, :]


# ----------------------------- parameter init -----------------------------

def init_params(key, *, enc_in, d_model, seq_len, pred_len, mark_dim):
    keys = iter(jax.random.split(key, 64))

    def u(shape, scale=0.1):
        return jax.random.uniform(next(keys), shape, jnp.float32, -1.0, 1.0) * scale

    def timeblock_params(cin, cout):
        # Conv2d(in, out, (1,3)) x3; conv1/conv3 folded:
        # relu(c1 + sigmoid(c2) + c3) == relu(x*(W1+W3) + (b1+b3) + sigmoid(x*W2 + b2)).
        w1, w2, w3 = u((3, cin, cout)), u((3, cin, cout)), u((3, cin, cout))
        b1, b2, b3 = u((1, cout)), u((1, cout)), u((1, cout))
        return {"w13": (w1 + w3).reshape(3 * cin, cout).astype(jnp.bfloat16),
                "b13": b1 + b3,
                "w2": w2.reshape(3 * cin, cout).astype(jnp.bfloat16),
                "b2": b2}

    def stgcn_params(cin, cout, csp, n):
        # BatchNorm2d(num_nodes), eval mode with fresh-module stats, folded per node.
        gamma = jnp.ones((n,), jnp.float32)
        beta = jnp.zeros((n,), jnp.float32)
        rmean = jnp.zeros((n,), jnp.float32)
        rvar = jnp.ones((n,), jnp.float32)
        scale = gamma / jnp.sqrt(rvar + 1e-5)
        shift = beta - rmean * scale
        ta = timeblock_params(cin, cout)
        tb = timeblock_params(csp, cout)
        return {"w13a": ta["w13"], "b13a": ta["b13"], "w2a": ta["w2"], "b2a": ta["b2"],
                "theta": u((cout, csp)).astype(jnp.bfloat16),
                "w13b": tb["w13"], "b13b": tb["b13"], "w2b": tb["w2"], "b2b": tb["b2"],
                "bn_scale": jnp.broadcast_to(scale[:, None, None],
                                             (n, 1, cout)).astype(jnp.float32),
                "bn_shift": jnp.broadcast_to(shift[:, None, None],
                                             (n, 1, cout)).astype(jnp.float32)}

    feat = (seq_len - 2 * 5) * 64
    return {
        "wtok": u((3, d_model)),                              # TokenEmbedding Conv1d taps
        "wtime": u((mark_dim, d_model)).astype(jnp.bfloat16),  # TimeFeatureEmbedding
        "pe": positional_embedding(seq_len, d_model),
        "block1": stgcn_params(d_model, 64, 16, enc_in),
        "block2": stgcn_params(64, 64, 16, enc_in),
        "last": timeblock_params(64, 64),
        "fully_w": u((pred_len, feat)),                        # torch Linear layout (out, in)
        "fully_b": u((pred_len,)),
    }


# ----------------------------------- main -----------------------------------

if __name__ == "__main__":
    B, SEQ_LEN, ENC_IN, MARK_DIM, D_MODEL, PRED_LEN = 2, 16, 4, 4, 32, 4

    key = jax.random.PRNGKey(0)
    k1, k2, k3 = jax.random.split(key, 3)
    x_enc = jax.random.normal(k1, (B, SEQ_LEN, ENC_IN), jnp.float32)
    x_mark_enc = jax.random.normal(k2, (B, SEQ_LEN, MARK_DIM), jnp.float32)

    params = init_params(k3, enc_in=ENC_IN, d_model=D_MODEL,
                         seq_len=SEQ_LEN, pred_len=PRED_LEN, mark_dim=MARK_DIM)

    fwd = jax.jit(lambda p, xe, xm: forecast(p, xe, xm, PRED_LEN))
    out = jax.block_until_ready(fwd(params, x_enc, x_mark_enc))
    assert out.shape == (B, PRED_LEN, ENC_IN), out.shape
    assert bool(jnp.all(jnp.isfinite(out)))

    ref_fwd = jax.jit(lambda p, xe, xm: reference_forecast(p, xe, xm, PRED_LEN))
    ref = jax.block_until_ready(ref_fwd(params, x_enc, x_mark_enc))
    max_err = float(jnp.max(jnp.abs(out - ref)))
    assert max_err < 5e-2, f"mismatch vs pure-JAX reference: {max_err}"

    print("KERNEL_OK")
</pallas_src>

<mosaic_0001>
module attributes {stable_mosaic.version = 11 : i64} {
  func.func @kernel(%arg0: i32, %arg1: memref<1x4x16x1xf32, #tpu.memory_space<vmem>>, %arg2: memref<2x16x4xf32, #tpu.memory_space<vmem>>, %arg3: memref<16x32xf32, #tpu.memory_space<vmem>>, %arg4: memref<3x32xf32, #tpu.memory_space<vmem>>, %arg5: memref<4x32xbf16, #tpu.memory_space<vmem>>, %arg6: memref<96x64xbf16, #tpu.memory_space<vmem>>, %arg7: memref<1x64xf32, #tpu.memory_space<vmem>>, %arg8: memref<96x64xbf16, #tpu.memory_space<vmem>>, %arg9: memref<1x64xf32, #tpu.memory_space<vmem>>, %arg10: memref<64x16xbf16, #tpu.memory_space<vmem>>, %arg11: memref<48x64xbf16, #tpu.memory_space<vmem>>, %arg12: memref<1x64xf32, #tpu.memory_space<vmem>>, %arg13: memref<48x64xbf16, #tpu.memory_space<vmem>>, %arg14: memref<1x64xf32, #tpu.memory_space<vmem>>, %arg15: memref<4x1x64xf32, #tpu.memory_space<vmem>>, %arg16: memref<4x1x64xf32, #tpu.memory_space<vmem>>, %arg17: memref<192x64xbf16, #tpu.memory_space<vmem>>, %arg18: memref<1x64xf32, #tpu.memory_space<vmem>>, %arg19: memref<192x64xbf16, #tpu.memory_space<vmem>>, %arg20: memref<1x64xf32, #tpu.memory_space<vmem>>, %arg21: memref<64x16xbf16, #tpu.memory_space<vmem>>, %arg22: memref<48x64xbf16, #tpu.memory_space<vmem>>, %arg23: memref<1x64xf32, #tpu.memory_space<vmem>>, %arg24: memref<48x64xbf16, #tpu.memory_space<vmem>>, %arg25: memref<1x64xf32, #tpu.memory_space<vmem>>, %arg26: memref<4x1x64xf32, #tpu.memory_space<vmem>>, %arg27: memref<4x1x64xf32, #tpu.memory_space<vmem>>, %arg28: memref<192x64xbf16, #tpu.memory_space<vmem>>, %arg29: memref<1x64xf32, #tpu.memory_space<vmem>>, %arg30: memref<192x64xbf16, #tpu.memory_space<vmem>>, %arg31: memref<1x64xf32, #tpu.memory_space<vmem>>, %arg32: memref<1x4x6x64xf32, #tpu.memory_space<vmem>>) attributes {dimension_semantics = [#tpu.dimension_semantics<parallel>], iteration_bounds = array<i64: 2>, scalar_prefetch = 0 : i64, scratch_operands = 0 : i64, tpu.core_type = #tpu.core_type<tc>, window_params = [{transform_indices = @transform_0, window_bounds = array<i64: 1, 4, 16, 1>}, {pipeline_mode = #tpu.pipeline_mode<synchronous>, transform_indices = @transform_1, window_bounds = array<i64: 2, 16, 4>}, {pipeline_mode = #tpu.pipeline_mode<synchronous>, transform_indices = @transform_2, window_bounds = array<i64: 16, 32>}, {pipeline_mode = #tpu.pipeline_mode<synchronous>, transform_indices = @transform_3, window_bounds = array<i64: 3, 32>}, {pipeline_mode = #tpu.pipeline_mode<synchronous>, transform_indices = @transform_4, window_bounds = array<i64: 4, 32>}, {pipeline_mode = #tpu.pipeline_mode<synchronous>, transform_indices = @transform_5, window_bounds = array<i64: 96, 64>}, {pipeline_mode = #tpu.pipeline_mode<synchronous>, transform_indices = @transform_6, window_bounds = array<i64: 1, 64>}, {pipeline_mode = #tpu.pipeline_mode<synchronous>, transform_indices = @transform_7, window_bounds = array<i64: 96, 64>}, {pipeline_mode = #tpu.pipeline_mode<synchronous>, transform_indices = @transform_8, window_bounds = array<i64: 1, 64>}, {pipeline_mode = #tpu.pipeline_mode<synchronous>, transform_indices = @transform_9, window_bounds = array<i64: 64, 16>}, {pipeline_mode = #tpu.pipeline_mode<synchronous>, transform_indices = @transform_10, window_bounds = array<i64: 48, 64>}, {pipeline_mode = #tpu.pipeline_mode<synchronous>, transform_indices = @transform_11, window_bounds = array<i64: 1, 64>}, {pipeline_mode = #tpu.pipeline_mode<synchronous>, transform_indices = @transform_12, window_bounds = array<i64: 48, 64>}, {pipeline_mode = #tpu.pipeline_mode<synchronous>, transform_indices = @transform_13, window_bounds = array<i64: 1, 64>}, {pipeline_mode = #tpu.pipeline_mode<synchronous>, transform_indices = @transform_14, window_bounds = array<i64: 4, 1, 64>}, {pipeline_mode = #tpu.pipeline_mode<synchronous>, transform_indices = @transform_15, window_bounds = array<i64: 4, 1, 64>}, {pipeline_mode = #tpu.pipeline_mode<synchronous>, transform_indices = @transform_16, window_bounds = array<i64: 192, 64>}, {pipeline_mode = #tpu.pipeline_mode<synchronous>, transform_indices = @transform_17, window_bounds = array<i64: 1, 64>}, {pipeline_mode = #tpu.pipeline_mode<synchronous>, transform_indices = @transform_18, window_bounds = array<i64: 192, 64>}, {pipeline_mode = #tpu.pipeline_mode<synchronous>, transform_indices = @transform_19, window_bounds = array<i64: 1, 64>}, {pipeline_mode = #tpu.pipeline_mode<synchronous>, transform_indices = @transform_20, window_bounds = array<i64: 64, 16>}, {pipeline_mode = #tpu.pipeline_mode<synchronous>, transform_indices = @transform_21, window_bounds = array<i64: 48, 64>}, {pipeline_mode = #tpu.pipeline_mode<synchronous>, transform_indices = @transform_22, window_bounds = array<i64: 1, 64>}, {pipeline_mode = #tpu.pipeline_mode<synchronous>, transform_indices = @transform_23, window_bounds = array<i64: 48, 64>}, {pipeline_mode = #tpu.pipeline_mode<synchronous>, transform_indices = @transform_24, window_bounds = array<i64: 1, 64>}, {pipeline_mode = #tpu.pipeline_mode<synchronous>, transform_indices = @transform_25, window_bounds = array<i64: 4, 1, 64>}, {pipeline_mode = #tpu.pipeline_mode<synchronous>, transform_indices = @transform_26, window_bounds = array<i64: 4, 1, 64>}, {pipeline_mode = #tpu.pipeline_mode<synchronous>, transform_indices = @transform_27, window_bounds = array<i64: 192, 64>}, {pipeline_mode = #tpu.pipeline_mode<synchronous>, transform_indices = @transform_28, window_bounds = array<i64: 1, 64>}, {pipeline_mode = #tpu.pipeline_mode<synchronous>, transform_indices = @transform_29, window_bounds = array<i64: 192, 64>}, {pipeline_mode = #tpu.pipeline_mode<synchronous>, transform_indices = @transform_30, window_bounds = array<i64: 1, 64>}, {transform_indices = @transform_31, window_bounds = array<i64: 1, 4, 6, 64>}]} {
    %c0 = arith.constant 0 : index
    %c0_0 = arith.constant 0 : index
    %0 = vector.load %arg5[%c0, %c0_0] : memref<4x32xbf16, #tpu.memory_space<vmem>>, vector<4x32xbf16>
    %c0_1 = arith.constant 0 : index
    %c0_2 = arith.constant 0 : index
    %c0_3 = arith.constant 0 : index
    %1 = vector.load %arg2[%c0_1, %c0_2, %c0_3] : memref<2x16x4xf32, #tpu.memory_space<vmem>>, vector<1x16x4xf32>
    %2 = vector.shape_cast %1 : vector<1x16x4xf32> to vector<16x4xf32>
    %3 = arith.truncf %2 : vector<16x4xf32> to vector<16x4xbf16>
    %cst = arith.constant dense<0.000000e+00> : vector<16x32xf32>
    %4 = tpu.matmul %3, %0, %cst {dimension_numbers = #tpu.dot_dimension_numbers<[1], [0], [0], [1], [0, 0, 1, 1], [], []>} : vector<16x4xbf16>, vector<4x32xbf16>, vector<16x32xf32> -> vector<16x32xf32>
    %c1 = arith.constant 1 : index
    %c0_4 = arith.constant 0 : index
    %c0_5 = arith.constant 0 : index
    %5 = vector.load %arg2[%c1, %c0_4, %c0_5] : memref<2x16x4xf32, #tpu.memory_space<vmem>>, vector<1x16x4xf32>
    %6 = vector.shape_cast %5 : vector<1x16x4xf32> to vector<16x4xf32>
    %7 = arith.truncf %6 : vector<16x4xf32> to vector<16x4xbf16>
    %cst_6 = arith.constant dense<0.000000e+00> : vector<16x32xf32>
    %8 = tpu.matmul %7, %0, %cst_6 {dimension_numbers = #tpu.dot_dimension_numbers<[1], [0], [0], [1], [0, 0, 1, 1], [], []>} : vector<16x4xbf16>, vector<4x32xbf16>, vector<16x32xf32> -> vector<16x32xf32>
    %c0_7 = arith.constant 0 : index
    %c0_8 = arith.constant 0 : index
    %9 = vector.load %arg3[%c0_7, %c0_8] : memref<16x32xf32, #tpu.memory_space<vmem>>, vector<16x32xf32>
    %c0_9 = arith.constant 0 : index
    %c0_10 = arith.constant 0 : index
    %10 = vector.load %arg4[%c0_9, %c0_10] : memref<3x32xf32, #tpu.memory_space<vmem>>, vector<1x32xf32>
    %c1_11 = arith.constant 1 : index
    %c0_12 = arith.constant 0 : index
    %11 = vector.load %arg4[%c1_11, %c0_12] : memref<3x32xf32, #tpu.memory_space<vmem>>, vector<1x32xf32>
    %c2 = arith.constant 2 : index
    %c0_13 = arith.constant 0 : index
    %12 = vector.load %arg4[%c2, %c0_13] : memref<3x32xf32, #tpu.memory_space<vmem>>, vector<1x32xf32>
    %c0_14 = arith.constant 0 : index
    %c0_15 = arith.constant 0 : index
    %c0_16 = arith.constant 0 : index
    %c0_17 = arith.constant 0 : index
    %13 = vector.load %arg1[%c0_14, %c0_15, %c0_16, %c0_17] : memref<1x4x16x1xf32, #tpu.memory_space<vmem>>, vector<1x1x16x1xf32>
    %14 = vector.shape_cast %13 : vector<1x1x16x1xf32> to vector<16x1xf32>
    %15 = vector.extract_strided_slice %14 {offsets = [15, 0], sizes = [1, 1], strides = [1, 1]} : vector<16x1xf32> to vector<1x1xf32>
    %16 = vector.extract_strided_slice %14 {offsets = [0, 0], sizes = [15, 1], strides = [1, 1]} : vector<16x1xf32> to vector<15x1xf32>
    %17 = tpu.concatenate %15, %16 in 0 : vector<1x1xf32>, vector<15x1xf32> -> vector<16x1xf32>
    %18 = vector.extract_strided_slice %14 {offsets = [1, 0], sizes = [15, 1], strides = [1, 1]} : vector<16x1xf32> to vector<15x1xf32>
    %19 = vector.extract_strided_slice %14 {offsets = [0, 0], sizes = [1, 1], strides = [1, 1]} : vector<16x1xf32> to vector<1x1xf32>
    %20 = tpu.concatenate %18, %19 in 0 : vector<15x1xf32>, vector<1x1xf32> -> vector<16x1xf32>
    %21 = vector.broadcast %17 : vector<16x1xf32> to vector<16x32xf32>
    %22 = vector.broadcast %10 : vector<1x32xf32> to vector<16x32xf32>
    %23 = arith.mulf %21, %22 : vector<16x32xf32>
    %24 = vector.broadcast %14 : vector<16x1xf32> to vector<16x32xf32>
    %25 = vector.broadcast %11 : vector<1x32xf32> to vector<16x32xf32>
    %26 = arith.mulf %24, %25 : vector<16x32xf32>
    %27 = arith.addf %23, %26 : vector<16x32xf32>
    %28 = vector.broadcast %20 : vector<16x1xf32> to vector<16x32xf32>
    %29 = vector.broadcast %12 : vector<1x32xf32> to vector<16x32xf32>
    %30 = arith.mulf %28, %29 : vector<16x32xf32>
    %31 = arith.addf %27, %30 : vector<16x32xf32>
    %c4_i32 = arith.constant 4 : i32
    %32 = arith.muli %arg0, %c4_i32 : i32
    %c0_i32 = arith.constant 0 : i32
    %33 = arith.addi %32, %c0_i32 : i32
    %c2_i32 = arith.constant 2 : i32
    %c0_i32_18 = arith.constant 0 : i32
    %34 = arith.cmpi eq, %c2_i32, %c0_i32_18 : i32
    %c1_i32 = arith.constant 1 : i32
    %35 = arith.select %34, %c1_i32, %c2_i32 : i32
    %36 = arith.remsi %33, %35 : i32
    %c0_i32_19 = arith.constant 0 : i32
    %37 = arith.cmpi ne, %36, %c0_i32_19 : i32
    %c0_i32_20 = arith.constant 0 : i32
    %38 = arith.cmpi slt, %36, %c0_i32_20 : i32
    %c0_i32_21 = arith.constant 0 : i32
    %39 = arith.cmpi slt, %35, %c0_i32_21 : i32
    %40 = arith.xori %38, %39 : i1
    %41 = arith.andi %40, %37 : i1
    %42 = arith.addi %36, %35 : i32
    %43 = arith.select %41, %42, %36 : i32
    %c0_i32_22 = arith.constant 0 : i32
    %44 = arith.cmpi eq, %43, %c0_i32_22 : i32
    %45 = arith.extui %44 : i1 to i32
    %46 = arith.sitofp %45 : i32 to f32
    %47 = vector.broadcast %46 : f32 to vector<16x32xf32>
    %48 = arith.mulf %4, %47 : vector<16x32xf32>
    %c2_i32_23 = arith.constant 2 : i32
    %c0_i32_24 = arith.constant 0 : i32
    %49 = arith.cmpi eq, %c2_i32_23, %c0_i32_24 : i32
    %c1_i32_25 = arith.constant 1 : i32
    %50 = arith.select %49, %c1_i32_25, %c2_i32_23 : i32
    %51 = arith.remsi %33, %50 : i32
    %c0_i32_26 = arith.constant 0 : i32
    %52 = arith.cmpi ne, %51, %c0_i32_26 : i32
    %c0_i32_27 = arith.constant 0 : i32
    %53 = arith.cmpi slt, %51, %c0_i32_27 : i32
    %c0_i32_28 = arith.constant 0 : i32
    %54 = arith.cmpi slt, %50, %c0_i32_28 : i32
    %55 = arith.xori %53, %54 : i1
    %56 = arith.andi %55, %52 : i1
    %57 = arith.addi %51, %50 : i32
    %58 = arith.select %56, %57, %51 : i32
    %c1_i32_29 = arith.constant 1 : i32
    %59 = arith.cmpi eq, %58, %c1_i32_29 : i32
    %60 = arith.extui %59 : i1 to i32
    %61 = arith.sitofp %60 : i32 to f32
    %62 = vector.broadcast %61 : f32 to vector<16x32xf32>
    %63 = arith.mulf %8, %62 : vector<16x32xf32>
    %64 = arith.addf %48, %63 : vector<16x32xf32>
    %65 = arith.addf %31, %64 : vector<16x32xf32>
    %66 = arith.addf %65, %9 : vector<16x32xf32>
    %c0_30 = arith.constant 0 : index
    %c1_31 = arith.constant 1 : index
    %c0_32 = arith.constant 0 : index
    %c0_33 = arith.constant 0 : index
    %67 = vector.load %arg1[%c0_30, %c1_31, %c0_32, %c0_33] : memref<1x4x16x1xf32, #tpu.memory_space<vmem>>, vector<1x1x16x1xf32>
    %68 = vector.shape_cast %67 : vector<1x1x16x1xf32> to vector<16x1xf32>
    %69 = vector.extract_strided_slice %68 {offsets = [15, 0], sizes = [1, 1], strides = [1, 1]} : vector<16x1xf32> to vector<1x1xf32>
    %70 = vector.extract_strided_slice %68 {offsets = [0, 0], sizes = [15, 1], strides = [1, 1]} : vector<16x1xf32> to vector<15x1xf32>
    %71 = tpu.concatenate %69, %70 in 0 : vector<1x1xf32>, vector<15x1xf32> -> vector<16x1xf32>
    %72 = vector.extract_strided_slice %68 {offsets = [1, 0], sizes = [15, 1], strides = [1, 1]} : vector<16x1xf32> to vector<15x1xf32>
    %73 = vector.extract_strided_slice %68 {offsets = [0, 0], sizes = [1, 1], strides = [1, 1]} : vector<16x1xf32> to vector<1x1xf32>
    %74 = tpu.concatenate %72, %73 in 0 : vector<15x1xf32>, vector<1x1xf32> -> vector<16x1xf32>
    %75 = vector.broadcast %71 : vector<16x1xf32> to vector<16x32xf32>
    %76 = vector.broadcast %10 : vector<1x32xf32> to vector<16x32xf32>
    %77 = arith.mulf %75, %76 : vector<16x32xf32>
    %78 = vector.broadcast %68 : vector<16x1xf32> to vector<16x32xf32>
    %79 = vector.broadcast %11 : vector<1x32xf32> to vector<16x32xf32>
    %80 = arith.mulf %78, %79 : vector<16x32xf32>
    %81 = arith.addf %77, %80 : vector<16x32xf32>
    %82 = vector.broadcast %74 : vector<16x1xf32> to vector<16x32xf32>
    %83 = vector.broadcast %12 : vector<1x32xf32> to vector<16x32xf32>
    %84 = arith.mulf %82, %83 : vector<16x32xf32>
    %85 = arith.addf %81, %84 : vector<16x32xf32>
    %c4_i32_34 = arith.constant 4 : i32
    %86 = arith.muli %arg0, %c4_i32_34 : i32
    %c1_i32_35 = arith.constant 1 : i32
    %87 = arith.addi %86, %c1_i32_35 : i32
    %c2_i32_36 = arith.constant 2 : i32
    %c0_i32_37 = arith.constant 0 : i32
    %88 = arith.cmpi eq, %c2_i32_36, %c0_i32_37 : i32
    %c1_i32_38 = arith.constant 1 : i32
    %89 = arith.select %88, %c1_i32_38, %c2_i32_36 : i32
    %90 = arith.remsi %87, %89 : i32
    %c0_i32_39 = arith.constant 0 : i32
    %91 = arith.cmpi ne, %90, %c0_i32_39 : i32
    %c0_i32_40 = arith.constant 0 : i32
    %92 = arith.cmpi slt, %90, %c0_i32_40 : i32
    %c0_i32_41 = arith.constant 0 : i32
    %93 = arith.cmpi slt, %89, %c0_i32_41 : i32
    %94 = arith.xori %92, %93 : i1
    %95 = arith.andi %94, %91 : i1
    %96 = arith.addi %90, %89 : i32
    %97 = arith.select %95, %96, %90 : i32
    %c0_i32_42 = arith.constant 0 : i32
    %98 = arith.cmpi eq, %97, %c0_i32_42 : i32
    %99 = arith.extui %98 : i1 to i32
    %100 = arith.sitofp %99 : i32 to f32
    %101 = vector.broadcast %100 : f32 to vector<16x32xf32>
    %102 = arith.mulf %4, %101 : vector<16x32xf32>
    %c2_i32_43 = arith.constant 2 : i32
    %c0_i32_44 = arith.constant 0 : i32
    %103 = arith.cmpi eq, %c2_i32_43, %c0_i32_44 : i32
    %c1_i32_45 = arith.constant 1 : i32
    %104 = arith.select %103, %c1_i32_45, %c2_i32_43 : i32
    %105 = arith.remsi %87, %104 : i32
    %c0_i32_46 = arith.constant 0 : i32
    %106 = arith.cmpi ne, %105, %c0_i32_46 : i32
    %c0_i32_47 = arith.constant 0 : i32
    %107 = arith.cmpi slt, %105, %c0_i32_47 : i32
    %c0_i32_48 = arith.constant 0 : i32
    %108 = arith.cmpi slt, %104, %c0_i32_48 : i32
    %109 = arith.xori %107, %108 : i1
    %110 = arith.andi %109, %106 : i1
    %111 = arith.addi %105, %104 : i32
    %112 = arith.select %110, %111, %105 : i32
    %c1_i32_49 = arith.constant 1 : i32
    %113 = arith.cmpi eq, %112, %c1_i32_49 : i32
    %114 = arith.extui %113 : i1 to i32
    %115 = arith.sitofp %114 : i32 to f32
    %116 = vector.broadcast %115 : f32 to vector<16x32xf32>
    %117 = arith.mulf %8, %116 : vector<16x32xf32>
    %118 = arith.addf %102, %117 : vector<16x32xf32>
    %119 = arith.addf %85, %118 : vector<16x32xf32>
    %120 = arith.addf %119, %9 : vector<16x32xf32>
    %c0_50 = arith.constant 0 : index
    %c2_51 = arith.constant 2 : index
    %c0_52 = arith.constant 0 : index
    %c0_53 = arith.constant 0 : index
    %121 = vector.load %arg1[%c0_50, %c2_51, %c0_52, %c0_53] : memref<1x4x16x1xf32, #tpu.memory_space<vmem>>, vector<1x1x16x1xf32>
    %122 = vector.shape_cast %121 : vector<1x1x16x1xf32> to vector<16x1xf32>
    %123 = vector.extract_strided_slice %122 {offsets = [15, 0], sizes = [1, 1], strides = [1, 1]} : vector<16x1xf32> to vector<1x1xf32>
    %124 = vector.extract_strided_slice %122 {offsets = [0, 0], sizes = [15, 1], strides = [1, 1]} : vector<16x1xf32> to vector<15x1xf32>
    %125 = tpu.concatenate %123, %124 in 0 : vector<1x1xf32>, vector<15x1xf32> -> vector<16x1xf32>
    %126 = vector.extract_strided_slice %122 {offsets = [1, 0], sizes = [15, 1], strides = [1, 1]} : vector<16x1xf32> to vector<15x1xf32>
    %127 = vector.extract_strided_slice %122 {offsets = [0, 0], sizes = [1, 1], strides = [1, 1]} : vector<16x1xf32> to vector<1x1xf32>
    %128 = tpu.concatenate %126, %127 in 0 : vector<15x1xf32>, vector<1x1xf32> -> vector<16x1xf32>
    %129 = vector.broadcast %125 : vector<16x1xf32> to vector<16x32xf32>
    %130 = vector.broadcast %10 : vector<1x32xf32> to vector<16x32xf32>
    %131 = arith.mulf %129, %130 : vector<16x32xf32>
    %132 = vector.broadcast %122 : vector<16x1xf32> to vector<16x32xf32>
    %133 = vector.broadcast %11 : vector<1x32xf32> to vector<16x32xf32>
    %134 = arith.mulf %132, %133 : vector<16x32xf32>
    %135 = arith.addf %131, %134 : vector<16x32xf32>
    %136 = vector.broadcast %128 : vector<16x1xf32> to vector<16x32xf32>
    %137 = vector.broadcast %12 : vector<1x32xf32> to vector<16x32xf32>
    %138 = arith.mulf %136, %137 : vector<16x32xf32>
    %139 = arith.addf %135, %138 : vector<16x32xf32>
    %c4_i32_54 = arith.constant 4 : i32
    %140 = arith.muli %arg0, %c4_i32_54 : i32
    %c2_i32_55 = arith.constant 2 : i32
    %141 = arith.addi %140, %c2_i32_55 : i32
    %c2_i32_56 = arith.constant 2 : i32
    %c0_i32_57 = arith.constant 0 : i32
    %142 = arith.cmpi eq, %c2_i32_56, %c0_i32_57 : i32
    %c1_i32_58 = arith.constant 1 : i32
    %143 = arith.select %142, %c1_i32_58, %c2_i32_56 : i32
    %144 = arith.remsi %141, %143 : i32
    %c0_i32_59 = arith.constant 0 : i32
    %145 = arith.cmpi ne, %144, %c0_i32_59 : i32
    %c0_i32_60 = arith.constant 0 : i32
    %146 = arith.cmpi slt, %144, %c0_i32_60 : i32
    %c0_i32_61 = arith.constant 0 : i32
    %147 = arith.cmpi slt, %143, %c0_i32_61 : i32
    %148 = arith.xori %146, %147 : i1
    %149 = arith.andi %148, %145 : i1
    %150 = arith.addi %144, %143 : i32
    %151 = arith.select %149, %150, %144 : i32
    %c0_i32_62 = arith.constant 0 : i32
    %152 = arith.cmpi eq, %151, %c0_i32_62 : i32
    %153 = arith.extui %152 : i1 to i32
    %154 = arith.sitofp %153 : i32 to f32
    %155 = vector.broadcast %154 : f32 to vector<16x32xf32>
    %156 = arith.mulf %4, %155 : vector<16x32xf32>
    %c2_i32_63 = arith.constant 2 : i32
    %c0_i32_64 = arith.constant 0 : i32
    %157 = arith.cmpi eq, %c2_i32_63, %c0_i32_64 : i32
    %c1_i32_65 = arith.constant 1 : i32
    %158 = arith.select %157, %c1_i32_65, %c2_i32_63 : i32
    %159 = arith.remsi %141, %158 : i32
    %c0_i32_66 = arith.constant 0 : i32
    %160 = arith.cmpi ne, %159, %c0_i32_66 : i32
    %c0_i32_67 = arith.constant 0 : i32
    %161 = arith.cmpi slt, %159, %c0_i32_67 : i32
    %c0_i32_68 = arith.constant 0 : i32
    %162 = arith.cmpi slt, %158, %c0_i32_68 : i32
    %163 = arith.xori %161, %162 : i1
    %164 = arith.andi %163, %160 : i1
    %165 = arith.addi %159, %158 : i32
    %166 = arith.select %164, %165, %159 : i32
    %c1_i32_69 = arith.constant 1 : i32
    %167 = arith.cmpi eq, %166, %c1_i32_69 : i32
    %168 = arith.extui %167 : i1 to i32
    %169 = arith.sitofp %168 : i32 to f32
    %170 = vector.broadcast %169 : f32 to vector<16x32xf32>
    %171 = arith.mulf %8, %170 : vector<16x32xf32>
    %172 = arith.addf %156, %171 : vector<16x32xf32>
    %173 = arith.addf %139, %172 : vector<16x32xf32>
    %174 = arith.addf %173, %9 : vector<16x32xf32>
    %c0_70 = arith.constant 0 : index
    %c3 = arith.constant 3 : index
    %c0_71 = arith.constant 0 : index
    %c0_72 = arith.constant 0 : index
    %175 = vector.load %arg1[%c0_70, %c3, %c0_71, %c0_72] : memref<1x4x16x1xf32, #tpu.memory_space<vmem>>, vector<1x1x16x1xf32>
    %176 = vector.shape_cast %175 : vector<1x1x16x1xf32> to vector<16x1xf32>
    %177 = vector.extract_strided_slice %176 {offsets = [15, 0], sizes = [1, 1], strides = [1, 1]} : vector<16x1xf32> to vector<1x1xf32>
    %178 = vector.extract_strided_slice %176 {offsets = [0, 0], sizes = [15, 1], strides = [1, 1]} : vector<16x1xf32> to vector<15x1xf32>
    %179 = tpu.concatenate %177, %178 in 0 : vector<1x1xf32>, vector<15x1xf32> -> vector<16x1xf32>
    %180 = vector.extract_strided_slice %176 {offsets = [1, 0], sizes = [15, 1], strides = [1, 1]} : vector<16x1xf32> to vector<15x1xf32>
    %181 = vector.extract_strided_slice %176 {offsets = [0, 0], sizes = [1, 1], strides = [1, 1]} : vector<16x1xf32> to vector<1x1xf32>
    %182 = tpu.concatenate %180, %181 in 0 : vector<15x1xf32>, vector<1x1xf32> -> vector<16x1xf32>
    %183 = vector.broadcast %179 : vector<16x1xf32> to vector<16x32xf32>
    %184 = vector.broadcast %10 : vector<1x32xf32> to vector<16x32xf32>
    %185 = arith.mulf %183, %184 : vector<16x32xf32>
    %186 = vector.broadcast %176 : vector<16x1xf32> to vector<16x32xf32>
    %187 = vector.broadcast %11 : vector<1x32xf32> to vector<16x32xf32>
    %188 = arith.mulf %186, %187 : vector<16x32xf32>
    %189 = arith.addf %185, %188 : vector<16x32xf32>
    %190 = vector.broadcast %182 : vector<16x1xf32> to vector<16x32xf32>
    %191 = vector.broadcast %12 : vector<1x32xf32> to vector<16x32xf32>
    %192 = arith.mulf %190, %191 : vector<16x32xf32>
    %193 = arith.addf %189, %192 : vector<16x32xf32>
    %c4_i32_73 = arith.constant 4 : i32
    %194 = arith.muli %arg0, %c4_i32_73 : i32
    %c3_i32 = arith.constant 3 : i32
    %195 = arith.addi %194, %c3_i32 : i32
    %c2_i32_74 = arith.constant 2 : i32
    %c0_i32_75 = arith.constant 0 : i32
    %196 = arith.cmpi eq, %c2_i32_74, %c0_i32_75 : i32
    %c1_i32_76 = arith.constant 1 : i32
    %197 = arith.select %196, %c1_i32_76, %c2_i32_74 : i32
    %198 = arith.remsi %195, %197 : i32
    %c0_i32_77 = arith.constant 0 : i32
    %199 = arith.cmpi ne, %198, %c0_i32_77 : i32
    %c0_i32_78 = arith.constant 0 : i32
    %200 = arith.cmpi slt, %198, %c0_i32_78 : i32
    %c0_i32_79 = arith.constant 0 : i32
    %201 = arith.cmpi slt, %197, %c0_i32_79 : i32
    %202 = arith.xori %200, %201 : i1
    %203 = arith.andi %202, %199 : i1
    %204 = arith.addi %198, %197 : i32
    %205 = arith.select %203, %204, %198 : i32
    %c0_i32_80 = arith.constant 0 : i32
    %206 = arith.cmpi eq, %205, %c0_i32_80 : i32
    %207 = arith.extui %206 : i1 to i32
    %208 = arith.sitofp %207 : i32 to f32
    %209 = vector.broadcast %208 : f32 to vector<16x32xf32>
    %210 = arith.mulf %4, %209 : vector<16x32xf32>
    %c2_i32_81 = arith.constant 2 : i32
    %c0_i32_82 = arith.constant 0 : i32
    %211 = arith.cmpi eq, %c2_i32_81, %c0_i32_82 : i32
    %c1_i32_83 = arith.constant 1 : i32
    %212 = arith.select %211, %c1_i32_83, %c2_i32_81 : i32
    %213 = arith.remsi %195, %212 : i32
    %c0_i32_84 = arith.constant 0 : i32
    %214 = arith.cmpi ne, %213, %c0_i32_84 : i32
    %c0_i32_85 = arith.constant 0 : i32
    %215 = arith.cmpi slt, %213, %c0_i32_85 : i32
    %c0_i32_86 = arith.constant 0 : i32
    %216 = arith.cmpi slt, %212, %c0_i32_86 : i32
    %217 = arith.xori %215, %216 : i1
    %218 = arith.andi %217, %214 : i1
    %219 = arith.addi %213, %212 : i32
    %220 = arith.select %218, %219, %213 : i32
    %c1_i32_87 = arith.constant 1 : i32
    %221 = arith.cmpi eq, %220, %c1_i32_87 : i32
    %222 = arith.extui %221 : i1 to i32
    %223 = arith.sitofp %222 : i32 to f32
    %224 = vector.broadcast %223 : f32 to vector<16x32xf32>
    %225 = arith.mulf %8, %224 : vector<16x32xf32>
    %226 = arith.addf %210, %225 : vector<16x32xf32>
    %227 = arith.addf %193, %226 : vector<16x32xf32>
    %228 = arith.addf %227, %9 : vector<16x32xf32>
    %229 = vector.extract_strided_slice %66 {offsets = [0, 0], sizes = [14, 32], strides = [1, 1]} : vector<16x32xf32> to vector<14x32xf32>
    %230 = vector.extract_strided_slice %66 {offsets = [1, 0], sizes = [14, 32], strides = [1, 1]} : vector<16x32xf32> to vector<14x32xf32>
    %231 = vector.extract_strided_slice %66 {offsets = [2, 0], sizes = [14, 32], strides = [1, 1]} : vector<16x32xf32> to vector<14x32xf32>
    %232 = tpu.concatenate %229, %230, %231 in 1 : vector<14x32xf32>, vector<14x32xf32>, vector<14x32xf32> -> vector<14x96xf32>
    %233 = arith.truncf %232 : vector<14x96xf32> to vector<14x96xbf16>
    %c0_88 = arith.constant 0 : index
    %c0_89 = arith.constant 0 : index
    %234 = vector.load %arg6[%c0_88, %c0_89] : memref<96x64xbf16, #tpu.memory_space<vmem>>, vector<96x64xbf16>
    %cst_90 = arith.constant dense<0.000000e+00> : vector<14x64xf32>
    %235 = tpu.matmul %233, %234, %cst_90 {dimension_numbers = #tpu.dot_dimension_numbers<[1], [0], [0], [1], [0, 0, 1, 1], [], []>} : vector<14x96xbf16>, vector<96x64xbf16>, vector<14x64xf32> -> vector<14x64xf32>
    %c0_91 = arith.constant 0 : index
    %c0_92 = arith.constant 0 : index
    %236 = vector.load %arg7[%c0_91, %c0_92] : memref<1x64xf32, #tpu.memory_space<vmem>>, vector<1x64xf32>
    %237 = vector.broadcast %236 : vector<1x64xf32> to vector<14x64xf32>
    %238 = arith.addf %235, %237 : vector<14x64xf32>
    %c0_93 = arith.constant 0 : index
    %c0_94 = arith.constant 0 : index
    %239 = vector.load %arg8[%c0_93, %c0_94] : memref<96x64xbf16, #tpu.memory_space<vmem>>, vector<96x64xbf16>
    %cst_95 = arith.constant dense<0.000000e+00> : vector<14x64xf32>
    %240 = tpu.matmul %233, %239, %cst_95 {dimension_numbers = #tpu.dot_dimension_numbers<[1], [0], [0], [1], [0, 0, 1, 1], [], []>} : vector<14x96xbf16>, vector<96x64xbf16>, vector<14x64xf32> -> vector<14x64xf32>
    %c0_96 = arith.constant 0 : index
    %c0_97 = arith.constant 0 : index
    %241 = vector.load %arg9[%c0_96, %c0_97] : memref<1x64xf32, #tpu.memory_space<vmem>>, vector<1x64xf32>
    %242 = vector.broadcast %241 : vector<1x64xf32> to vector<14x64xf32>
    %243 = arith.addf %240, %242 : vector<14x64xf32>
    %244 = arith.negf %243 : vector<14x64xf32>
    %245 = math.exp %244 : vector<14x64xf32>
    %cst_98 = arith.constant 1.000000e+00 : f32
    %246 = vector.broadcast %cst_98 : f32 to vector<14x64xf32>
    %247 = arith.addf %246, %245 : vector<14x64xf32>
    %248 = arith.divf %246, %247 : vector<14x64xf32>
    %249 = arith.addf %238, %248 : vector<14x64xf32>
    %cst_99 = arith.constant 0.000000e+00 : f32
    %250 = vector.broadcast %cst_99 : f32 to vector<14x64xf32>
    %251 = arith.maximumf %249, %250 : vector<14x64xf32>
    %252 = vector.extract_strided_slice %120 {offsets = [0, 0], sizes = [14, 32], strides = [1, 1]} : vector<16x32xf32> to vector<14x32xf32>
    %253 = vector.extract_strided_slice %120 {offsets = [1, 0], sizes = [14, 32], strides = [1, 1]} : vector<16x32xf32> to vector<14x32xf32>
    %254 = vector.extract_strided_slice %120 {offsets = [2, 0], sizes = [14, 32], strides = [1, 1]} : vector<16x32xf32> to vector<14x32xf32>
    %255 = tpu.concatenate %252, %253, %254 in 1 : vector<14x32xf32>, vector<14x32xf32>, vector<14x32xf32> -> vector<14x96xf32>
    %256 = arith.truncf %255 : vector<14x96xf32> to vector<14x96xbf16>
    %c0_100 = arith.constant 0 : index
    %c0_101 = arith.constant 0 : index
    %257 = vector.load %arg6[%c0_100, %c0_101] : memref<96x64xbf16, #tpu.memory_space<vmem>>, vector<96x64xbf16>
    %cst_102 = arith.constant dense<0.000000e+00> : vector<14x64xf32>
    %258 = tpu.matmul %256, %257, %cst_102 {dimension_numbers = #tpu.dot_dimension_numbers<[1], [0], [0], [1], [0, 0, 1, 1], [], []>} : vector<14x96xbf16>, vector<96x64xbf16>, vector<14x64xf32> -> vector<14x64xf32>
    %c0_103 = arith.constant 0 : index
    %c0_104 = arith.constant 0 : index
    %259 = vector.load %arg7[%c0_103, %c0_104] : memref<1x64xf32, #tpu.memory_space<vmem>>, vector<1x64xf32>
    %260 = vector.broadcast %259 : vector<1x64xf32> to vector<14x64xf32>
    %261 = arith.addf %258, %260 : vector<14x64xf32>
    %c0_105 = arith.constant 0 : index
    %c0_106 = arith.constant 0 : index
    %262 = vector.load %arg8[%c0_105, %c0_106] : memref<96x64xbf16, #tpu.memory_space<vmem>>, vector<96x64xbf16>
    %cst_107 = arith.constant dense<0.000000e+00> : vector<14x64xf32>
    %263 = tpu.matmul %256, %262, %cst_107 {dimension_numbers = #tpu.dot_dimension_numbers<[1], [0], [0], [1], [0, 0, 1, 1], [], []>} : vector<14x96xbf16>, vector<96x64xbf16>, vector<14x64xf32> -> vector<14x64xf32>
    %c0_108 = arith.constant 0 : index
    %c0_109 = arith.constant 0 : index
    %264 = vector.load %arg9[%c0_108, %c0_109] : memref<1x64xf32, #tpu.memory_space<vmem>>, vector<1x64xf32>
    %265 = vector.broadcast %264 : vector<1x64xf32> to vector<14x64xf32>
    %266 = arith.addf %263, %265 : vector<14x64xf32>
    %267 = arith.negf %266 : vector<14x64xf32>
    %268 = math.exp %267 : vector<14x64xf32>
    %cst_110 = arith.constant 1.000000e+00 : f32
    %269 = vector.broadcast %cst_110 : f32 to vector<14x64xf32>
    %270 = arith.addf %269, %268 : vector<14x64xf32>
    %271 = arith.divf %269, %270 : vector<14x64xf32>
    %272 = arith.addf %261, %271 : vector<14x64xf32>
    %cst_111 = arith.constant 0.000000e+00 : f32
    %273 = vector.broadcast %cst_111 : f32 to vector<14x64xf32>
    %274 = arith.maximumf %272, %273 : vector<14x64xf32>
    %275 = vector.extract_strided_slice %174 {offsets = [0, 0], sizes = [14, 32], strides = [1, 1]} : vector<16x32xf32> to vector<14x32xf32>
    %276 = vector.extract_strided_slice %174 {offsets = [1, 0], sizes = [14, 32], strides = [1, 1]} : vector<16x32xf32> to vector<14x32xf32>
    %277 = vector.extract_strided_slice %174 {offsets = [2, 0], sizes = [14, 32], strides = [1, 1]} : vector<16x32xf32> to vector<14x32xf32>
    %278 = tpu.concatenate %275, %276, %277 in 1 : vector<14x32xf32>, vector<14x32xf32>, vector<14x32xf32> -> vector<14x96xf32>
    %279 = arith.truncf %278 : vector<14x96xf32> to vector<14x96xbf16>
    %c0_112 = arith.constant 0 : index
    %c0_113 = arith.constant 0 : index
    %280 = vector.load %arg6[%c0_112, %c0_113] : memref<96x64xbf16, #tpu.memory_space<vmem>>, vector<96x64xbf16>
    %cst_114 = arith.constant dense<0.000000e+00> : vector<14x64xf32>
    %281 = tpu.matmul %279, %280, %cst_114 {dimension_numbers = #tpu.dot_dimension_numbers<[1], [0], [0], [1], [0, 0, 1, 1], [], []>} : vector<14x96xbf16>, vector<96x64xbf16>, vector<14x64xf32> -> vector<14x64xf32>
    %c0_115 = arith.constant 0 : index
    %c0_116 = arith.constant 0 : index
    %282 = vector.load %arg7[%c0_115, %c0_116] : memref<1x64xf32, #tpu.memory_space<vmem>>, vector<1x64xf32>
    %283 = vector.broadcast %282 : vector<1x64xf32> to vector<14x64xf32>
    %284 = arith.addf %281, %283 : vector<14x64xf32>
    %c0_117 = arith.constant 0 : index
    %c0_118 = arith.constant 0 : index
    %285 = vector.load %arg8[%c0_117, %c0_118] : memref<96x64xbf16, #tpu.memory_space<vmem>>, vector<96x64xbf16>
    %cst_119 = arith.constant dense<0.000000e+00> : vector<14x64xf32>
    %286 = tpu.matmul %279, %285, %cst_119 {dimension_numbers = #tpu.dot_dimension_numbers<[1], [0], [0], [1], [0, 0, 1, 1], [], []>} : vector<14x96xbf16>, vector<96x64xbf16>, vector<14x64xf32> -> vector<14x64xf32>
    %c0_120 = arith.constant 0 : index
    %c0_121 = arith.constant 0 : index
    %287 = vector.load %arg9[%c0_120, %c0_121] : memref<1x64xf32, #tpu.memory_space<vmem>>, vector<1x64xf32>
    %288 = vector.broadcast %287 : vector<1x64xf32> to vector<14x64xf32>
    %289 = arith.addf %286, %288 : vector<14x64xf32>
    %290 = arith.negf %289 : vector<14x64xf32>
    %291 = math.exp %290 : vector<14x64xf32>
    %cst_122 = arith.constant 1.000000e+00 : f32
    %292 = vector.broadcast %cst_122 : f32 to vector<14x64xf32>
    %293 = arith.addf %292, %291 : vector<14x64xf32>
    %294 = arith.divf %292, %293 : vector<14x64xf32>
    %295 = arith.addf %284, %294 : vector<14x64xf32>
    %cst_123 = arith.constant 0.000000e+00 : f32
    %296 = vector.broadcast %cst_123 : f32 to vector<14x64xf32>
    %297 = arith.maximumf %295, %296 : vector<14x64xf32>
    %298 = vector.extract_strided_slice %228 {offsets = [0, 0], sizes = [14, 32], strides = [1, 1]} : vector<16x32xf32> to vector<14x32xf32>
    %299 = vector.extract_strided_slice %228 {offsets = [1, 0], sizes = [14, 32], strides = [1, 1]} : vector<16x32xf32> to vector<14x32xf32>
    %300 = vector.extract_strided_slice %228 {offsets = [2, 0], sizes = [14, 32], strides = [1, 1]} : vector<16x32xf32> to vector<14x32xf32>
    %301 = tpu.concatenate %298, %299, %300 in 1 : vector<14x32xf32>, vector<14x32xf32>, vector<14x32xf32> -> vector<14x96xf32>
    %302 = arith.truncf %301 : vector<14x96xf32> to vector<14x96xbf16>
    %c0_124 = arith.constant 0 : index
    %c0_125 = arith.constant 0 : index
    %303 = vector.load %arg6[%c0_124, %c0_125] : memref<96x64xbf16, #tpu.memory_space<vmem>>, vector<96x64xbf16>
    %cst_126 = arith.constant dense<0.000000e+00> : vector<14x64xf32>
    %304 = tpu.matmul %302, %303, %cst_126 {dimension_numbers = #tpu.dot_dimension_numbers<[1], [0], [0], [1], [0, 0, 1, 1], [], []>} : vector<14x96xbf16>, vector<96x64xbf16>, vector<14x64xf32> -> vector<14x64xf32>
    %c0_127 = arith.constant 0 : index
    %c0_128 = arith.constant 0 : index
    %305 = vector.load %arg7[%c0_127, %c0_128] : memref<1x64xf32, #tpu.memory_space<vmem>>, vector<1x64xf32>
    %306 = vector.broadcast %305 : vector<1x64xf32> to vector<14x64xf32>
    %307 = arith.addf %304, %306 : vector<14x64xf32>
    %c0_129 = arith.constant 0 : index
    %c0_130 = arith.constant 0 : index
    %308 = vector.load %arg8[%c0_129, %c0_130] : memref<96x64xbf16, #tpu.memory_space<vmem>>, vector<96x64xbf16>
    %cst_131 = arith.constant dense<0.000000e+00> : vector<14x64xf32>
    %309 = tpu.matmul %302, %308, %cst_131 {dimension_numbers = #tpu.dot_dimension_numbers<[1], [0], [0], [1], [0, 0, 1, 1], [], []>} : vector<14x96xbf16>, vector<96x64xbf16>, vector<14x64xf32> -> vector<14x64xf32>
    %c0_132 = arith.constant 0 : index
    %c0_133 = arith.constant 0 : index
    %310 = vector.load %arg9[%c0_132, %c0_133] : memref<1x64xf32, #tpu.memory_space<vmem>>, vector<1x64xf32>
    %311 = vector.broadcast %310 : vector<1x64xf32> to vector<14x64xf32>
    %312 = arith.addf %309, %311 : vector<14x64xf32>
    %313 = arith.negf %312 : vector<14x64xf32>
    %314 = math.exp %313 : vector<14x64xf32>
    %cst_134 = arith.constant 1.000000e+00 : f32
    %315 = vector.broadcast %cst_134 : f32 to vector<14x64xf32>
    %316 = arith.addf %315, %314 : vector<14x64xf32>
    %317 = arith.divf %315, %316 : vector<14x64xf32>
    %318 = arith.addf %307, %317 : vector<14x64xf32>
    %cst_135 = arith.constant 0.000000e+00 : f32
    %319 = vector.broadcast %cst_135 : f32 to vector<14x64xf32>
    %320 = arith.maximumf %318, %319 : vector<14x64xf32>
    %cst_136 = arith.constant 2.500000e-01 : f32
    %321 = vector.broadcast %cst_136 : f32 to vector<14x64xf32>
    %322 = arith.mulf %251, %321 : vector<14x64xf32>
    %cst_137 = arith.constant 2.500000e-01 : f32
    %323 = vector.broadcast %cst_137 : f32 to vector<14x64xf32>
    %324 = arith.mulf %274, %323 : vector<14x64xf32>
    %325 = arith.addf %322, %324 : vector<14x64xf32>
    %cst_138 = arith.constant 2.500000e-01 : f32
    %326 = vector.broadcast %cst_138 : f32 to vector<14x64xf32>
    %327 = arith.mulf %297, %326 : vector<14x64xf32>
    %328 = arith.addf %325, %327 : vector<14x64xf32>
    %cst_139 = arith.constant 2.500000e-01 : f32
    %329 = vector.broadcast %cst_139 : f32 to vector<14x64xf32>
    %330 = arith.mulf %320, %329 : vector<14x64xf32>
    %331 = arith.addf %328, %330 : vector<14x64xf32>
    %332 = arith.truncf %331 : vector<14x64xf32> to vector<14x64xbf16>
    %c0_140 = arith.constant 0 : index
    %c0_141 = arith.constant 0 : index
    %333 = vector.load %arg10[%c0_140, %c0_141] : memref<64x16xbf16, #tpu.memory_space<vmem>>, vector<64x16xbf16>
    %cst_142 = arith.constant dense<0.000000e+00> : vector<14x16xf32>
    %334 = tpu.matmul %332, %333, %cst_142 {dimension_numbers = #tpu.dot_dimension_numbers<[1], [0], [0], [1], [0, 0, 1, 1], [], []>} : vector<14x64xbf16>, vector<64x16xbf16>, vector<14x16xf32> -> vector<14x16xf32>
    %cst_143 = arith.constant 0.000000e+00 : f32
    %335 = vector.broadcast %cst_143 : f32 to vector<14x16xf32>
    %336 = arith.maximumf %334, %335 : vector<14x16xf32>
    %337 = vector.extract_strided_slice %336 {offsets = [0, 0], sizes = [12, 16], strides = [1, 1]} : vector<14x16xf32> to vector<12x16xf32>
    %338 = vector.extract_strided_slice %336 {offsets = [1, 0], sizes = [12, 16], strides = [1, 1]} : vector<14x16xf32> to vector<12x16xf32>
    %339 = vector.extract_strided_slice %336 {offsets = [2, 0], sizes = [12, 16], strides = [1, 1]} : vector<14x16xf32> to vector<12x16xf32>
    %340 = tpu.concatenate %337, %338, %339 in 1 : vector<12x16xf32>, vector<12x16xf32>, vector<12x16xf32> -> vector<12x48xf32>
    %341 = arith.truncf %340 : vector<12x48xf32> to vector<12x48xbf16>
    %c0_144 = arith.constant 0 : index
    %c0_145 = arith.constant 0 : index
    %342 = vector.load %arg11[%c0_144, %c0_145] : memref<48x64xbf16, #tpu.memory_space<vmem>>, vector<48x64xbf16>
    %cst_146 = arith.constant dense<0.000000e+00> : vector<12x64xf32>
    %343 = tpu.matmul %341, %342, %cst_146 {dimension_numbers = #tpu.dot_dimension_numbers<[1], [0], [0], [1], [0, 0, 1, 1], [], []>} : vector<12x48xbf16>, vector<48x64xbf16>, vector<12x64xf32> -> vector<12x64xf32>
    %c0_147 = arith.constant 0 : index
    %c0_148 = arith.constant 0 : index
    %344 = vector.load %arg12[%c0_147, %c0_148] : memref<1x64xf32, #tpu.memory_space<vmem>>, vector<1x64xf32>
    %345 = vector.broadcast %344 : vector<1x64xf32> to vector<12x64xf32>
    %346 = arith.addf %343, %345 : vector<12x64xf32>
    %c0_149 = arith.constant 0 : index
    %c0_150 = arith.constant 0 : index
    %347 = vector.load %arg13[%c0_149, %c0_150] : memref<48x64xbf16, #tpu.memory_space<vmem>>, vector<48x64xbf16>
    %cst_151 = arith.constant dense<0.000000e+00> : vector<12x64xf32>
    %348 = tpu.matmul %341, %347, %cst_151 {dimension_numbers = #tpu.dot_dimension_numbers<[1], [0], [0], [1], [0, 0, 1, 1], [], []>} : vector<12x48xbf16>, vector<48x64xbf16>, vector<12x64xf32> -> vector<12x64xf32>
    %c0_152 = arith.constant 0 : index
    %c0_153 = arith.constant 0 : index
    %349 = vector.load %arg14[%c0_152, %c0_153] : memref<1x64xf32, #tpu.memory_space<vmem>>, vector<1x64xf32>
    %350 = vector.broadcast %349 : vector<1x64xf32> to vector<12x64xf32>
    %351 = arith.addf %348, %350 : vector<12x64xf32>
    %352 = arith.negf %351 : vector<12x64xf32>
    %353 = math.exp %352 : vector<12x64xf32>
    %cst_154 = arith.constant 1.000000e+00 : f32
    %354 = vector.broadcast %cst_154 : f32 to vector<12x64xf32>
    %355 = arith.addf %354, %353 : vector<12x64xf32>
    %356 = arith.divf %354, %355 : vector<12x64xf32>
    %357 = arith.addf %346, %356 : vector<12x64xf32>
    %cst_155 = arith.constant 0.000000e+00 : f32
    %358 = vector.broadcast %cst_155 : f32 to vector<12x64xf32>
    %359 = arith.maximumf %357, %358 : vector<12x64xf32>
    %c0_156 = arith.constant 0 : index
    %c0_157 = arith.constant 0 : index
    %c0_158 = arith.constant 0 : index
    %360 = vector.load %arg15[%c0_156, %c0_157, %c0_158] : memref<4x1x64xf32, #tpu.memory_space<vmem>>, vector<1x1x64xf32>
    %361 = vector.shape_cast %360 : vector<1x1x64xf32> to vector<1x64xf32>
    %362 = vector.broadcast %361 : vector<1x64xf32> to vector<12x64xf32>
    %363 = arith.mulf %359, %362 : vector<12x64xf32>
    %c0_159 = arith.constant 0 : index
    %c0_160 = arith.constant 0 : index
    %c0_161 = arith.constant 0 : index
    %364 = vector.load %arg16[%c0_159, %c0_160, %c0_161] : memref<4x1x64xf32, #tpu.memory_space<vmem>>, vector<1x1x64xf32>
    %365 = vector.shape_cast %364 : vector<1x1x64xf32> to vector<1x64xf32>
    %366 = vector.broadcast %365 : vector<1x64xf32> to vector<12x64xf32>
    %367 = arith.addf %363, %366 : vector<12x64xf32>
    %cst_162 = arith.constant 2.500000e-01 : f32
    %368 = vector.broadcast %cst_162 : f32 to vector<14x64xf32>
    %369 = arith.mulf %251, %368 : vector<14x64xf32>
    %cst_163 = arith.constant 2.500000e-01 : f32
    %370 = vector.broadcast %cst_163 : f32 to vector<14x64xf32>
    %371 = arith.mulf %274, %370 : vector<14x64xf32>
    %372 = arith.addf %369, %371 : vector<14x64xf32>
    %cst_164 = arith.constant 2.500000e-01 : f32
    %373 = vector.broadcast %cst_164 : f32 to vector<14x64xf32>
    %374 = arith.mulf %297, %373 : vector<14x64xf32>
    %375 = arith.addf %372, %374 : vector<14x64xf32>
    %cst_165 = arith.constant 2.500000e-01 : f32
    %376 = vector.broadcast %cst_165 : f32 to vector<14x64xf32>
    %377 = arith.mulf %320, %376 : vector<14x64xf32>
    %378 = arith.addf %375, %377 : vector<14x64xf32>
    %379 = arith.truncf %378 : vector<14x64xf32> to vector<14x64xbf16>
    %c0_166 = arith.constant 0 : index
    %c0_167 = arith.constant 0 : index
    %380 = vector.load %arg10[%c0_166, %c0_167] : memref<64x16xbf16, #tpu.memory_space<vmem>>, vector<64x16xbf16>
    %cst_168 = arith.constant dense<0.000000e+00> : vector<14x16xf32>
    %381 = tpu.matmul %379, %380, %cst_168 {dimension_numbers = #tpu.dot_dimension_numbers<[1], [0], [0], [1], [0, 0, 1, 1], [], []>} : vector<14x64xbf16>, vector<64x16xbf16>, vector<14x16xf32> -> vector<14x16xf32>
    %cst_169 = arith.constant 0.000000e+00 : f32
    %382 = vector.broadcast %cst_169 : f32 to vector<14x16xf32>
    %383 = arith.maximumf %381, %382 : vector<14x16xf32>
    %384 = vector.extract_strided_slice %383 {offsets = [0, 0], sizes = [12, 16], strides = [1, 1]} : vector<14x16xf32> to vector<12x16xf32>
    %385 = vector.extract_strided_slice %383 {offsets = [1, 0], sizes = [12, 16], strides = [1, 1]} : vector<14x16xf32> to vector<12x16xf32>
    %386 = vector.extract_strided_slice %383 {offsets = [2, 0], sizes = [12, 16], strides = [1, 1]} : vector<14x16xf32> to vector<12x16xf32>
    %387 = tpu.concatenate %384, %385, %386 in 1 : vector<12x16xf32>, vector<12x16xf32>, vector<12x16xf32> -> vector<12x48xf32>
    %388 = arith.truncf %387 : vector<12x48xf32> to vector<12x48xbf16>
    %c0_170 = arith.constant 0 : index
    %c0_171 = arith.constant 0 : index
    %389 = vector.load %arg11[%c0_170, %c0_171] : memref<48x64xbf16, #tpu.memory_space<vmem>>, vector<48x64xbf16>
    %cst_172 = arith.constant dense<0.000000e+00> : vector<12x64xf32>
    %390 = tpu.matmul %388, %389, %cst_172 {dimension_numbers = #tpu.dot_dimension_numbers<[1], [0], [0], [1], [0, 0, 1, 1], [], []>} : vector<12x48xbf16>, vector<48x64xbf16>, vector<12x64xf32> -> vector<12x64xf32>
    %c0_173 = arith.constant 0 : index
    %c0_174 = arith.constant 0 : index
    %391 = vector.load %arg12[%c0_173, %c0_174] : memref<1x64xf32, #tpu.memory_space<vmem>>, vector<1x64xf32>
    %392 = vector.broadcast %391 : vector<1x64xf32> to vector<12x64xf32>
    %393 = arith.addf %390, %392 : vector<12x64xf32>
    %c0_175 = arith.constant 0 : index
    %c0_176 = arith.constant 0 : index
    %394 = vector.load %arg13[%c0_175, %c0_176] : memref<48x64xbf16, #tpu.memory_space<vmem>>, vector<48x64xbf16>
    %cst_177 = arith.constant dense<0.000000e+00> : vector<12x64xf32>
    %395 = tpu.matmul %388, %394, %cst_177 {dimension_numbers = #tpu.dot_dimension_numbers<[1], [0], [0], [1], [0, 0, 1, 1], [], []>} : vector<12x48xbf16>, vector<48x64xbf16>, vector<12x64xf32> -> vector<12x64xf32>
    %c0_178 = arith.constant 0 : index
    %c0_179 = arith.constant 0 : index
    %396 = vector.load %arg14[%c0_178, %c0_179] : memref<1x64xf32, #tpu.memory_space<vmem>>, vector<1x64xf32>
    %397 = vector.broadcast %396 : vector<1x64xf32> to vector<12x64xf32>
    %398 = arith.addf %395, %397 : vector<12x64xf32>
    %399 = arith.negf %398 : vector<12x64xf32>
    %400 = math.exp %399 : vector<12x64xf32>
    %cst_180 = arith.constant 1.000000e+00 : f32
    %401 = vector.broadcast %cst_180 : f32 to vector<12x64xf32>
    %402 = arith.addf %401, %400 : vector<12x64xf32>
    %403 = arith.divf %401, %402 : vector<12x64xf32>
    %404 = arith.addf %393, %403 : vector<12x64xf32>
    %cst_181 = arith.constant 0.000000e+00 : f32
    %405 = vector.broadcast %cst_181 : f32 to vector<12x64xf32>
    %406 = arith.maximumf %404, %405 : vector<12x64xf32>
    %c1_182 = arith.constant 1 : index
    %c0_183 = arith.constant 0 : index
    %c0_184 = arith.constant 0 : index
    %407 = vector.load %arg15[%c1_182, %c0_183, %c0_184] : memref<4x1x64xf32, #tpu.memory_space<vmem>>, vector<1x1x64xf32>
    %408 = vector.shape_cast %407 : vector<1x1x64xf32> to vector<1x64xf32>
    %409 = vector.broadcast %408 : vector<1x64xf32> to vector<12x64xf32>
    %410 = arith.mulf %406, %409 : vector<12x64xf32>
    %c1_185 = arith.constant 1 : index
    %c0_186 = arith.constant 0 : index
    %c0_187 = arith.constant 0 : index
    %411 = vector.load %arg16[%c1_185, %c0_186, %c0_187] : memref<4x1x64xf32, #tpu.memory_space<vmem>>, vector<1x1x64xf32>
    %412 = vector.shape_cast %411 : vector<1x1x64xf32> to vector<1x64xf32>
    %413 = vector.broadcast %412 : vector<1x64xf32> to vector<12x64xf32>
    %414 = arith.addf %410, %413 : vector<12x64xf32>
    %cst_188 = arith.constant 2.500000e-01 : f32
    %415 = vector.broadcast %cst_188 : f32 to vector<14x64xf32>
    %416 = arith.mulf %251, %415 : vector<14x64xf32>
    %cst_189 = arith.constant 2.500000e-01 : f32
    %417 = vector.broadcast %cst_189 : f32 to vector<14x64xf32>
    %418 = arith.mulf %274, %417 : vector<14x64xf32>
    %419 = arith.addf %416, %418 : vector<14x64xf32>
    %cst_190 = arith.constant 2.500000e-01 : f32
    %420 = vector.broadcast %cst_190 : f32 to vector<14x64xf32>
    %421 = arith.mulf %297, %420 : vector<14x64xf32>
    %422 = arith.addf %419, %421 : vector<14x64xf32>
    %cst_191 = arith.constant 2.500000e-01 : f32
    %423 = vector.broadcast %cst_191 : f32 to vector<14x64xf32>
    %424 = arith.mulf %320, %423 : vector<14x64xf32>
    %425 = arith.addf %422, %424 : vector<14x64xf32>
    %426 = arith.truncf %425 : vector<14x64xf32> to vector<14x64xbf16>
    %c0_192 = arith.constant 0 : index
    %c0_193 = arith.constant 0 : index
    %427 = vector.load %arg10[%c0_192, %c0_193] : memref<64x16xbf16, #tpu.memory_space<vmem>>, vector<64x16xbf16>
    %cst_194 = arith.constant dense<0.000000e+00> : vector<14x16xf32>
    %428 = tpu.matmul %426, %427, %cst_194 {dimension_numbers = #tpu.dot_dimension_numbers<[1], [0], [0], [1], [0, 0, 1, 1], [], []>} : vector<14x64xbf16>, vector<64x16xbf16>, vector<14x16xf32> -> vector<14x16xf32>
    %cst_195 = arith.constant 0.000000e+00 : f32
    %429 = vector.broadcast %cst_195 : f32 to vector<14x16xf32>
    %430 = arith.maximumf %428, %429 : vector<14x16xf32>
    %431 = vector.extract_strided_slice %430 {offsets = [0, 0], sizes = [12, 16], strides = [1, 1]} : vector<14x16xf32> to vector<12x16xf32>
    %432 = vector.extract_strided_slice %430 {offsets = [1, 0], sizes = [12, 16], strides = [1, 1]} : vector<14x16xf32> to vector<12x16xf32>
    %433 = vector.extract_strided_slice %430 {offsets = [2, 0], sizes = [12, 16], strides = [1, 1]} : vector<14x16xf32> to vector<12x16xf32>
    %434 = tpu.concatenate %431, %432, %433 in 1 : vector<12x16xf32>, vector<12x16xf32>, vector<12x16xf32> -> vector<12x48xf32>
    %435 = arith.truncf %434 : vector<12x48xf32> to vector<12x48xbf16>
    %c0_196 = arith.constant 0 : index
    %c0_197 = arith.constant 0 : index
    %436 = vector.load %arg11[%c0_196, %c0_197] : memref<48x64xbf16, #tpu.memory_space<vmem>>, vector<48x64xbf16>
    %cst_198 = arith.constant dense<0.000000e+00> : vector<12x64xf32>
    %437 = tpu.matmul %435, %436, %cst_198 {dimension_numbers = #tpu.dot_dimension_numbers<[1], [0], [0], [1], [0, 0, 1, 1], [], []>} : vector<12x48xbf16>, vector<48x64xbf16>, vector<12x64xf32> -> vector<12x64xf32>
    %c0_199 = arith.constant 0 : index
    %c0_200 = arith.constant 0 : index
    %438 = vector.load %arg12[%c0_199, %c0_200] : memref<1x64xf32, #tpu.memory_space<vmem>>, vector<1x64xf32>
    %439 = vector.broadcast %438 : vector<1x64xf32> to vector<12x64xf32>
    %440 = arith.addf %437, %439 : vector<12x64xf32>
    %c0_201 = arith.constant 0 : index
    %c0_202 = arith.constant 0 : index
    %441 = vector.load %arg13[%c0_201, %c0_202] : memref<48x64xbf16, #tpu.memory_space<vmem>>, vector<48x64xbf16>
    %cst_203 = arith.constant dense<0.000000e+00> : vector<12x64xf32>
    %442 = tpu.matmul %435, %441, %cst_203 {dimension_numbers = #tpu.dot_dimension_numbers<[1], [0], [0], [1], [0, 0, 1, 1], [], []>} : vector<12x48xbf16>, vector<48x64xbf16>, vector<12x64xf32> -> vector<12x64xf32>
    %c0_204 = arith.constant 0 : index
    %c0_205 = arith.constant 0 : index
    %443 = vector.load %arg14[%c0_204, %c0_205] : memref<1x64xf32, #tpu.memory_space<vmem>>, vector<1x64xf32>
    %444 = vector.broadcast %443 : vector<1x64xf32> to vector<12x64xf32>
    %445 = arith.addf %442, %444 : vector<12x64xf32>
    %446 = arith.negf %445 : vector<12x64xf32>
    %447 = math.exp %446 : vector<12x64xf32>
    %cst_206 = arith.constant 1.000000e+00 : f32
    %448 = vector.broadcast %cst_206 : f32 to vector<12x64xf32>
    %449 = arith.addf %448, %447 : vector<12x64xf32>
    %450 = arith.divf %448, %449 : vector<12x64xf32>
    %451 = arith.addf %440, %450 : vector<12x64xf32>
    %cst_207 = arith.constant 0.000000e+00 : f32
    %452 = vector.broadcast %cst_207 : f32 to vector<12x64xf32>
    %453 = arith.maximumf %451, %452 : vector<12x64xf32>
    %c2_208 = arith.constant 2 : index
    %c0_209 = arith.constant 0 : index
    %c0_210 = arith.constant 0 : index
    %454 = vector.load %arg15[%c2_208, %c0_209, %c0_210] : memref<4x1x64xf32, #tpu.memory_space<vmem>>, vector<1x1x64xf32>
    %455 = vector.shape_cast %454 : vector<1x1x64xf32> to vector<1x64xf32>
    %456 = vector.broadcast %455 : vector<1x64xf32> to vector<12x64xf32>
    %457 = arith.mulf %453, %456 : vector<12x64xf32>
    %c2_211 = arith.constant 2 : index
    %c0_212 = arith.constant 0 : index
    %c0_213 = arith.constant 0 : index
    %458 = vector.load %arg16[%c2_211, %c0_212, %c0_213] : memref<4x1x64xf32, #tpu.memory_space<vmem>>, vector<1x1x64xf32>
    %459 = vector.shape_cast %458 : vector<1x1x64xf32> to vector<1x64xf32>
    %460 = vector.broadcast %459 : vector<1x64xf32> to vector<12x64xf32>
    %461 = arith.addf %457, %460 : vector<12x64xf32>
    %cst_214 = arith.constant 2.500000e-01 : f32
    %462 = vector.broadcast %cst_214 : f32 to vector<14x64xf32>
    %463 = arith.mulf %251, %462 : vector<14x64xf32>
    %cst_215 = arith.constant 2.500000e-01 : f32
    %464 = vector.broadcast %cst_215 : f32 to vector<14x64xf32>
    %465 = arith.mulf %274, %464 : vector<14x64xf32>
    %466 = arith.addf %463, %465 : vector<14x64xf32>
    %cst_216 = arith.constant 2.500000e-01 : f32
    %467 = vector.broadcast %cst_216 : f32 to vector<14x64xf32>
    %468 = arith.mulf %297, %467 : vector<14x64xf32>
    %469 = arith.addf %466, %468 : vector<14x64xf32>
    %cst_217 = arith.constant 2.500000e-01 : f32
    %470 = vector.broadcast %cst_217 : f32 to vector<14x64xf32>
    %471 = arith.mulf %320, %470 : vector<14x64xf32>
    %472 = arith.addf %469, %471 : vector<14x64xf32>
    %473 = arith.truncf %472 : vector<14x64xf32> to vector<14x64xbf16>
    %c0_218 = arith.constant 0 : index
    %c0_219 = arith.constant 0 : index
    %474 = vector.load %arg10[%c0_218, %c0_219] : memref<64x16xbf16, #tpu.memory_space<vmem>>, vector<64x16xbf16>
    %cst_220 = arith.constant dense<0.000000e+00> : vector<14x16xf32>
    %475 = tpu.matmul %473, %474, %cst_220 {dimension_numbers = #tpu.dot_dimension_numbers<[1], [0], [0], [1], [0, 0, 1, 1], [], []>} : vector<14x64xbf16>, vector<64x16xbf16>, vector<14x16xf32> -> vector<14x16xf32>
    %cst_221 = arith.constant 0.000000e+00 : f32
    %476 = vector.broadcast %cst_221 : f32 to vector<14x16xf32>
    %477 = arith.maximumf %475, %476 : vector<14x16xf32>
    %478 = vector.extract_strided_slice %477 {offsets = [0, 0], sizes = [12, 16], strides = [1, 1]} : vector<14x16xf32> to vector<12x16xf32>
    %479 = vector.extract_strided_slice %477 {offsets = [1, 0], sizes = [12, 16], strides = [1, 1]} : vector<14x16xf32> to vector<12x16xf32>
    %480 = vector.extract_strided_slice %477 {offsets = [2, 0], sizes = [12, 16], strides = [1, 1]} : vector<14x16xf32> to vector<12x16xf32>
    %481 = tpu.concatenate %478, %479, %480 in 1 : vector<12x16xf32>, vector<12x16xf32>, vector<12x16xf32> -> vector<12x48xf32>
    %482 = arith.truncf %481 : vector<12x48xf32> to vector<12x48xbf16>
    %c0_222 = arith.constant 0 : index
    %c0_223 = arith.constant 0 : index
    %483 = vector.load %arg11[%c0_222, %c0_223] : memref<48x64xbf16, #tpu.memory_space<vmem>>, vector<48x64xbf16>
    %cst_224 = arith.constant dense<0.000000e+00> : vector<12x64xf32>
    %484 = tpu.matmul %482, %483, %cst_224 {dimension_numbers = #tpu.dot_dimension_numbers<[1], [0], [0], [1], [0, 0, 1, 1], [], []>} : vector<12x48xbf16>, vector<48x64xbf16>, vector<12x64xf32> -> vector<12x64xf32>
    %c0_225 = arith.constant 0 : index
    %c0_226 = arith.constant 0 : index
    %485 = vector.load %arg12[%c0_225, %c0_226] : memref<1x64xf32, #tpu.memory_space<vmem>>, vector<1x64xf32>
    %486 = vector.broadcast %485 : vector<1x64xf32> to vector<12x64xf32>
    %487 = arith.addf %484, %486 : vector<12x64xf32>
    %c0_227 = arith.constant 0 : index
    %c0_228 = arith.constant 0 : index
    %488 = vector.load %arg13[%c0_227, %c0_228] : memref<48x64xbf16, #tpu.memory_space<vmem>>, vector<48x64xbf16>
    %cst_229 = arith.constant dense<0.000000e+00> : vector<12x64xf32>
    %489 = tpu.matmul %482, %488, %cst_229 {dimension_numbers = #tpu.dot_dimension_numbers<[1], [0], [0], [1], [0, 0, 1, 1], [], []>} : vector<12x48xbf16>, vector<48x64xbf16>, vector<12x64xf32> -> vector<12x64xf32>
    %c0_230 = arith.constant 0 : index
    %c0_231 = arith.constant 0 : index
    %490 = vector.load %arg14[%c0_230, %c0_231] : memref<1x64xf32, #tpu.memory_space<vmem>>, vector<1x64xf32>
    %491 = vector.broadcast %490 : vector<1x64xf32> to vector<12x64xf32>
    %492 = arith.addf %489, %491 : vector<12x64xf32>
    %493 = arith.negf %492 : vector<12x64xf32>
    %494 = math.exp %493 : vector<12x64xf32>
    %cst_232 = arith.constant 1.000000e+00 : f32
    %495 = vector.broadcast %cst_232 : f32 to vector<12x64xf32>
    %496 = arith.addf %495, %494 : vector<12x64xf32>
    %497 = arith.divf %495, %496 : vector<12x64xf32>
    %498 = arith.addf %487, %497 : vector<12x64xf32>
    %cst_233 = arith.constant 0.000000e+00 : f32
    %499 = vector.broadcast %cst_233 : f32 to vector<12x64xf32>
    %500 = arith.maximumf %498, %499 : vector<12x64xf32>
    %c3_234 = arith.constant 3 : index
    %c0_235 = arith.constant 0 : index
    %c0_236 = arith.constant 0 : index
    %501 = vector.load %arg15[%c3_234, %c0_235, %c0_236] : memref<4x1x64xf32, #tpu.memory_space<vmem>>, vector<1x1x64xf32>
    %502 = vector.shape_cast %501 : vector<1x1x64xf32> to vector<1x64xf32>
    %503 = vector.broadcast %502 : vector<1x64xf32> to vector<12x64xf32>
    %504 = arith.mulf %500, %503 : vector<12x64xf32>
    %c3_237 = arith.constant 3 : index
    %c0_238 = arith.constant 0 : index
    %c0_239 = arith.constant 0 : index
    %505 = vector.load %arg16[%c3_237, %c0_238, %c0_239] : memref<4x1x64xf32, #tpu.memory_space<vmem>>, vector<1x1x64xf32>
    %506 = vector.shape_cast %505 : vector<1x1x64xf32> to vector<1x64xf32>
    %507 = vector.broadcast %506 : vector<1x64xf32> to vector<12x64xf32>
    %508 = arith.addf %504, %507 : vector<12x64xf32>
    %509 = vector.extract_strided_slice %367 {offsets = [0, 0], sizes = [10, 64], strides = [1, 1]} : vector<12x64xf32> to vector<10x64xf32>
    %510 = vector.extract_strided_slice %367 {offsets = [1, 0], sizes = [10, 64], strides = [1, 1]} : vector<12x64xf32> to vector<10x64xf32>
    %511 = vector.extract_strided_slice %367 {offsets = [2, 0], sizes = [10, 64], strides = [1, 1]} : vector<12x64xf32> to vector<10x64xf32>
    %512 = tpu.concatenate %509, %510, %511 in 1 : vector<10x64xf32>, vector<10x64xf32>, vector<10x64xf32> -> vector<10x192xf32>
    %513 = arith.truncf %512 : vector<10x192xf32> to vector<10x192xbf16>
    %c0_240 = arith.constant 0 : index
    %c0_241 = arith.constant 0 : index
    %514 = vector.load %arg17[%c0_240, %c0_241] : memref<192x64xbf16, #tpu.memory_space<vmem>>, vector<192x64xbf16>
    %cst_242 = arith.constant dense<0.000000e+00> : vector<10x64xf32>
    %515 = tpu.matmul %513, %514, %cst_242 {dimension_numbers = #tpu.dot_dimension_numbers<[1], [0], [0], [1], [0, 0, 1, 1], [], []>} : vector<10x192xbf16>, vector<192x64xbf16>, vector<10x64xf32> -> vector<10x64xf32>
    %c0_243 = arith.constant 0 : index
    %c0_244 = arith.constant 0 : index
    %516 = vector.load %arg18[%c0_243, %c0_244] : memref<1x64xf32, #tpu.memory_space<vmem>>, vector<1x64xf32>
    %517 = vector.broadcast %516 : vector<1x64xf32> to vector<10x64xf32>
    %518 = arith.addf %515, %517 : vector<10x64xf32>
    %c0_245 = arith.constant 0 : index
    %c0_246 = arith.constant 0 : index
    %519 = vector.load %arg19[%c0_245, %c0_246] : memref<192x64xbf16, #tpu.memory_space<vmem>>, vector<192x64xbf16>
    %cst_247 = arith.constant dense<0.000000e+00> : vector<10x64xf32>
    %520 = tpu.matmul %513, %519, %cst_247 {dimension_numbers = #tpu.dot_dimension_numbers<[1], [0], [0], [1], [0, 0, 1, 1], [], []>} : vector<10x192xbf16>, vector<192x64xbf16>, vector<10x64xf32> -> vector<10x64xf32>
    %c0_248 = arith.constant 0 : index
    %c0_249 = arith.constant 0 : index
    %521 = vector.load %arg20[%c0_248, %c0_249] : memref<1x64xf32, #tpu.memory_space<vmem>>, vector<1x64xf32>
    %522 = vector.broadcast %521 : vector<1x64xf32> to vector<10x64xf32>
    %523 = arith.addf %520, %522 : vector<10x64xf32>
    %524 = arith.negf %523 : vector<10x64xf32>
    %525 = math.exp %524 : vector<10x64xf32>
    %cst_250 = arith.constant 1.000000e+00 : f32
    %526 = vector.broadcast %cst_250 : f32 to vector<10x64xf32>
    %527 = arith.addf %526, %525 : vector<10x64xf32>
    %528 = arith.divf %526, %527 : vector<10x64xf32>
    %529 = arith.addf %518, %528 : vector<10x64xf32>
    %cst_251 = arith.constant 0.000000e+00 : f32
    %530 = vector.broadcast %cst_251 : f32 to vector<10x64xf32>
    %531 = arith.maximumf %529, %530 : vector<10x64xf32>
    %532 = vector.extract_strided_slice %414 {offsets = [0, 0], sizes = [10, 64], strides = [1, 1]} : vector<12x64xf32> to vector<10x64xf32>
    %533 = vector.extract_strided_slice %414 {offsets = [1, 0], sizes = [10, 64], strides = [1, 1]} : vector<12x64xf32> to vector<10x64xf32>
    %534 = vector.extract_strided_slice %414 {offsets = [2, 0], sizes = [10, 64], strides = [1, 1]} : vector<12x64xf32> to vector<10x64xf32>
    %535 = tpu.concatenate %532, %533, %534 in 1 : vector<10x64xf32>, vector<10x64xf32>, vector<10x64xf32> -> vector<10x192xf32>
    %536 = arith.truncf %535 : vector<10x192xf32> to vector<10x192xbf16>
    %c0_252 = arith.constant 0 : index
    %c0_253 = arith.constant 0 : index
    %537 = vector.load %arg17[%c0_252, %c0_253] : memref<192x64xbf16, #tpu.memory_space<vmem>>, vector<192x64xbf16>
    %cst_254 = arith.constant dense<0.000000e+00> : vector<10x64xf32>
    %538 = tpu.matmul %536, %537, %cst_254 {dimension_numbers = #tpu.dot_dimension_numbers<[1], [0], [0], [1], [0, 0, 1, 1], [], []>} : vector<10x192xbf16>, vector<192x64xbf16>, vector<10x64xf32> -> vector<10x64xf32>
    %c0_255 = arith.constant 0 : index
    %c0_256 = arith.constant 0 : index
    %539 = vector.load %arg18[%c0_255, %c0_256] : memref<1x64xf32, #tpu.memory_space<vmem>>, vector<1x64xf32>
    %540 = vector.broadcast %539 : vector<1x64xf32> to vector<10x64xf32>
    %541 = arith.addf %538, %540 : vector<10x64xf32>
    %c0_257 = arith.constant 0 : index
    %c0_258 = arith.constant 0 : index
    %542 = vector.load %arg19[%c0_257, %c0_258] : memref<192x64xbf16, #tpu.memory_space<vmem>>, vector<192x64xbf16>
    %cst_259 = arith.constant dense<0.000000e+00> : vector<10x64xf32>
    %543 = tpu.matmul %536, %542, %cst_259 {dimension_numbers = #tpu.dot_dimension_numbers<[1], [0], [0], [1], [0, 0, 1, 1], [], []>} : vector<10x192xbf16>, vector<192x64xbf16>, vector<10x64xf32> -> vector<10x64xf32>
    %c0_260 = arith.constant 0 : index
    %c0_261 = arith.constant 0 : index
    %544 = vector.load %arg20[%c0_260, %c0_261] : memref<1x64xf32, #tpu.memory_space<vmem>>, vector<1x64xf32>
    %545 = vector.broadcast %544 : vector<1x64xf32> to vector<10x64xf32>
    %546 = arith.addf %543, %545 : vector<10x64xf32>
    %547 = arith.negf %546 : vector<10x64xf32>
    %548 = math.exp %547 : vector<10x64xf32>
    %cst_262 = arith.constant 1.000000e+00 : f32
    %549 = vector.broadcast %cst_262 : f32 to vector<10x64xf32>
    %550 = arith.addf %549, %548 : vector<10x64xf32>
    %551 = arith.divf %549, %550 : vector<10x64xf32>
    %552 = arith.addf %541, %551 : vector<10x64xf32>
    %cst_263 = arith.constant 0.000000e+00 : f32
    %553 = vector.broadcast %cst_263 : f32 to vector<10x64xf32>
    %554 = arith.maximumf %552, %553 : vector<10x64xf32>
    %555 = vector.extract_strided_slice %461 {offsets = [0, 0], sizes = [10, 64], strides = [1, 1]} : vector<12x64xf32> to vector<10x64xf32>
    %556 = vector.extract_strided_slice %461 {offsets = [1, 0], sizes = [10, 64], strides = [1, 1]} : vector<12x64xf32> to vector<10x64xf32>
    %557 = vector.extract_strided_slice %461 {offsets = [2, 0], sizes = [10, 64], strides = [1, 1]} : vector<12x64xf32> to vector<10x64xf32>
    %558 = tpu.concatenate %555, %556, %557 in 1 : vector<10x64xf32>, vector<10x64xf32>, vector<10x64xf32> -> vector<10x192xf32>
    %559 = arith.truncf %558 : vector<10x192xf32> to vector<10x192xbf16>
    %c0_264 = arith.constant 0 : index
    %c0_265 = arith.constant 0 : index
    %560 = vector.load %arg17[%c0_264, %c0_265] : memref<192x64xbf16, #tpu.memory_space<vmem>>, vector<192x64xbf16>
    %cst_266 = arith.constant dense<0.000000e+00> : vector<10x64xf32>
    %561 = tpu.matmul %559, %560, %cst_266 {dimension_numbers = #tpu.dot_dimension_numbers<[1], [0], [0], [1], [0, 0, 1, 1], [], []>} : vector<10x192xbf16>, vector<192x64xbf16>, vector<10x64xf32> -> vector<10x64xf32>
    %c0_267 = arith.constant 0 : index
    %c0_268 = arith.constant 0 : index
    %562 = vector.load %arg18[%c0_267, %c0_268] : memref<1x64xf32, #tpu.memory_space<vmem>>, vector<1x64xf32>
    %563 = vector.broadcast %562 : vector<1x64xf32> to vector<10x64xf32>
    %564 = arith.addf %561, %563 : vector<10x64xf32>
    %c0_269 = arith.constant 0 : index
    %c0_270 = arith.constant 0 : index
    %565 = vector.load %arg19[%c0_269, %c0_270] : memref<192x64xbf16, #tpu.memory_space<vmem>>, vector<192x64xbf16>
    %cst_271 = arith.constant dense<0.000000e+00> : vector<10x64xf32>
    %566 = tpu.matmul %559, %565, %cst_271 {dimension_numbers = #tpu.dot_dimension_numbers<[1], [0], [0], [1], [0, 0, 1, 1], [], []>} : vector<10x192xbf16>, vector<192x64xbf16>, vector<10x64xf32> -> vector<10x64xf32>
    %c0_272 = arith.constant 0 : index
    %c0_273 = arith.constant 0 : index
    %567 = vector.load %arg20[%c0_272, %c0_273] : memref<1x64xf32, #tpu.memory_space<vmem>>, vector<1x64xf32>
    %568 = vector.broadcast %567 : vector<1x64xf32> to vector<10x64xf32>
    %569 = arith.addf %566, %568 : vector<10x64xf32>
    %570 = arith.negf %569 : vector<10x64xf32>
    %571 = math.exp %570 : vector<10x64xf32>
    %cst_274 = arith.constant 1.000000e+00 : f32
    %572 = vector.broadcast %cst_274 : f32 to vector<10x64xf32>
    %573 = arith.addf %572, %571 : vector<10x64xf32>
    %574 = arith.divf %572, %573 : vector<10x64xf32>
    %575 = arith.addf %564, %574 : vector<10x64xf32>
    %cst_275 = arith.constant 0.000000e+00 : f32
    %576 = vector.broadcast %cst_275 : f32 to vector<10x64xf32>
    %577 = arith.maximumf %575, %576 : vector<10x64xf32>
    %578 = vector.extract_strided_slice %508 {offsets = [0, 0], sizes = [10, 64], strides = [1, 1]} : vector<12x64xf32> to vector<10x64xf32>
    %579 = vector.extract_strided_slice %508 {offsets = [1, 0], sizes = [10, 64], strides = [1, 1]} : vector<12x64xf32> to vector<10x64xf32>
    %580 = vector.extract_strided_slice %508 {offsets = [2, 0], sizes = [10, 64], strides = [1, 1]} : vector<12x64xf32> to vector<10x64xf32>
    %581 = tpu.concatenate %578, %579, %580 in 1 : vector<10x64xf32>, vector<10x64xf32>, vector<10x64xf32> -> vector<10x192xf32>
    %582 = arith.truncf %581 : vector<10x192xf32> to vector<10x192xbf16>
    %c0_276 = arith.constant 0 : index
    %c0_277 = arith.constant 0 : index
    %583 = vector.load %arg17[%c0_276, %c0_277] : memref<192x64xbf16, #tpu.memory_space<vmem>>, vector<192x64xbf16>
    %cst_278 = arith.constant dense<0.000000e+00> : vector<10x64xf32>
    %584 = tpu.matmul %582, %583, %cst_278 {dimension_numbers = #tpu.dot_dimension_numbers<[1], [0], [0], [1], [0, 0, 1, 1], [], []>} : vector<10x192xbf16>, vector<192x64xbf16>, vector<10x64xf32> -> vector<10x64xf32>
    %c0_279 = arith.constant 0 : index
    %c0_280 = arith.constant 0 : index
    %585 = vector.load %arg18[%c0_279, %c0_280] : memref<1x64xf32, #tpu.memory_space<vmem>>, vector<1x64xf32>
    %586 = vector.broadcast %585 : vector<1x64xf32> to vector<10x64xf32>
    %587 = arith.addf %584, %586 : vector<10x64xf32>
    %c0_281 = arith.constant 0 : index
    %c0_282 = arith.constant 0 : index
    %588 = vector.load %arg19[%c0_281, %c0_282] : memref<192x64xbf16, #tpu.memory_space<vmem>>, vector<192x64xbf16>
    %cst_283 = arith.constant dense<0.000000e+00> : vector<10x64xf32>
    %589 = tpu.matmul %582, %588, %cst_283 {dimension_numbers = #tpu.dot_dimension_numbers<[1], [0], [0], [1], [0, 0, 1, 1], [], []>} : vector<10x192xbf16>, vector<192x64xbf16>, vector<10x64xf32> -> vector<10x64xf32>
    %c0_284 = arith.constant 0 : index
    %c0_285 = arith.constant 0 : index
    %590 = vector.load %arg20[%c0_284, %c0_285] : memref<1x64xf32, #tpu.memory_space<vmem>>, vector<1x64xf32>
    %591 = vector.broadcast %590 : vector<1x64xf32> to vector<10x64xf32>
    %592 = arith.addf %589, %591 : vector<10x64xf32>
    %593 = arith.negf %592 : vector<10x64xf32>
    %594 = math.exp %593 : vector<10x64xf32>
    %cst_286 = arith.constant 1.000000e+00 : f32
    %595 = vector.broadcast %cst_286 : f32 to vector<10x64xf32>
    %596 = arith.addf %595, %594 : vector<10x64xf32>
    %597 = arith.divf %595, %596 : vector<10x64xf32>
    %598 = arith.addf %587, %597 : vector<10x64xf32>
    %cst_287 = arith.constant 0.000000e+00 : f32
    %599 = vector.broadcast %cst_287 : f32 to vector<10x64xf32>
    %600 = arith.maximumf %598, %599 : vector<10x64xf32>
    %cst_288 = arith.constant 2.500000e-01 : f32
    %601 = vector.broadcast %cst_288 : f32 to vector<10x64xf32>
    %602 = arith.mulf %531, %601 : vector<10x64xf32>
    %cst_289 = arith.constant 2.500000e-01 : f32
    %603 = vector.broadcast %cst_289 : f32 to vector<10x64xf32>
    %604 = arith.mulf %554, %603 : vector<10x64xf32>
    %605 = arith.addf %602, %604 : vector<10x64xf32>
    %cst_290 = arith.constant 2.500000e-01 : f32
    %606 = vector.broadcast %cst_290 : f32 to vector<10x64xf32>
    %607 = arith.mulf %577, %606 : vector<10x64xf32>
    %608 = arith.addf %605, %607 : vector<10x64xf32>
    %cst_291 = arith.constant 2.500000e-01 : f32
    %609 = vector.broadcast %cst_291 : f32 to vector<10x64xf32>
    %610 = arith.mulf %600, %609 : vector<10x64xf32>
    %611 = arith.addf %608, %610 : vector<10x64xf32>
    %612 = arith.truncf %611 : vector<10x64xf32> to vector<10x64xbf16>
    %c0_292 = arith.constant 0 : index
    %c0_293 = arith.constant 0 : index
    %613 = vector.load %arg21[%c0_292, %c0_293] : memref<64x16xbf16, #tpu.memory_space<vmem>>, vector<64x16xbf16>
    %cst_294 = arith.constant dense<0.000000e+00> : vector<10x16xf32>
    %614 = tpu.matmul %612, %613, %cst_294 {dimension_numbers = #tpu.dot_dimension_numbers<[1], [0], [0], [1], [0, 0, 1, 1], [], []>} : vector<10x64xbf16>, vector<64x16xbf16>, vector<10x16xf32> -> vector<10x16xf32>
    %cst_295 = arith.constant 0.000000e+00 : f32
    %615 = vector.broadcast %cst_295 : f32 to vector<10x16xf32>
    %616 = arith.maximumf %614, %615 : vector<10x16xf32>
    %617 = vector.extract_strided_slice %616 {offsets = [0, 0], sizes = [8, 16], strides = [1, 1]} : vector<10x16xf32> to vector<8x16xf32>
    %618 = vector.extract_strided_slice %616 {offsets = [1, 0], sizes = [8, 16], strides = [1, 1]} : vector<10x16xf32> to vector<8x16xf32>
    %619 = vector.extract_strided_slice %616 {offsets = [2, 0], sizes = [8, 16], strides = [1, 1]} : vector<10x16xf32> to vector<8x16xf32>
    %620 = tpu.concatenate %617, %618, %619 in 1 : vector<8x16xf32>, vector<8x16xf32>, vector<8x16xf32> -> vector<8x48xf32>
    %621 = arith.truncf %620 : vector<8x48xf32> to vector<8x48xbf16>
    %c0_296 = arith.constant 0 : index
    %c0_297 = arith.constant 0 : index
    %622 = vector.load %arg22[%c0_296, %c0_297] : memref<48x64xbf16, #tpu.memory_space<vmem>>, vector<48x64xbf16>
    %cst_298 = arith.constant dense<0.000000e+00> : vector<8x64xf32>
    %623 = tpu.matmul %621, %622, %cst_298 {dimension_numbers = #tpu.dot_dimension_numbers<[1], [0], [0], [1], [0, 0, 1, 1], [], []>} : vector<8x48xbf16>, vector<48x64xbf16>, vector<8x64xf32> -> vector<8x64xf32>
    %c0_299 = arith.constant 0 : index
    %c0_300 = arith.constant 0 : index
    %624 = vector.load %arg23[%c0_299, %c0_300] : memref<1x64xf32, #tpu.memory_space<vmem>>, vector<1x64xf32>
    %625 = vector.broadcast %624 : vector<1x64xf32> to vector<8x64xf32>
    %626 = arith.addf %623, %625 : vector<8x64xf32>
    %c0_301 = arith.constant 0 : index
    %c0_302 = arith.constant 0 : index
    %627 = vector.load %arg24[%c0_301, %c0_302] : memref<48x64xbf16, #tpu.memory_space<vmem>>, vector<48x64xbf16>
    %cst_303 = arith.constant dense<0.000000e+00> : vector<8x64xf32>
    %628 = tpu.matmul %621, %627, %cst_303 {dimension_numbers = #tpu.dot_dimension_numbers<[1], [0], [0], [1], [0, 0, 1, 1], [], []>} : vector<8x48xbf16>, vector<48x64xbf16>, vector<8x64xf32> -> vector<8x64xf32>
    %c0_304 = arith.constant 0 : index
    %c0_305 = arith.constant 0 : index
    %629 = vector.load %arg25[%c0_304, %c0_305] : memref<1x64xf32, #tpu.memory_space<vmem>>, vector<1x64xf32>
    %630 = vector.broadcast %629 : vector<1x64xf32> to vector<8x64xf32>
    %631 = arith.addf %628, %630 : vector<8x64xf32>
    %632 = arith.negf %631 : vector<8x64xf32>
    %633 = math.exp %632 : vector<8x64xf32>
    %cst_306 = arith.constant 1.000000e+00 : f32
    %634 = vector.broadcast %cst_306 : f32 to vector<8x64xf32>
    %635 = arith.addf %634, %633 : vector<8x64xf32>
    %636 = arith.divf %634, %635 : vector<8x64xf32>
    %637 = arith.addf %626, %636 : vector<8x64xf32>
    %cst_307 = arith.constant 0.000000e+00 : f32
    %638 = vector.broadcast %cst_307 : f32 to vector<8x64xf32>
    %639 = arith.maximumf %637, %638 : vector<8x64xf32>
    %c0_308 = arith.constant 0 : index
    %c0_309 = arith.constant 0 : index
    %c0_310 = arith.constant 0 : index
    %640 = vector.load %arg26[%c0_308, %c0_309, %c0_310] : memref<4x1x64xf32, #tpu.memory_space<vmem>>, vector<1x1x64xf32>
    %641 = vector.shape_cast %640 : vector<1x1x64xf32> to vector<1x64xf32>
    %642 = vector.broadcast %641 : vector<1x64xf32> to vector<8x64xf32>
    %643 = arith.mulf %639, %642 : vector<8x64xf32>
    %c0_311 = arith.constant 0 : index
    %c0_312 = arith.constant 0 : index
    %c0_313 = arith.constant 0 : index
    %644 = vector.load %arg27[%c0_311, %c0_312, %c0_313] : memref<4x1x64xf32, #tpu.memory_space<vmem>>, vector<1x1x64xf32>
    %645 = vector.shape_cast %644 : vector<1x1x64xf32> to vector<1x64xf32>
    %646 = vector.broadcast %645 : vector<1x64xf32> to vector<8x64xf32>
    %647 = arith.addf %643, %646 : vector<8x64xf32>
    %cst_314 = arith.constant 2.500000e-01 : f32
    %648 = vector.broadcast %cst_314 : f32 to vector<10x64xf32>
    %649 = arith.mulf %531, %648 : vector<10x64xf32>
    %cst_315 = arith.constant 2.500000e-01 : f32
    %650 = vector.broadcast %cst_315 : f32 to vector<10x64xf32>
    %651 = arith.mulf %554, %650 : vector<10x64xf32>
    %652 = arith.addf %649, %651 : vector<10x64xf32>
    %cst_316 = arith.constant 2.500000e-01 : f32
    %653 = vector.broadcast %cst_316 : f32 to vector<10x64xf32>
    %654 = arith.mulf %577, %653 : vector<10x64xf32>
    %655 = arith.addf %652, %654 : vector<10x64xf32>
    %cst_317 = arith.constant 2.500000e-01 : f32
    %656 = vector.broadcast %cst_317 : f32 to vector<10x64xf32>
    %657 = arith.mulf %600, %656 : vector<10x64xf32>
    %658 = arith.addf %655, %657 : vector<10x64xf32>
    %659 = arith.truncf %658 : vector<10x64xf32> to vector<10x64xbf16>
    %c0_318 = arith.constant 0 : index
    %c0_319 = arith.constant 0 : index
    %660 = vector.load %arg21[%c0_318, %c0_319] : memref<64x16xbf16, #tpu.memory_space<vmem>>, vector<64x16xbf16>
    %cst_320 = arith.constant dense<0.000000e+00> : vector<10x16xf32>
    %661 = tpu.matmul %659, %660, %cst_320 {dimension_numbers = #tpu.dot_dimension_numbers<[1], [0], [0], [1], [0, 0, 1, 1], [], []>} : vector<10x64xbf16>, vector<64x16xbf16>, vector<10x16xf32> -> vector<10x16xf32>
    %cst_321 = arith.constant 0.000000e+00 : f32
    %662 = vector.broadcast %cst_321 : f32 to vector<10x16xf32>
    %663 = arith.maximumf %661, %662 : vector<10x16xf32>
    %664 = vector.extract_strided_slice %663 {offsets = [0, 0], sizes = [8, 16], strides = [1, 1]} : vector<10x16xf32> to vector<8x16xf32>
    %665 = vector.extract_strided_slice %663 {offsets = [1, 0], sizes = [8, 16], strides = [1, 1]} : vector<10x16xf32> to vector<8x16xf32>
    %666 = vector.extract_strided_slice %663 {offsets = [2, 0], sizes = [8, 16], strides = [1, 1]} : vector<10x16xf32> to vector<8x16xf32>
    %667 = tpu.concatenate %664, %665, %666 in 1 : vector<8x16xf32>, vector<8x16xf32>, vector<8x16xf32> -> vector<8x48xf32>
    %668 = arith.truncf %667 : vector<8x48xf32> to vector<8x48xbf16>
    %c0_322 = arith.constant 0 : index
    %c0_323 = arith.constant 0 : index
    %669 = vector.load %arg22[%c0_322, %c0_323] : memref<48x64xbf16, #tpu.memory_space<vmem>>, vector<48x64xbf16>
    %cst_324 = arith.constant dense<0.000000e+00> : vector<8x64xf32>
    %670 = tpu.matmul %668, %669, %cst_324 {dimension_numbers = #tpu.dot_dimension_numbers<[1], [0], [0], [1], [0, 0, 1, 1], [], []>} : vector<8x48xbf16>, vector<48x64xbf16>, vector<8x64xf32> -> vector<8x64xf32>
    %c0_325 = arith.constant 0 : index
    %c0_326 = arith.constant 0 : index
    %671 = vector.load %arg23[%c0_325, %c0_326] : memref<1x64xf32, #tpu.memory_space<vmem>>, vector<1x64xf32>
    %672 = vector.broadcast %671 : vector<1x64xf32> to vector<8x64xf32>
    %673 = arith.addf %670, %672 : vector<8x64xf32>
    %c0_327 = arith.constant 0 : index
    %c0_328 = arith.constant 0 : index
    %674 = vector.load %arg24[%c0_327, %c0_328] : memref<48x64xbf16, #tpu.memory_space<vmem>>, vector<48x64xbf16>
    %cst_329 = arith.constant dense<0.000000e+00> : vector<8x64xf32>
    %675 = tpu.matmul %668, %674, %cst_329 {dimension_numbers = #tpu.dot_dimension_numbers<[1], [0], [0], [1], [0, 0, 1, 1], [], []>} : vector<8x48xbf16>, vector<48x64xbf16>, vector<8x64xf32> -> vector<8x64xf32>
    %c0_330 = arith.constant 0 : index
    %c0_331 = arith.constant 0 : index
    %676 = vector.load %arg25[%c0_330, %c0_331] : memref<1x64xf32, #tpu.memory_space<vmem>>, vector<1x64xf32>
    %677 = vector.broadcast %676 : vector<1x64xf32> to vector<8x64xf32>
    %678 = arith.addf %675, %677 : vector<8x64xf32>
    %679 = arith.negf %678 : vector<8x64xf32>
    %680 = math.exp %679 : vector<8x64xf32>
    %cst_332 = arith.constant 1.000000e+00 : f32
    %681 = vector.broadcast %cst_332 : f32 to vector<8x64xf32>
    %682 = arith.addf %681, %680 : vector<8x64xf32>
    %683 = arith.divf %681, %682 : vector<8x64xf32>
    %684 = arith.addf %673, %683 : vector<8x64xf32>
    %cst_333 = arith.constant 0.000000e+00 : f32
    %685 = vector.broadcast %cst_333 : f32 to vector<8x64xf32>
    %686 = arith.maximumf %684, %685 : vector<8x64xf32>
    %c1_334 = arith.constant 1 : index
    %c0_335 = arith.constant 0 : index
    %c0_336 = arith.constant 0 : index
    %687 = vector.load %arg26[%c1_334, %c0_335, %c0_336] : memref<4x1x64xf32, #tpu.memory_space<vmem>>, vector<1x1x64xf32>
    %688 = vector.shape_cast %687 : vector<1x1x64xf32> to vector<1x64xf32>
    %689 = vector.broadcast %688 : vector<1x64xf32> to vector<8x64xf32>
    %690 = arith.mulf %686, %689 : vector<8x64xf32>
    %c1_337 = arith.constant 1 : index
    %c0_338 = arith.constant 0 : index
    %c0_339 = arith.constant 0 : index
    %691 = vector.load %arg27[%c1_337, %c0_338, %c0_339] : memref<4x1x64xf32, #tpu.memory_space<vmem>>, vector<1x1x64xf32>
    %692 = vector.shape_cast %691 : vector<1x1x64xf32> to vector<1x64xf32>
    %693 = vector.broadcast %692 : vector<1x64xf32> to vector<8x64xf32>
    %694 = arith.addf %690, %693 : vector<8x64xf32>
    %cst_340 = arith.constant 2.500000e-01 : f32
    %695 = vector.broadcast %cst_340 : f32 to vector<10x64xf32>
    %696 = arith.mulf %531, %695 : vector<10x64xf32>
    %cst_341 = arith.constant 2.500000e-01 : f32
    %697 = vector.broadcast %cst_341 : f32 to vector<10x64xf32>
    %698 = arith.mulf %554, %697 : vector<10x64xf32>
    %699 = arith.addf %696, %698 : vector<10x64xf32>
    %cst_342 = arith.constant 2.500000e-01 : f32
    %700 = vector.broadcast %cst_342 : f32 to vector<10x64xf32>
    %701 = arith.mulf %577, %700 : vector<10x64xf32>
    %702 = arith.addf %699, %701 : vector<10x64xf32>
    %cst_343 = arith.constant 2.500000e-01 : f32
    %703 = vector.broadcast %cst_343 : f32 to vector<10x64xf32>
    %704 = arith.mulf %600, %703 : vector<10x64xf32>
    %705 = arith.addf %702, %704 : vector<10x64xf32>
    %706 = arith.truncf %705 : vector<10x64xf32> to vector<10x64xbf16>
    %c0_344 = arith.constant 0 : index
    %c0_345 = arith.constant 0 : index
    %707 = vector.load %arg21[%c0_344, %c0_345] : memref<64x16xbf16, #tpu.memory_space<vmem>>, vector<64x16xbf16>
    %cst_346 = arith.constant dense<0.000000e+00> : vector<10x16xf32>
    %708 = tpu.matmul %706, %707, %cst_346 {dimension_numbers = #tpu.dot_dimension_numbers<[1], [0], [0], [1], [0, 0, 1, 1], [], []>} : vector<10x64xbf16>, vector<64x16xbf16>, vector<10x16xf32> -> vector<10x16xf32>
    %cst_347 = arith.constant 0.000000e+00 : f32
    %709 = vector.broadcast %cst_347 : f32 to vector<10x16xf32>
    %710 = arith.maximumf %708, %709 : vector<10x16xf32>
    %711 = vector.extract_strided_slice %710 {offsets = [0, 0], sizes = [8, 16], strides = [1, 1]} : vector<10x16xf32> to vector<8x16xf32>
    %712 = vector.extract_strided_slice %710 {offsets = [1, 0], sizes = [8, 16], strides = [1, 1]} : vector<10x16xf32> to vector<8x16xf32>
    %713 = vector.extract_strided_slice %710 {offsets = [2, 0], sizes = [8, 16], strides = [1, 1]} : vector<10x16xf32> to vector<8x16xf32>
    %714 = tpu.concatenate %711, %712, %713 in 1 : vector<8x16xf32>, vector<8x16xf32>, vector<8x16xf32> -> vector<8x48xf32>
    %715 = arith.truncf %714 : vector<8x48xf32> to vector<8x48xbf16>
    %c0_348 = arith.constant 0 : index
    %c0_349 = arith.constant 0 : index
    %716 = vector.load %arg22[%c0_348, %c0_349] : memref<48x64xbf16, #tpu.memory_space<vmem>>, vector<48x64xbf16>
    %cst_350 = arith.constant dense<0.000000e+00> : vector<8x64xf32>
    %717 = tpu.matmul %715, %716, %cst_350 {dimension_numbers = #tpu.dot_dimension_numbers<[1], [0], [0], [1], [0, 0, 1, 1], [], []>} : vector<8x48xbf16>, vector<48x64xbf16>, vector<8x64xf32> -> vector<8x64xf32>
    %c0_351 = arith.constant 0 : index
    %c0_352 = arith.constant 0 : index
    %718 = vector.load %arg23[%c0_351, %c0_352] : memref<1x64xf32, #tpu.memory_space<vmem>>, vector<1x64xf32>
    %719 = vector.broadcast %718 : vector<1x64xf32> to vector<8x64xf32>
    %720 = arith.addf %717, %719 : vector<8x64xf32>
    %c0_353 = arith.constant 0 : index
    %c0_354 = arith.constant 0 : index
    %721 = vector.load %arg24[%c0_353, %c0_354] : memref<48x64xbf16, #tpu.memory_space<vmem>>, vector<48x64xbf16>
    %cst_355 = arith.constant dense<0.000000e+00> : vector<8x64xf32>
    %722 = tpu.matmul %715, %721, %cst_355 {dimension_numbers = #tpu.dot_dimension_numbers<[1], [0], [0], [1], [0, 0, 1, 1], [], []>} : vector<8x48xbf16>, vector<48x64xbf16>, vector<8x64xf32> -> vector<8x64xf32>
    %c0_356 = arith.constant 0 : index
    %c0_357 = arith.constant 0 : index
    %723 = vector.load %arg25[%c0_356, %c0_357] : memref<1x64xf32, #tpu.memory_space<vmem>>, vector<1x64xf32>
    %724 = vector.broadcast %723 : vector<1x64xf32> to vector<8x64xf32>
    %725 = arith.addf %722, %724 : vector<8x64xf32>
    %726 = arith.negf %725 : vector<8x64xf32>
    %727 = math.exp %726 : vector<8x64xf32>
    %cst_358 = arith.constant 1.000000e+00 : f32
    %728 = vector.broadcast %cst_358 : f32 to vector<8x64xf32>
    %729 = arith.addf %728, %727 : vector<8x64xf32>
    %730 = arith.divf %728, %729 : vector<8x64xf32>
    %731 = arith.addf %720, %730 : vector<8x64xf32>
    %cst_359 = arith.constant 0.000000e+00 : f32
    %732 = vector.broadcast %cst_359 : f32 to vector<8x64xf32>
    %733 = arith.maximumf %731, %732 : vector<8x64xf32>
    %c2_360 = arith.constant 2 : index
    %c0_361 = arith.constant 0 : index
    %c0_362 = arith.constant 0 : index
    %734 = vector.load %arg26[%c2_360, %c0_361, %c0_362] : memref<4x1x64xf32, #tpu.memory_space<vmem>>, vector<1x1x64xf32>
    %735 = vector.shape_cast %734 : vector<1x1x64xf32> to vector<1x64xf32>
    %736 = vector.broadcast %735 : vector<1x64xf32> to vector<8x64xf32>
    %737 = arith.mulf %733, %736 : vector<8x64xf32>
    %c2_363 = arith.constant 2 : index
    %c0_364 = arith.constant 0 : index
    %c0_365 = arith.constant 0 : index
    %738 = vector.load %arg27[%c2_363, %c0_364, %c0_365] : memref<4x1x64xf32, #tpu.memory_space<vmem>>, vector<1x1x64xf32>
    %739 = vector.shape_cast %738 : vector<1x1x64xf32> to vector<1x64xf32>
    %740 = vector.broadcast %739 : vector<1x64xf32> to vector<8x64xf32>
    %741 = arith.addf %737, %740 : vector<8x64xf32>
    %cst_366 = arith.constant 2.500000e-01 : f32
    %742 = vector.broadcast %cst_366 : f32 to vector<10x64xf32>
    %743 = arith.mulf %531, %742 : vector<10x64xf32>
    %cst_367 = arith.constant 2.500000e-01 : f32
    %744 = vector.broadcast %cst_367 : f32 to vector<10x64xf32>
    %745 = arith.mulf %554, %744 : vector<10x64xf32>
    %746 = arith.addf %743, %745 : vector<10x64xf32>
    %cst_368 = arith.constant 2.500000e-01 : f32
    %747 = vector.broadcast %cst_368 : f32 to vector<10x64xf32>
    %748 = arith.mulf %577, %747 : vector<10x64xf32>
    %749 = arith.addf %746, %748 : vector<10x64xf32>
    %cst_369 = arith.constant 2.500000e-01 : f32
    %750 = vector.broadcast %cst_369 : f32 to vector<10x64xf32>
    %751 = arith.mulf %600, %750 : vector<10x64xf32>
    %752 = arith.addf %749, %751 : vector<10x64xf32>
    %753 = arith.truncf %752 : vector<10x64xf32> to vector<10x64xbf16>
    %c0_370 = arith.constant 0 : index
    %c0_371 = arith.constant 0 : index
    %754 = vector.load %arg21[%c0_370, %c0_371] : memref<64x16xbf16, #tpu.memory_space<vmem>>, vector<64x16xbf16>
    %cst_372 = arith.constant dense<0.000000e+00> : vector<10x16xf32>
    %755 = tpu.matmul %753, %754, %cst_372 {dimension_numbers = #tpu.dot_dimension_numbers<[1], [0], [0], [1], [0, 0, 1, 1], [], []>} : vector<10x64xbf16>, vector<64x16xbf16>, vector<10x16xf32> -> vector<10x16xf32>
    %cst_373 = arith.constant 0.000000e+00 : f32
    %756 = vector.broadcast %cst_373 : f32 to vector<10x16xf32>
    %757 = arith.maximumf %755, %756 : vector<10x16xf32>
    %758 = vector.extract_strided_slice %757 {offsets = [0, 0], sizes = [8, 16], strides = [1, 1]} : vector<10x16xf32> to vector<8x16xf32>
    %759 = vector.extract_strided_slice %757 {offsets = [1, 0], sizes = [8, 16], strides = [1, 1]} : vector<10x16xf32> to vector<8x16xf32>
    %760 = vector.extract_strided_slice %757 {offsets = [2, 0], sizes = [8, 16], strides = [1, 1]} : vector<10x16xf32> to vector<8x16xf32>
    %761 = tpu.concatenate %758, %759, %760 in 1 : vector<8x16xf32>, vector<8x16xf32>, vector<8x16xf32> -> vector<8x48xf32>
    %762 = arith.truncf %761 : vector<8x48xf32> to vector<8x48xbf16>
    %c0_374 = arith.constant 0 : index
    %c0_375 = arith.constant 0 : index
    %763 = vector.load %arg22[%c0_374, %c0_375] : memref<48x64xbf16, #tpu.memory_space<vmem>>, vector<48x64xbf16>
    %cst_376 = arith.constant dense<0.000000e+00> : vector<8x64xf32>
    %764 = tpu.matmul %762, %763, %cst_376 {dimension_numbers = #tpu.dot_dimension_numbers<[1], [0], [0], [1], [0, 0, 1, 1], [], []>} : vector<8x48xbf16>, vector<48x64xbf16>, vector<8x64xf32> -> vector<8x64xf32>
    %c0_377 = arith.constant 0 : index
    %c0_378 = arith.constant 0 : index
    %765 = vector.load %arg23[%c0_377, %c0_378] : memref<1x64xf32, #tpu.memory_space<vmem>>, vector<1x64xf32>
    %766 = vector.broadcast %765 : vector<1x64xf32> to vector<8x64xf32>
    %767 = arith.addf %764, %766 : vector<8x64xf32>
    %c0_379 = arith.constant 0 : index
    %c0_380 = arith.constant 0 : index
    %768 = vector.load %arg24[%c0_379, %c0_380] : memref<48x64xbf16, #tpu.memory_space<vmem>>, vector<48x64xbf16>
    %cst_381 = arith.constant dense<0.000000e+00> : vector<8x64xf32>
    %769 = tpu.matmul %762, %768, %cst_381 {dimension_numbers = #tpu.dot_dimension_numbers<[1], [0], [0], [1], [0, 0, 1, 1], [], []>} : vector<8x48xbf16>, vector<48x64xbf16>, vector<8x64xf32> -> vector<8x64xf32>
    %c0_382 = arith.constant 0 : index
    %c0_383 = arith.constant 0 : index
    %770 = vector.load %arg25[%c0_382, %c0_383] : memref<1x64xf32, #tpu.memory_space<vmem>>, vector<1x64xf32>
    %771 = vector.broadcast %770 : vector<1x64xf32> to vector<8x64xf32>
    %772 = arith.addf %769, %771 : vector<8x64xf32>
    %773 = arith.negf %772 : vector<8x64xf32>
    %774 = math.exp %773 : vector<8x64xf32>
    %cst_384 = arith.constant 1.000000e+00 : f32
    %775 = vector.broadcast %cst_384 : f32 to vector<8x64xf32>
    %776 = arith.addf %775, %774 : vector<8x64xf32>
    %777 = arith.divf %775, %776 : vector<8x64xf32>
    %778 = arith.addf %767, %777 : vector<8x64xf32>
    %cst_385 = arith.constant 0.000000e+00 : f32
    %779 = vector.broadcast %cst_385 : f32 to vector<8x64xf32>
    %780 = arith.maximumf %778, %779 : vector<8x64xf32>
    %c3_386 = arith.constant 3 : index
    %c0_387 = arith.constant 0 : index
    %c0_388 = arith.constant 0 : index
    %781 = vector.load %arg26[%c3_386, %c0_387, %c0_388] : memref<4x1x64xf32, #tpu.memory_space<vmem>>, vector<1x1x64xf32>
    %782 = vector.shape_cast %781 : vector<1x1x64xf32> to vector<1x64xf32>
    %783 = vector.broadcast %782 : vector<1x64xf32> to vector<8x64xf32>
    %784 = arith.mulf %780, %783 : vector<8x64xf32>
    %c3_389 = arith.constant 3 : index
    %c0_390 = arith.constant 0 : index
    %c0_391 = arith.constant 0 : index
    %785 = vector.load %arg27[%c3_389, %c0_390, %c0_391] : memref<4x1x64xf32, #tpu.memory_space<vmem>>, vector<1x1x64xf32>
    %786 = vector.shape_cast %785 : vector<1x1x64xf32> to vector<1x64xf32>
    %787 = vector.broadcast %786 : vector<1x64xf32> to vector<8x64xf32>
    %788 = arith.addf %784, %787 : vector<8x64xf32>
    %789 = vector.extract_strided_slice %647 {offsets = [0, 0], sizes = [6, 64], strides = [1, 1]} : vector<8x64xf32> to vector<6x64xf32>
    %790 = vector.extract_strided_slice %647 {offsets = [1, 0], sizes = [6, 64], strides = [1, 1]} : vector<8x64xf32> to vector<6x64xf32>
    %791 = vector.extract_strided_slice %647 {offsets = [2, 0], sizes = [6, 64], strides = [1, 1]} : vector<8x64xf32> to vector<6x64xf32>
    %792 = tpu.concatenate %789, %790, %791 in 1 : vector<6x64xf32>, vector<6x64xf32>, vector<6x64xf32> -> vector<6x192xf32>
    %793 = arith.truncf %792 : vector<6x192xf32> to vector<6x192xbf16>
    %c0_392 = arith.constant 0 : index
    %c0_393 = arith.constant 0 : index
    %794 = vector.load %arg28[%c0_392, %c0_393] : memref<192x64xbf16, #tpu.memory_space<vmem>>, vector<192x64xbf16>
    %cst_394 = arith.constant dense<0.000000e+00> : vector<6x64xf32>
    %795 = tpu.matmul %793, %794, %cst_394 {dimension_numbers = #tpu.dot_dimension_numbers<[1], [0], [0], [1], [0, 0, 1, 1], [], []>} : vector<6x192xbf16>, vector<192x64xbf16>, vector<6x64xf32> -> vector<6x64xf32>
    %c0_395 = arith.constant 0 : index
    %c0_396 = arith.constant 0 : index
    %796 = vector.load %arg29[%c0_395, %c0_396] : memref<1x64xf32, #tpu.memory_space<vmem>>, vector<1x64xf32>
    %797 = vector.broadcast %796 : vector<1x64xf32> to vector<6x64xf32>
    %798 = arith.addf %795, %797 : vector<6x64xf32>
    %c0_397 = arith.constant 0 : index
    %c0_398 = arith.constant 0 : index
    %799 = vector.load %arg30[%c0_397, %c0_398] : memref<192x64xbf16, #tpu.memory_space<vmem>>, vector<192x64xbf16>
    %cst_399 = arith.constant dense<0.000000e+00> : vector<6x64xf32>
    %800 = tpu.matmul %793, %799, %cst_399 {dimension_numbers = #tpu.dot_dimension_numbers<[1], [0], [0], [1], [0, 0, 1, 1], [], []>} : vector<6x192xbf16>, vector<192x64xbf16>, vector<6x64xf32> -> vector<6x64xf32>
    %c0_400 = arith.constant 0 : index
    %c0_401 = arith.constant 0 : index
    %801 = vector.load %arg31[%c0_400, %c0_401] : memref<1x64xf32, #tpu.memory_space<vmem>>, vector<1x64xf32>
    %802 = vector.broadcast %801 : vector<1x64xf32> to vector<6x64xf32>
    %803 = arith.addf %800, %802 : vector<6x64xf32>
    %804 = arith.negf %803 : vector<6x64xf32>
    %805 = math.exp %804 : vector<6x64xf32>
    %cst_402 = arith.constant 1.000000e+00 : f32
    %806 = vector.broadcast %cst_402 : f32 to vector<6x64xf32>
    %807 = arith.addf %806, %805 : vector<6x64xf32>
    %808 = arith.divf %806, %807 : vector<6x64xf32>
    %809 = arith.addf %798, %808 : vector<6x64xf32>
    %cst_403 = arith.constant 0.000000e+00 : f32
    %810 = vector.broadcast %cst_403 : f32 to vector<6x64xf32>
    %811 = arith.maximumf %809, %810 : vector<6x64xf32>
    %c0_404 = arith.constant 0 : index
    %c0_405 = arith.constant 0 : index
    %c0_406 = arith.constant 0 : index
    %c0_407 = arith.constant 0 : index
    %812 = vector.load %arg32[%c0_404, %c0_405, %c0_406, %c0_407] : memref<1x4x6x64xf32, #tpu.memory_space<vmem>>, vector<1x1x6x64xf32>
    %813 = vector.shape_cast %812 : vector<1x1x6x64xf32> to vector<6x64xf32>
    %814 = vector.shape_cast %811 : vector<6x64xf32> to vector<1x1x6x64xf32>
    tpu.vector_store %arg32[%c0_404, %c0_405, %c0_406, %c0_407], %814 {strides = array<i32>} : memref<1x4x6x64xf32, #tpu.memory_space<vmem>>, vector<1x1x6x64xf32>,
    %815 = vector.extract_strided_slice %694 {offsets = [0, 0], sizes = [6, 64], strides = [1, 1]} : vector<8x64xf32> to vector<6x64xf32>
    %816 = vector.extract_strided_slice %694 {offsets = [1, 0], sizes = [6, 64], strides = [1, 1]} : vector<8x64xf32> to vector<6x64xf32>
    %817 = vector.extract_strided_slice %694 {offsets = [2, 0], sizes = [6, 64], strides = [1, 1]} : vector<8x64xf32> to vector<6x64xf32>
    %818 = tpu.concatenate %815, %816, %817 in 1 : vector<6x64xf32>, vector<6x64xf32>, vector<6x64xf32> -> vector<6x192xf32>
    %819 = arith.truncf %818 : vector<6x192xf32> to vector<6x192xbf16>
    %c0_408 = arith.constant 0 : index
    %c0_409 = arith.constant 0 : index
    %820 = vector.load %arg28[%c0_408, %c0_409] : memref<192x64xbf16, #tpu.memory_space<vmem>>, vector<192x64xbf16>
    %cst_410 = arith.constant dense<0.000000e+00> : vector<6x64xf32>
    %821 = tpu.matmul %819, %820, %cst_410 {dimension_numbers = #tpu.dot_dimension_numbers<[1], [0], [0], [1], [0, 0, 1, 1], [], []>} : vector<6x192xbf16>, vector<192x64xbf16>, vector<6x64xf32> -> vector<6x64xf32>
    %c0_411 = arith.constant 0 : index
    %c0_412 = arith.constant 0 : index
    %822 = vector.load %arg29[%c0_411, %c0_412] : memref<1x64xf32, #tpu.memory_space<vmem>>, vector<1x64xf32>
    %823 = vector.broadcast %822 : vector<1x64xf32> to vector<6x64xf32>
    %824 = arith.addf %821, %823 : vector<6x64xf32>
    %c0_413 = arith.constant 0 : index
    %c0_414 = arith.constant 0 : index
    %825 = vector.load %arg30[%c0_413, %c0_414] : memref<192x64xbf16, #tpu.memory_space<vmem>>, vector<192x64xbf16>
    %cst_415 = arith.constant dense<0.000000e+00> : vector<6x64xf32>
    %826 = tpu.matmul %819, %825, %cst_415 {dimension_numbers = #tpu.dot_dimension_numbers<[1], [0], [0], [1], [0, 0, 1, 1], [], []>} : vector<6x192xbf16>, vector<192x64xbf16>, vector<6x64xf32> -> vector<6x64xf32>
    %c0_416 = arith.constant 0 : index
    %c0_417 = arith.constant 0 : index
    %827 = vector.load %arg31[%c0_416, %c0_417] : memref<1x64xf32, #tpu.memory_space<vmem>>, vector<1x64xf32>
    %828 = vector.broadcast %827 : vector<1x64xf32> to vector<6x64xf32>
    %829 = arith.addf %826, %828 : vector<6x64xf32>
    %830 = arith.negf %829 : vector<6x64xf32>
    %831 = math.exp %830 : vector<6x64xf32>
    %cst_418 = arith.constant 1.000000e+00 : f32
    %832 = vector.broadcast %cst_418 : f32 to vector<6x64xf32>
    %833 = arith.addf %832, %831 : vector<6x64xf32>
    %834 = arith.divf %832, %833 : vector<6x64xf32>
    %835 = arith.addf %824, %834 : vector<6x64xf32>
    %cst_419 = arith.constant 0.000000e+00 : f32
    %836 = vector.broadcast %cst_419 : f32 to vector<6x64xf32>
    %837 = arith.maximumf %835, %836 : vector<6x64xf32>
    %c0_420 = arith.constant 0 : index
    %c1_421 = arith.constant 1 : index
    %c0_422 = arith.constant 0 : index
    %c0_423 = arith.constant 0 : index
    %838 = vector.load %arg32[%c0_420, %c1_421, %c0_422, %c0_423] : memref<1x4x6x64xf32, #tpu.memory_space<vmem>>, vector<1x1x6x64xf32>
    %839 = vector.shape_cast %838 : vector<1x1x6x64xf32> to vector<6x64xf32>
    %840 = vector.shape_cast %837 : vector<6x64xf32> to vector<1x1x6x64xf32>
    tpu.vector_store %arg32[%c0_420, %c1_421, %c0_422, %c0_423], %840 {strides = array<i32>} : memref<1x4x6x64xf32, #tpu.memory_space<vmem>>, vector<1x1x6x64xf32>,
    %841 = vector.extract_strided_slice %741 {offsets = [0, 0], sizes = [6, 64], strides = [1, 1]} : vector<8x64xf32> to vector<6x64xf32>
    %842 = vector.extract_strided_slice %741 {offsets = [1, 0], sizes = [6, 64], strides = [1, 1]} : vector<8x64xf32> to vector<6x64xf32>
    %843 = vector.extract_strided_slice %741 {offsets = [2, 0], sizes = [6, 64], strides = [1, 1]} : vector<8x64xf32> to vector<6x64xf32>
    %844 = tpu.concatenate %841, %842, %843 in 1 : vector<6x64xf32>, vector<6x64xf32>, vector<6x64xf32> -> vector<6x192xf32>
    %845 = arith.truncf %844 : vector<6x192xf32> to vector<6x192xbf16>
    %c0_424 = arith.constant 0 : index
    %c0_425 = arith.constant 0 : index
    %846 = vector.load %arg28[%c0_424, %c0_425] : memref<192x64xbf16, #tpu.memory_space<vmem>>, vector<192x64xbf16>
    %cst_426 = arith.constant dense<0.000000e+00> : vector<6x64xf32>
    %847 = tpu.matmul %845, %846, %cst_426 {dimension_numbers = #tpu.dot_dimension_numbers<[1], [0], [0], [1], [0, 0, 1, 1], [], []>} : vector<6x192xbf16>, vector<192x64xbf16>, vector<6x64xf32> -> vector<6x64xf32>
    %c0_427 = arith.constant 0 : index
    %c0_428 = arith.constant 0 : index
    %848 = vector.load %arg29[%c0_427, %c0_428] : memref<1x64xf32, #tpu.memory_space<vmem>>, vector<1x64xf32>
    %849 = vector.broadcast %848 : vector<1x64xf32> to vector<6x64xf32>
    %850 = arith.addf %847, %849 : vector<6x64xf32>
    %c0_429 = arith.constant 0 : index
    %c0_430 = arith.constant 0 : index
    %851 = vector.load %arg30[%c0_429, %c0_430] : memref<192x64xbf16, #tpu.memory_space<vmem>>, vector<192x64xbf16>
    %cst_431 = arith.constant dense<0.000000e+00> : vector<6x64xf32>
    %852 = tpu.matmul %845, %851, %cst_431 {dimension_numbers = #tpu.dot_dimension_numbers<[1], [0], [0], [1], [0, 0, 1, 1], [], []>} : vector<6x192xbf16>, vector<192x64xbf16>, vector<6x64xf32> -> vector<6x64xf32>
    %c0_432 = arith.constant 0 : index
    %c0_433 = arith.constant 0 : index
    %853 = vector.load %arg31[%c0_432, %c0_433] : memref<1x64xf32, #tpu.memory_space<vmem>>, vector<1x64xf32>
    %854 = vector.broadcast %853 : vector<1x64xf32> to vector<6x64xf32>
    %855 = arith.addf %852, %854 : vector<6x64xf32>
    %856 = arith.negf %855 : vector<6x64xf32>
    %857 = math.exp %856 : vector<6x64xf32>
    %cst_434 = arith.constant 1.000000e+00 : f32
    %858 = vector.broadcast %cst_434 : f32 to vector<6x64xf32>
    %859 = arith.addf %858, %857 : vector<6x64xf32>
    %860 = arith.divf %858, %859 : vector<6x64xf32>
    %861 = arith.addf %850, %860 : vector<6x64xf32>
    %cst_435 = arith.constant 0.000000e+00 : f32
    %862 = vector.broadcast %cst_435 : f32 to vector<6x64xf32>
    %863 = arith.maximumf %861, %862 : vector<6x64xf32>
    %c0_436 = arith.constant 0 : index
    %c2_437 = arith.constant 2 : index
    %c0_438 = arith.constant 0 : index
    %c0_439 = arith.constant 0 : index
    %864 = vector.load %arg32[%c0_436, %c2_437, %c0_438, %c0_439] : memref<1x4x6x64xf32, #tpu.memory_space<vmem>>, vector<1x1x6x64xf32>
    %865 = vector.shape_cast %864 : vector<1x1x6x64xf32> to vector<6x64xf32>
    %866 = vector.shape_cast %863 : vector<6x64xf32> to vector<1x1x6x64xf32>
    tpu.vector_store %arg32[%c0_436, %c2_437, %c0_438, %c0_439], %866 {strides = array<i32>} : memref<1x4x6x64xf32, #tpu.memory_space<vmem>>, vector<1x1x6x64xf32>,
    %867 = vector.extract_strided_slice %788 {offsets = [0, 0], sizes = [6, 64], strides = [1, 1]} : vector<8x64xf32> to vector<6x64xf32>
    %868 = vector.extract_strided_slice %788 {offsets = [1, 0], sizes = [6, 64], strides = [1, 1]} : vector<8x64xf32> to vector<6x64xf32>
    %869 = vector.extract_strided_slice %788 {offsets = [2, 0], sizes = [6, 64], strides = [1, 1]} : vector<8x64xf32> to vector<6x64xf32>
    %870 = tpu.concatenate %867, %868, %869 in 1 : vector<6x64xf32>, vector<6x64xf32>, vector<6x64xf32> -> vector<6x192xf32>
    %871 = arith.truncf %870 : vector<6x192xf32> to vector<6x192xbf16>
    %c0_440 = arith.constant 0 : index
    %c0_441 = arith.constant 0 : index
    %872 = vector.load %arg28[%c0_440, %c0_441] : memref<192x64xbf16, #tpu.memory_space<vmem>>, vector<192x64xbf16>
    %cst_442 = arith.constant dense<0.000000e+00> : vector<6x64xf32>
    %873 = tpu.matmul %871, %872, %cst_442 {dimension_numbers = #tpu.dot_dimension_numbers<[1], [0], [0], [1], [0, 0, 1, 1], [], []>} : vector<6x192xbf16>, vector<192x64xbf16>, vector<6x64xf32> -> vector<6x64xf32>
    %c0_443 = arith.constant 0 : index
    %c0_444 = arith.constant 0 : index
    %874 = vector.load %arg29[%c0_443, %c0_444] : memref<1x64xf32, #tpu.memory_space<vmem>>, vector<1x64xf32>
    %875 = vector.broadcast %874 : vector<1x64xf32> to vector<6x64xf32>
    %876 = arith.addf %873, %875 : vector<6x64xf32>
    %c0_445 = arith.constant 0 : index
    %c0_446 = arith.constant 0 : index
    %877 = vector.load %arg30[%c0_445, %c0_446] : memref<192x64xbf16, #tpu.memory_space<vmem>>, vector<192x64xbf16>
    %cst_447 = arith.constant dense<0.000000e+00> : vector<6x64xf32>
    %878 = tpu.matmul %871, %877, %cst_447 {dimension_numbers = #tpu.dot_dimension_numbers<[1], [0], [0], [1], [0, 0, 1, 1], [], []>} : vector<6x192xbf16>, vector<192x64xbf16>, vector<6x64xf32> -> vector<6x64xf32>
    %c0_448 = arith.constant 0 : index
    %c0_449 = arith.constant 0 : index
    %879 = vector.load %arg31[%c0_448, %c0_449] : memref<1x64xf32, #tpu.memory_space<vmem>>, vector<1x64xf32>
    %880 = vector.broadcast %879 : vector<1x64xf32> to vector<6x64xf32>
    %881 = arith.addf %878, %880 : vector<6x64xf32>
    %882 = arith.negf %881 : vector<6x64xf32>
    %883 = math.exp %882 : vector<6x64xf32>
    %cst_450 = arith.constant 1.000000e+00 : f32
    %884 = vector.broadcast %cst_450 : f32 to vector<6x64xf32>
    %885 = arith.addf %884, %883 : vector<6x64xf32>
    %886 = arith.divf %884, %885 : vector<6x64xf32>
    %887 = arith.addf %876, %886 : vector<6x64xf32>
    %cst_451 = arith.constant 0.000000e+00 : f32
    %888 = vector.broadcast %cst_451 : f32 to vector<6x64xf32>
    %889 = arith.maximumf %887, %888 : vector<6x64xf32>
    %c0_452 = arith.constant 0 : index
    %c3_453 = arith.constant 3 : index
    %c0_454 = arith.constant 0 : index
    %c0_455 = arith.constant 0 : index
    %890 = vector.load %arg32[%c0_452, %c3_453, %c0_454, %c0_455] : memref<1x4x6x64xf32, #tpu.memory_space<vmem>>, vector<1x1x6x64xf32>
    %891 = vector.shape_cast %890 : vector<1x1x6x64xf32> to vector<6x64xf32>
    %892 = vector.shape_cast %889 : vector<6x64xf32> to vector<1x1x6x64xf32>
    tpu.vector_store %arg32[%c0_452, %c3_453, %c0_454, %c0_455], %892 {strides = array<i32>} : memref<1x4x6x64xf32, #tpu.memory_space<vmem>>, vector<1x1x6x64xf32>,
    return
  }
  func.func @transform_0(%arg0: i32) -> (i32, i32, i32, i32) {
    %c0_i32 = arith.constant 0 : i32
    %c0_i32_0 = arith.constant 0 : i32
    %c0_i32_1 = arith.constant 0 : i32
    %c0_i32_2 = arith.constant 0 : i32
    return %arg0, %c0_i32, %c0_i32_0, %c0_i32_1 : i32, i32, i32, i32
  }
  func.func @transform_1(%arg0: i32) -> (i32, i32, i32) {
    %c0_i32 = arith.constant 0 : i32
    %c0_i32_0 = arith.constant 0 : i32
    %c0_i32_1 = arith.constant 0 : i32
    %c0_i32_2 = arith.constant 0 : i32
    return %c0_i32, %c0_i32_0, %c0_i32_1 : i32, i32, i32
  }
  func.func @transform_2(%arg0: i32) -> (i32, i32) {
    %c0_i32 = arith.constant 0 : i32
    %c0_i32_0 = arith.constant 0 : i32
    %c0_i32_1 = arith.constant 0 : i32
    return %c0_i32, %c0_i32_0 : i32, i32
  }
  func.func @transform_3(%arg0: i32) -> (i32, i32) {
    %c0_i32 = arith.constant 0 : i32
    %c0_i32_0 = arith.constant 0 : i32
    %c0_i32_1 = arith.constant 0 : i32
    return %c0_i32, %c0_i32_0 : i32, i32
  }
  func.func @transform_4(%arg0: i32) -> (i32, i32) {
    %c0_i32 = arith.constant 0 : i32
    %c0_i32_0 = arith.constant 0 : i32
    %c0_i32_1 = arith.constant 0 : i32
    return %c0_i32, %c0_i32_0 : i32, i32
  }
  func.func @transform_5(%arg0: i32) -> (i32, i32) {
    %c0_i32 = arith.constant 0 : i32
    %c0_i32_0 = arith.constant 0 : i32
    %c0_i32_1 = arith.constant 0 : i32
    return %c0_i32, %c0_i32_0 : i32, i32
  }
  func.func @transform_6(%arg0: i32) -> (i32, i32) {
    %c0_i32 = arith.constant 0 : i32
    %c0_i32_0 = arith.constant 0 : i32
    %c0_i32_1 = arith.constant 0 : i32
    return %c0_i32, %c0_i32_0 : i32, i32
  }
  func.func @transform_7(%arg0: i32) -> (i32, i32) {
    %c0_i32 = arith.constant 0 : i32
    %c0_i32_0 = arith.constant 0 : i32
    %c0_i32_1 = arith.constant 0 : i32
    return %c0_i32, %c0_i32_0 : i32, i32
  }
  func.func @transform_8(%arg0: i32) -> (i32, i32) {
    %c0_i32 = arith.constant 0 : i32
    %c0_i32_0 = arith.constant 0 : i32
    %c0_i32_1 = arith.constant 0 : i32
    return %c0_i32, %c0_i32_0 : i32, i32
  }
  func.func @transform_9(%arg0: i32) -> (i32, i32) {
    %c0_i32 = arith.constant 0 : i32
    %c0_i32_0 = arith.constant 0 : i32
    %c0_i32_1 = arith.constant 0 : i32
    return %c0_i32, %c0_i32_0 : i32, i32
  }
  func.func @transform_10(%arg0: i32) -> (i32, i32) {
    %c0_i32 = arith.constant 0 : i32
    %c0_i32_0 = arith.constant 0 : i32
    %c0_i32_1 = arith.constant 0 : i32
    return %c0_i32, %c0_i32_0 : i32, i32
  }
  func.func @transform_11(%arg0: i32) -> (i32, i32) {
    %c0_i32 = arith.constant 0 : i32
    %c0_i32_0 = arith.constant 0 : i32
    %c0_i32_1 = arith.constant 0 : i32
    return %c0_i32, %c0_i32_0 : i32, i32
  }
  func.func @transform_12(%arg0: i32) -> (i32, i32) {
    %c0_i32 = arith.constant 0 : i32
    %c0_i32_0 = arith.constant 0 : i32
    %c0_i32_1 = arith.constant 0 : i32
    return %c0_i32, %c0_i32_0 : i32, i32
  }
  func.func @transform_13(%arg0: i32) -> (i32, i32) {
    %c0_i32 = arith.constant 0 : i32
    %c0_i32_0 = arith.constant 0 : i32
    %c0_i32_1 = arith.constant 0 : i32
    return %c0_i32, %c0_i32_0 : i32, i32
  }
  func.func @transform_14(%arg0: i32) -> (i32, i32, i32) {
    %c0_i32 = arith.constant 0 : i32
    %c0_i32_0 = arith.constant 0 : i32
    %c0_i32_1 = arith.constant 0 : i32
    %c0_i32_2 = arith.constant 0 : i32
    return %c0_i32, %c0_i32_0, %c0_i32_1 : i32, i32, i32
  }
  func.func @transform_15(%arg0: i32) -> (i32, i32, i32) {
    %c0_i32 = arith.constant 0 : i32
    %c0_i32_0 = arith.constant 0 : i32
    %c0_i32_1 = arith.constant 0 : i32
    %c0_i32_2 = arith.constant 0 : i32
    return %c0_i32, %c0_i32_0, %c0_i32_1 : i32, i32, i32
  }
  func.func @transform_16(%arg0: i32) -> (i32, i32) {
    %c0_i32 = arith.constant 0 : i32
    %c0_i32_0 = arith.constant 0 : i32
    %c0_i32_1 = arith.constant 0 : i32
    return %c0_i32, %c0_i32_0 : i32, i32
  }
  func.func @transform_17(%arg0: i32) -> (i32, i32) {
    %c0_i32 = arith.constant 0 : i32
    %c0_i32_0 = arith.constant 0 : i32
    %c0_i32_1 = arith.constant 0 : i32
    return %c0_i32, %c0_i32_0 : i32, i32
  }
  func.func @transform_18(%arg0: i32) -> (i32, i32) {
    %c0_i32 = arith.constant 0 : i32
    %c0_i32_0 = arith.constant 0 : i32
    %c0_i32_1 = arith.constant 0 : i32
    return %c0_i32, %c0_i32_0 : i32, i32
  }
  func.func @transform_19(%arg0: i32) -> (i32, i32) {
    %c0_i32 = arith.constant 0 : i32
    %c0_i32_0 = arith.constant 0 : i32
    %c0_i32_1 = arith.constant 0 : i32
    return %c0_i32, %c0_i32_0 : i32, i32
  }
  func.func @transform_20(%arg0: i32) -> (i32, i32) {
    %c0_i32 = arith.constant 0 : i32
    %c0_i32_0 = arith.constant 0 : i32
    %c0_i32_1 = arith.constant 0 : i32
    return %c0_i32, %c0_i32_0 : i32, i32
  }
  func.func @transform_21(%arg0: i32) -> (i32, i32) {
    %c0_i32 = arith.constant 0 : i32
    %c0_i32_0 = arith.constant 0 : i32
    %c0_i32_1 = arith.constant 0 : i32
    return %c0_i32, %c0_i32_0 : i32, i32
  }
  func.func @transform_22(%arg0: i32) -> (i32, i32) {
    %c0_i32 = arith.constant 0 : i32
    %c0_i32_0 = arith.constant 0 : i32
    %c0_i32_1 = arith.constant 0 : i32
    return %c0_i32, %c0_i32_0 : i32, i32
  }
  func.func @transform_23(%arg0: i32) -> (i32, i32) {
    %c0_i32 = arith.constant 0 : i32
    %c0_i32_0 = arith.constant 0 : i32
    %c0_i32_1 = arith.constant 0 : i32
    return %c0_i32, %c0_i32_0 : i32, i32
  }
  func.func @transform_24(%arg0: i32) -> (i32, i32) {
    %c0_i32 = arith.constant 0 : i32
    %c0_i32_0 = arith.constant 0 : i32
    %c0_i32_1 = arith.constant 0 : i32
    return %c0_i32, %c0_i32_0 : i32, i32
  }
  func.func @transform_25(%arg0: i32) -> (i32, i32, i32) {
    %c0_i32 = arith.constant 0 : i32
    %c0_i32_0 = arith.constant 0 : i32
    %c0_i32_1 = arith.constant 0 : i32
    %c0_i32_2 = arith.constant 0 : i32
    return %c0_i32, %c0_i32_0, %c0_i32_1 : i32, i32, i32
  }
  func.func @transform_26(%arg0: i32) -> (i32, i32, i32) {
    %c0_i32 = arith.constant 0 : i32
    %c0_i32_0 = arith.constant 0 : i32
    %c0_i32_1 = arith.constant 0 : i32
    %c0_i32_2 = arith.constant 0 : i32
    return %c0_i32, %c0_i32_0, %c0_i32_1 : i32, i32, i32
  }
  func.func @transform_27(%arg0: i32) -> (i32, i32) {
    %c0_i32 = arith.constant 0 : i32
    %c0_i32_0 = arith.constant 0 : i32
    %c0_i32_1 = arith.constant 0 : i32
    return %c0_i32, %c0_i32_0 : i32, i32
  }
  func.func @transform_28(%arg0: i32) -> (i32, i32) {
    %c0_i32 = arith.constant 0 : i32
    %c0_i32_0 = arith.constant 0 : i32
    %c0_i32_1 = arith.constant 0 : i32
    return %c0_i32, %c0_i32_0 : i32, i32
  }
  func.func @transform_29(%arg0: i32) -> (i32, i32) {
    %c0_i32 = arith.constant 0 : i32
    %c0_i32_0 = arith.constant 0 : i32
    %c0_i32_1 = arith.constant 0 : i32
    return %c0_i32, %c0_i32_0 : i32, i32
  }
  func.func @transform_30(%arg0: i32) -> (i32, i32) {
    %c0_i32 = arith.constant 0 : i32
    %c0_i32_0 = arith.constant 0 : i32
    %c0_i32_1 = arith.constant 0 : i32
    return %c0_i32, %c0_i32_0 : i32, i32
  }
  func.func @transform_31(%arg0: i32) -> (i32, i32, i32, i32) {
    %c0_i32 = arith.constant 0 : i32
    %c0_i32_0 = arith.constant 0 : i32
    %c0_i32_1 = arith.constant 0 : i32
    %c0_i32_2 = arith.constant 0 : i32
    return %arg0, %c0_i32, %c0_i32_0, %c0_i32_1 : i32, i32, i32, i32
  }
}

</mosaic_0001>

<bundles_post_ra>
// kernel: _lambda_.1
= control target key start
LH: loop header
LB: loop body
LE: loop exit
PB: predicated region body
PF: predicated region fallthrough
CT: control target
= control target key end

     0   :  { %s5689_s6 = smov 1   ;;  %s5690_s10 = smov 2   ;;  %s6952_s0 = inlined_call_operand.smem [shape: u32[32], index: -1, kind: input, shape index: {}] }
   0x1   :  { %s5734_s5 = sld [smem:[%s6952_s0]]   ;;  %s5691_s14 = smov 3  }
   0x2   :  { %s5739_s9 = sld [smem:[%s6952_s0 + %s5689_s6]]   ;;  %s5692_s18 = smov 4  }
   0x3   :  { %s5744_s13 = sld [smem:[%s6952_s0 + %s5690_s10]]   ;;  %s5693_s22 = smov 5  }
   0x4   :  { %s5749_s17 = sld [smem:[%s6952_s0 + %s5691_s14]]   ;;  %s5694_s26 = smov 6  }
   0x5   :  { %s5754_s21 = sld [smem:[%s6952_s0 + %s5692_s18]]   ;;  %s5695_s30 = smov 7  }
   0x6   :  { %s5759_s25 = sld [smem:[%s6952_s0 + %s5693_s22]]   ;;  %s5696_s4 = smov 8  }
   0x7   :  { %6963 = sst [smem:[#allocation2_spill]] %s5734_s5  ;;  %s5697_s10 = smov 9  }
   0x8   :  { %6964 = sst [smem:[#allocation3_spill]] %s5739_s9  ;;  %s5698_s15 = smov 10  }
   0x9   :  { %s5764_s29 = sld [smem:[%s6952_s0 + %s5694_s26]]   ;;  %s5699_s20 = smov 11  }
   0xa   :  { %s5769_s3 = sld [smem:[%s6952_s0 + %s5695_s30]]   ;;  %s5700_s26 = smov 12  }
   0xb   :  { %6965 = sst [smem:[#allocation4_spill]] %s5754_s21  ;;  %s5701_s1 = smov 13  }
   0xc   :  { %s5774_s8 = sld [smem:[%s6952_s0 + %s5696_s4]]   ;;  %s5702_s7 = smov 14  }
   0xd   :  { %s5779_s14 = sld [smem:[%s6952_s0 + %s5697_s10]]   ;;  %s5704_s22 = smov 16  }
   0xe   :  { %s5784_s19 = sld [smem:[%s6952_s0 + %s5698_s15]]   ;;  %s5703_s15 = smov 15  }
   0xf   :  { %s5789_s24 = sld [smem:[%s6952_s0 + %s5699_s20]]   ;;  %s5705_s28 = smov 17  }
  0x10   :  { %s5794_s30 = sld [smem:[%s6952_s0 + %s5700_s26]]  }
  0x11   :  { %s5799_s6 = sld [smem:[%s6952_s0 + %s5701_s1]]  }
  0x12   :  { %s5804_s12 = sld [smem:[%s6952_s0 + %s5702_s7]]   ;;  %s5706_s7 = smov 18  }
  0x13   :  { %s5809_s20 = sld [smem:[%s6952_s0 + %s5703_s15]]   ;;  %s5707_s15 = smov 19  }
  0x14   :  { %s5814_s27 = sld [smem:[%s6952_s0 + %s5704_s22]]   ;;  %s5708_s22 = smov 20  }
  0x15   :  { %6966 = sst [smem:[#allocation5_spill]] %s5789_s24 }
  0x16   :  { %s5819_s4 = sld [smem:[%s6952_s0 + %s5705_s28]]   ;;  %s5709_s28 = smov 21  }
  0x17   :  { %6967 = sst [smem:[#allocation6_spill]] %s5799_s6 }
  0x18   :  { %6968 = sst [smem:[#allocation7_spill]] %s5804_s12 }
  0x19   :  { %6969 = sst [smem:[#allocation8_spill]] %s5809_s20 }
  0x1a   :  { %s5824_s12 = sld [smem:[%s6952_s0 + %s5706_s7]]   ;;  %s5710_s7 = smov 22  }
  0x1b   :  { %s5829_s20 = sld [smem:[%s6952_s0 + %s5707_s15]]   ;;  %s5711_s15 = smov 23  }
  0x1c   :  { %6970 = sst [smem:[#allocation9_spill]] %s5819_s4 }
  0x1d   :  { %s5834_s24 = sld [smem:[%s6952_s0 + %s5708_s22]]   ;;  %s5712_s22 = smov 24  }
  0x1e   :  { %s5839_s4 = sld [smem:[%s6952_s0 + %s5709_s28]]   ;;  %s5713_s28 = smov 25  }
  0x1f   :  { %s5844_s6 = sld [smem:[%s6952_s0 + %s5710_s7]]   ;;  %s5714_s7 = smov 26  }
  0x21   :  { %6971 = sst [smem:[#allocation10_spill]] %s5829_s20 }
  0x22   :  { %s5849_s20 = sld [smem:[%s6952_s0 + %s5711_s15]]   ;;  %s5715_s15 = smov 27  }
  0x23   :  { %6972 = sst [smem:[#allocation11_spill]] %s5834_s24 }
  0x24   :  { %6973 = sst [smem:[#allocation12_spill]] %s5839_s4 }
  0x25   :  { %6974 = sst [smem:[#allocation13_spill]] %s5844_s6 }
  0x26   :  { %s5854_s24 = sld [smem:[%s6952_s0 + %s5712_s22]]   ;;  %s5716_s22 = smov 28  }
  0x27   :  { %s5859_s4 = sld [smem:[%s6952_s0 + %s5713_s28]]   ;;  %s5717_s28 = smov 29  }
  0x28   :  { %6975 = sst [smem:[#allocation14_spill]] %s5849_s20 }
  0x29   :  { %s5864_s6 = sld [smem:[%s6952_s0 + %s5714_s7]]   ;;  %s5718_s7 = smov 30  }
  0x2a   :  { %s5869_s20 = sld [smem:[%s6952_s0 + %s5715_s15]]   ;;  %s5719_s15 = smov 31  }
  0x2c   :  { %6976 = sst [smem:[#allocation15_spill]] %s5854_s24 }
  0x2d   :  { %6977 = sst [smem:[#allocation16_spill]] %s5859_s4 }
  0x2e   :  { %s5874_s24 = sld [smem:[%s6952_s0 + %s5716_s22]]   ;;  %s5891_s22 = smov 0  }
  0x2f   :  { %6978 = sst [smem:[#allocation17_spill]] %s5864_s6 }
  0x30   :  { %6979 = sst [smem:[#allocation18_spill]] %s5869_s20 }
  0x31   :  { %s5879_s4 = sld [smem:[%s6952_s0 + %s5717_s28]]  }
  0x32   :  { %s5884_s6 = sld [smem:[%s6952_s0 + %s5718_s7]]  }
  0x33   :  { %s5889_s20 = sld [smem:[%s6952_s0 + %s5719_s15]]  }
  0x34 LB: > { %s6980_s9 = sld [smem:[#allocation3_spill]]  ;;  %s5897_s23 = sadd.s32 4294967295, %s5687_s22   ;;  %s5687_s22 = sphi %s5891_s22, %s73_s22  }
  0x35   : > { %6981 = sst [smem:[#allocation19_spill]] %s5687_s22  ;;  %p4743_p0 = scmp.ge.s32.totalorder %s5687_s22, 1 }
  0x36   : > { %p869_p1 = scmp.lt.s32.totalorder %s5687_s22, 3 }
  0x38   : > { %p870_p2 = pnand %p4743_p0, %p869_p1 }
  0x39   : > { %s6982_s21 = sld [smem:[#allocation4_spill]] (!%p870_p2)  ;;  %vm968_vm0 = vcmask (!%p870_p2), 1041408   ;;  %v5720_v2 = vmov (!%p870_p2), 0.0   ;;  %s6983_s5 = sld [smem:[#allocation2_spill]] (!%p870_p2)  ;;  %vm964_vm1 = vcmask (!%p870_p2), 31744   ;;  %vm5721_vm2 = vmmov (!%p870_p2), 0  }
  0x3a   : > { %873 = sbr.rel (%p870_p2) target bundleno = 2965 (0xb95), region = 144  ;;  %v961_v1 = vld [vmem:[%s6980_s9] sm:$0xff] (!%p870_p2)  ;;  %5116 = vmatprep.subr.bf16.mxu0 (!%p870_p2), %v5720_v2  ;;  %5122 = vmatprep.subr.bf16.mxu1 (!%p870_p2), %v5720_v2  ;;  %v962_v4 = vld [vmem:[%s6980_s9 + $0x8] sm:$0xff] (!%p870_p2)  ;;  %v4749_v5 = vld [vmem:[%s6980_s9 + $0x10] sm:$0xff] (!%p870_p2)  ;;  %p949_p3 = scmp.lt.s32.totalorder (!%p870_p2), %s5897_s23, 1  ;;  %v5722_v9 = vmov (!%p870_p2), 0  }
  0x3b   : > { %v4750_v6 = vld [vmem:[%s6980_s9 + $0x18] sm:$0xff] (!%p870_p2)  ;;  %v963_v7 = vpack.c.bf16 (!%p870_p2), %v962_v4, %v961_v1  ;;  %5118 = vmatprep.mubr.msk.bf16.mxu0 (!%p870_p2), %vm5721_vm2, %v5720_v2  ;;  %5124 = vmatprep.mubr.msk.bf16.mxu1 (!%p870_p2), %vm5721_vm2, %v5720_v2  ;;  %vm1072_vm3 = vcmask (!%p870_p2), 1040384   ;;  %vm1077_vm4 = vcmask (!%p870_p2), 1046528   ;;  %v5943_v50 = vld [vmem:[%s5759_s25] sm:$0xff] (!%p870_p2)   ;;  %v5951_v52 = vld [vmem:[%s5759_s25 + $0x8] sm:$0xff] (!%p870_p2)   ;;  %s4755_s1 = sshll.u32 (!%p870_p2), %s5897_s23, 2 }
  0x3c   : > { %v1016_v8 = vpack.c.bf16 (!%p870_p2), %v4750_v6, %v4749_v5  ;;  %5366 = vset.pattern.permute.xlu0 (!%p870_p2), %v5722_v9  ;;  %5365 = vset.pattern.permute.xlu1 (!%p870_p2), %v5722_v9  ;;  %v5946_v51 = vld [vmem:[%s5769_s3] sm:$0xff] (!%p870_p2)   ;;  %v5954_v53 = vld [vmem:[%s5769_s3 + $0x8] sm:$0xff] (!%p870_p2)   ;;  %v5959_v54 = vld [vmem:[%s5759_s25 + $0x10] sm:$0xff] (!%p870_p2)   ;;  %s1134_s2 = ssub.s32 (!%p870_p2), 0, %s4755_s1  ;;  %s1216_s10 = sadd.s32 (!%p870_p2), 1, %s4755_s1  ;;  %vm1426_vm5 = vcmask (!%p870_p2), 1045504  }
  0x3d   : > { %v5962_v55 = vld [vmem:[%s5769_s3 + $0x10] sm:$0xff] (!%p870_p2)   ;;  %v5971_v56 = vld [vmem:[%s5759_s25 + $0x18] sm:$0xff] (!%p870_p2)   ;;  %v5981_v58 = vld [vmem:[%s5759_s25 + $0x20] sm:$0xff] (!%p870_p2)   ;;  %s4756_s7 = smin.u32 (!%p870_p2), %s4755_s1, %s1134_s2  ;;  %s1218_s15 = ssub.s32 (!%p870_p2), 0, %s1216_s10  ;;  %vm1436_vm6 = vcmask (!%p870_p2), 261120   ;;  %vm1439_vm7 = vcmask (!%p870_p2), 523264  }
  0x3e   : > { %v5974_v57 = vld [vmem:[%s5769_s3 + $0x18] sm:$0xff] (!%p870_p2)   ;;  %v5984_v59 = vld [vmem:[%s5769_s3 + $0x20] sm:$0xff] (!%p870_p2)   ;;  %s1136_s11 = sand.u32 (!%p870_p2), 1, %s4756_s7   ;;  %p1133_p4 = scmp.lt.s32.totalorder (!%p870_p2), %s4755_s1, 0  ;;  %vm1498_vm8 = vcmask (!%p870_p2), 785408   ;;  %vm2146_vm9 = vcmask (!%p870_p2), 130048  }
  0x3f   : > { %v960_v0 = vld [vmem:[%s6982_s21] sm:$0x3] (!%p870_p2)  ;;  %s1137_s16 = ssub.s32 (!%p870_p2), 0, %s1136_s11  ;;  %s4761_s18 = smin.u32 (!%p870_p2), %s1218_s15, %s1216_s10  ;;  %vm2183_vm10 = vcmask (!%p870_p2), 392192   ;;  %vm3724_vm11 = vcmask (!%p870_p2), 521216  }
  0x40   : > { %v970_v3 = vsel (!%p870_p2), %vm968_vm0, %v960_v0, 0  ;;  %p1217_p5 = scmp.lt.s32.totalorder (!%p870_p2), %s1216_s10, 0  ;;  %s1384_s9 = sadd.s32 (!%p870_p2), 3, %s4755_s1 }
  0x41   : > { %5117 = vmatpush3.bf16.msra.mxu0 %v970_v3  ;;  %5123 = vmatpush3.bf16.msra.mxu1 %v970_v3  ;;  %s5916_s0 = scalar_select %p949_p3, %s5897_s23, 1 }
  0x42   : > { %5128 = vmatprep.subr.bf16.mxu0 %v5720_v2  ;;  %5144 = vmatprep.subr.bf16.mxu1 %v5720_v2  ;;  %s7001_s16 = smov (!%p1133_p4, %s1137_s16), %s1136_s11  ;;  %s1220_s23 = sand.u32 1, %s4761_s18  }
  0x43   : > { %s5028_s26 = sshll.u32 %s5916_s0, 6  ;;  %s1221_s2 = ssub.s32 0, %s1220_s23 }
  0x44   : > { %5119 = vmatmul.mubr.msk.bf16.vlgmr.msra.gmra.mrb[0].mxu0 %vm964_vm1, %v963_v7  ;;  %5125 = vmatmul.mubr.msk.bf16.vlgmr.msra.gmra.mrb[0].mxu1 %vm964_vm1, %v1016_v8  ;;  %s953_s28 = scalar_lea.vmem %s6983_s5, %s5028_s26  ;;  %s1300_s26 = sadd.s32 2, %s4755_s1 }
  0x45   : > { %5140 = vmatprep.mubr.msk.bf16.mxu0 %vm5721_vm2, %v5720_v2  ;;  %5156 = vmatprep.mubr.msk.bf16.mxu1 %vm5721_vm2, %v5720_v2  ;;  %v1066_v10 = vld [vmem:[%s953_s28] sm:$0xff]  ;;  %v1067_v11 = vld [vmem:[%s953_s28 + $0x8] sm:$0xff]  ;;  %v4759_v12 = vld [vmem:[%s953_s28 + $0x10] sm:$0xff]  ;;  %p4758_p6 = scmp.lt.s32.totalorder %s7001_s16, 0  ;;  %s1143_s7 = sadd.s32 2, %s7001_s16 }
  0x46   : > { %1100 = vperm.xlu1 %5365, %v1066_v10   ;;  %v1073_v13 = vrot.slane %v1066_v10, 7  ;;  %v1078_v14 = vrot.slane %v1066_v10, 1  ;;  %v1069_v15 = vrot.slane %v1067_v11, 7  ;;  %v1079_v16 = vrot.slane %v1067_v11, 1  ;;  %v4760_v17 = vld [vmem:[%s953_s28 + $0x18] sm:$0xff]  ;;  %v4764_v20 = vld [vmem:[%s953_s28 + $0x20] sm:$0xff]  ;;  %5129 = vmatpush3.bf16.msra.mxu0 %v5943_v50  ;;  %s7003_s2 = smov (!%p1217_p5, %s1221_s2), %s1220_s23 }
  0x47   : > { %v1167_v18 = vrot.slane %v4760_v17, 7  ;;  %v1170_v19 = vrot.slane %v4759_v12, 7  ;;  %v4765_v21 = vld [vmem:[%s953_s28 + $0x28] sm:$0xff]  ;;  %v1174_v23 = vrot.slane %v4759_v12, 1  ;;  %v1175_v24 = vrot.slane %v4760_v17, 1  ;;  %v4769_v25 = vld [vmem:[%s953_s28 + $0x30] sm:$0xff]  ;;  %5145 = vmatpush3.bf16.msra.mxu1 %v5946_v51  ;;  %5130 = vmatprep.subr.bf16.mxu0 %v5720_v2  ;;  %s7005_s7 = smov (!%p4758_p6, %s1143_s7), %s7001_s16 }
  0x48   : > { %v1076_v22 = vsel %vm1072_vm3, %v1069_v15, %v1073_v13  ;;  %v4770_v26 = vld [vmem:[%s953_s28 + $0x38] sm:$0xff]  ;;  %v1074_v27 = vsel %vm1072_vm3, %v1073_v13, %v1069_v15  ;;  %v1083_v28 = vsel %vm1077_vm4, %v1079_v16, %v1078_v14  ;;  %v1251_v29 = vrot.slane %v4765_v21, 7  ;;  %5146 = vmatprep.subr.bf16.mxu1 %v5720_v2  ;;  %s1302_s28 = ssub.s32 0, %s1300_s26  ;;  %p1301_p7 = scmp.lt.s32.totalorder %s1300_s26, 0 }
  0x49   : > { %1086 = vperm.xlu0 %5366, %v1076_v22   ;;  %v1254_v30 = vrot.slane %v4764_v20, 7  ;;  %v1258_v31 = vrot.slane %v4764_v20, 1  ;;  %v1259_v32 = vrot.slane %v4765_v21, 1  ;;  %v1335_v33 = vrot.slane %v4770_v26, 7  ;;  %s4766_s5 = smin.u32 %s1302_s28, %s1300_s26  ;;  %s1386_s22 = ssub.s32 0, %s1384_s9 }
  0x4a   : > { %1104 = vperm.xlu1 %5365, %v1067_v11   ;;  %v1338_v34 = vrot.slane %v4769_v25, 7  ;;  %v1080_v35 = vsel %vm1077_vm4, %v1078_v14, %v1079_v16  ;;  %v1171_v36 = vsel %vm1072_vm3, %v1170_v19, %v1167_v18  ;;  %v1342_v37 = vrot.slane %v4769_v25, 1  ;;  %5131 = vmatpush3.bf16.msra.mxu0 %v5951_v52  ;;  %s1304_s21 = sand.u32 1, %s4766_s5   ;;  %p4763_p8 = scmp.lt.s32.totalorder %s7003_s2, 0 }
  0x4b   : > { %v1343_v38 = vrot.slane %v4770_v26, 1  ;;  %v1173_v39 = vsel %vm1072_vm3, %v1167_v18, %v1170_v19  ;;  %v1179_v40 = vsel %vm1077_vm4, %v1175_v24, %v1174_v23  ;;  %v1176_v41 = vsel %vm1077_vm4, %v1174_v23, %v1175_v24  ;;  %5147 = vmatpush3.bf16.msra.mxu1 %v5954_v53  ;;  %5132 = vmatprep.subr.bf16.mxu0 %v5720_v2  ;;  %s1305_s11 = ssub.s32 0, %s1304_s21  ;;  %s4771_s10 = smin.u32 %s1386_s22, %s1384_s9  ;;  %v4752_v18 = vld [vmem:[%s5749_s17] ss:$0 sm:$0xff]  ;;  %v6050_v24 = vld [vmem:[%s5749_s17 + $0x2] ss:$0 sm:$0xff] }
  0x4c   : > { %v1255_v42 = vsel %vm1072_vm3, %v1254_v30, %v1251_v29  ;;  %v1257_v43 = vsel %vm1072_vm3, %v1251_v29, %v1254_v30  ;;  %v1263_v44 = vsel %vm1077_vm4, %v1259_v32, %v1258_v31  ;;  %v1260_v45 = vsel %vm1077_vm4, %v1258_v31, %v1259_v32  ;;  %5148 = vmatprep.subr.bf16.mxu1 %v5720_v2  ;;  %s1227_s15 = sadd.s32 2, %s7003_s2  ;;  %s7007_s11 = smov (!%p1301_p7, %s1305_s11), %s1304_s21 }
  0x4d   : > { %1090 = vperm.xlu0 %5366, %v1074_v27   ;;  %v1339_v46 = vsel %vm1072_vm3, %v1338_v34, %v1335_v33  ;;  %v1341_v47 = vsel %vm1072_vm3, %v1335_v33, %v1338_v34  ;;  %v1347_v48 = vsel %vm1077_vm4, %v1343_v38, %v1342_v37  ;;  %v1344_v49 = vsel %vm1077_vm4, %v1342_v37, %v1343_v38  ;;  %s1388_s18 = sand.u32 1, %s4771_s10   ;;  %s7009_s15 = smov (!%p4763_p8, %s1227_s15), %s7003_s2 }
  0x4e   : > { %1121 = vperm.xlu1 %5365, %v1083_v28   ;;  %5133 = vmatpush3.bf16.msra.mxu0 %v5959_v54  ;;  %p1385_p9 = scmp.lt.s32.totalorder %s1384_s9, 0  ;;  %p1145_p10 = scmp.eq.s32.totalorder %s7005_s7, 0 }
  0x4f   : > { %5149 = vmatpush3.bf16.msra.mxu1 %v5962_v55  ;;  %5134 = vmatprep.subr.bf16.mxu0 %v5720_v2  ;;  %s1389_s5 = ssub.s32 0, %s1388_s18  ;;  %p4768_p11 = scmp.lt.s32.totalorder %s7007_s11, 0 }
  0x50   : > { %5150 = vmatprep.subr.bf16.mxu1 %v5720_v2  ;;  %s1311_s1 = sadd.s32 2, %s7007_s11  ;;  %s7011_s5 = smov (!%p1385_p9, %s1389_s5), %s1388_s18 }
  0x51   : > { %1116 = vperm.xlu0 %5366, %v1080_v35   ;;  %s6022_s16 = scalar_select %p1145_p10, 1, 0 }
  0x52   : > { %1186 = vperm.xlu1 %5365, %v1171_v36   ;;  %5135 = vmatpush3.bf16.msra.mxu0 %v5971_v56  ;;  %s7013_s1 = smov (!%p4768_p11, %s1311_s1), %s7007_s11  ;;  %p1229_p12 = scmp.eq.s32.totalorder %s7009_s15, 0 }
  0x53   : > { %5151 = vmatpush3.bf16.msra.mxu1 %v5974_v57  ;;  %5136 = vmatprep.subr.bf16.mxu0 %v5720_v2  ;;  %p4773_p13 = scmp.lt.s32.totalorder %s7011_s5, 0  ;;  %s1395_s9 = sadd.s32 2, %s7011_s5 }
  0x54   : > { %5152 = vmatprep.subr.bf16.mxu1 %v5720_v2  ;;  %p1313_p0 = scmp.eq.s32.totalorder %s7013_s1, 0  ;;  %p1151_p1 = scmp.eq.s32.totalorder %s7005_s7, 1 }
  0x55   : > { %1182 = vperm.xlu0 %5366, %v1173_v39   ;;  %s6025_s21 = scalar_select %p1229_p12, 1, 0 }
  0x56   : > { %1196 = vperm.xlu1 %5365, %v4760_v17   ;;  %5137 = vmatpush3.bf16.msra.mxu0 %v5981_v58  ;;  %s7015_s9 = smov (!%p4773_p13, %s1395_s9), %s7011_s5  ;;  %p1235_p2 = scmp.eq.s32.totalorder %s7009_s15, 1  ;;  %v4753_v17 = vld [vmem:[%s5749_s17 + $0x1] ss:$0 sm:$0xff] }
  0x57   : > { %5153 = vmatpush3.bf16.msra.mxu1 %v5984_v59  ;;  %5138 = vmatprep.subr.bf16.mxu0 %v5720_v2  ;;  %s6030_s22 = scalar_select %p1313_p0, 1, 0 }
  0x58   : > { %5154 = vmatprep.subr.bf16.mxu1 %v5720_v2  ;;  %p1397_p3 = scmp.eq.s32.totalorder %s7015_s9, 0  ;;  %p1319_p4 = scmp.eq.s32.totalorder %s7013_s1, 1 }
  0x59   : > { %1192 = vperm.xlu0 %5366, %v4759_v12   ;;  %s6033_s26 = scalar_select %p1151_p1, 1, 0 }
  0x5a   : > { %1209 = vperm.xlu1 %5365, %v1179_v40   ;;  %s1147_s23 = scvt.s32.f32 %s6022_s16  ;;  %p1403_p5 = scmp.eq.s32.totalorder %s7015_s9, 1 }
  0x5b   : > { %s6038_s28 = scalar_select %p1235_p2, 1, 0 }
  0x5c   : > { %s6040_s2 = scalar_select %p1397_p3, 1, 0  ;;  %v1148_v32 = vstv %s1147_s23 }
  0x5d   : > { %1204 = vperm.xlu0 %5366, %v1176_v41   ;;  %s6047_s7 = scalar_select %p1319_p4, 1, 0 }
  0x5e   : > { %1270 = vperm.xlu1 %5365, %v1255_v42   ;;  %s6056_s11 = scalar_select %p1403_p5, 1, 0 }
  0x5f   : > { %s1231_s10 = scvt.s32.f32 %s6025_s21  ;;  %s1315_s15 = scvt.s32.f32 %s6030_s22 }
  0x60   : > { %s1153_s18 = scvt.s32.f32 %s6033_s26  ;;  %s1237_s5 = scvt.s32.f32 %s6038_s28 }
  0x61   : > { %1266 = vperm.xlu0 %5366, %v1257_v43   ;;  %s1399_s1 = scvt.s32.f32 %s6040_s2  ;;  %s1321_s16 = scvt.s32.f32 %s6047_s7 }
  0x62   : > { %1280 = vperm.xlu1 %5365, %v4765_v21   ;;  %s1405_s9 = scvt.s32.f32 %s6056_s11  ;;  %s5723_s21 = smov 64  }
  0x63   : > { %s5724_s22 = smov 32   ;;  %s5725_s26 = smov 16  }
  0x64   : > { %s6984_s23 = sld [smem:[#allocation6_spill]]  ;;  %s6985_s28 = sld [smem:[#allocation5_spill]] }
  0x65   : > { %1276 = vperm.xlu0 %5366, %v4764_v20   ;;  %s6986_s2 = sld [smem:[#allocation7_spill]]  ;;  %s6987_s7 = sld [smem:[#allocation8_spill]] }
  0x66   : > { %1293 = vperm.xlu1 %5365, %v1263_v44   ;;  %s6988_s11 = sld [smem:[#allocation10_spill]] }
  0x69   : > { %1288 = vperm.xlu0 %5366, %v1260_v45  }
  0x6a   : > { %1354 = vperm.xlu1 %5365, %v1339_v46  }
  0x6d   : > { %1350 = vperm.xlu0 %5366, %v1341_v47  }
  0x6e   : > { %1364 = vperm.xlu1 %5365, %v4770_v26  }
  0x71   : > { %1360 = vperm.xlu0 %5366, %v4769_v25  }
  0x72   : > { %1377 = vperm.xlu1 %5365, %v1347_v48   ;;  %v1232_v48 = vstv %s1231_s10  ;;  %s6989_s10 = sld [smem:[#allocation9_spill]] }
  0x75   : > { %1372 = vperm.xlu0 %5366, %v1344_v49   ;;  %v1316_v49 = vstv %s1315_s15  ;;  %s6990_s15 = sld [smem:[#allocation11_spill]] }
  0xc5   : > { %v5992_v60 = vpop.permute.xlu1 %1100 }
  0xc6   : > { %v1111_v20 = vmul.f32 %v4753_v17, %v5992_v60 }
  0xc8   : > { %v5994_v61 = vpop.permute.xlu0 %1086 }
  0xc9   : > { %v5997_v62 = vpop.permute.xlu1 %1104  ;;  %v1097_v21 = vmul.f32 %v4752_v18, %v5994_v61  ;;  %v1400_v61 = vstv %s1399_s1  ;;  %s6993_s1 = sld [smem:[#allocation18_spill]] }
  0xca   : > { %v1112_v22 = vmul.f32 %v4753_v17, %v5997_v62  ;;  %v1154_v62 = vstv %s1153_s18  ;;  %s6991_s18 = sld [smem:[#allocation12_spill]] }
  0xcb   : > { %v1113_v33 = vadd.f32 %v1111_v20, %v1097_v21 }
  0xcc   : > { %v5999_v63 = vpop.permute.xlu0 %1090 }
  0xcd   : > { %v6001_v0 = vpop.permute.xlu1 %1121  ;;  %v1098_v23 = vmul.f32 %v4752_v18, %v5999_v63  ;;  %v1238_v63 = vstv %s1237_s5  ;;  %s6992_s5 = sld [smem:[#allocation14_spill]] }
  0xce   : > { %v1129_v35 = vmul.f32 %v6050_v24, %v6001_v0  ;;  %v1322_v0 = vstv %s1321_s16  ;;  %s6994_s16 = sld [smem:[#allocation15_spill]] }
  0xcf   : > { %v1114_v34 = vadd.f32 %v1112_v22, %v1098_v23 }
  0xd0   : > { %v6003_v1 = vpop.permute.xlu0 %1116 }
  0xd1   : > { %v6005_v3 = vpop.permute.xlu1 %1186  ;;  %v1128_v36 = vmul.f32 %v6050_v24, %v6003_v1  ;;  %v1131_v1 = vadd.f32 %v1129_v35, %v1114_v34 }
  0xd2   : > { %v1190_v25 = vmul.f32 %v4752_v18, %v6005_v3 }
  0xd3   : > { %v1130_v3 = vadd.f32 %v1128_v36, %v1113_v33 }
  0xd4   : > { %v6007_v4 = vpop.permute.xlu0 %1182 }
  0xd5   : > { %v6009_v5 = vpop.permute.xlu1 %1196  ;;  %v1189_v26 = vmul.f32 %v4752_v18, %v6007_v4 }
  0xd6   : > { %v1200_v27 = vmul.f32 %v4753_v17, %v6009_v5  ;;  %v1406_v5 = vstv %s1405_s9  ;;  %s6995_s9 = sld [smem:[#allocation13_spill]] }
  0xd8   : > { %v1193_v6 = vpop.permute.xlu0 %1192  ;;  %v1202_v38 = vadd.f32 %v1200_v27, %v1190_v25 }
  0xd9   : > { %v6011_v7 = vpop.permute.xlu1 %1209  ;;  %v1199_v28 = vmul.f32 %v4753_v17, %v1193_v6 }
  0xda   : > { %v1213_v40 = vmul.f32 %v6050_v24, %v6011_v7 }
  0xdb   : > { %v1201_v39 = vadd.f32 %v1199_v28, %v1189_v26 }
  0xdc   : > { %v6015_v8 = vpop.permute.xlu0 %1204  ;;  %v1215_v4 = vadd.f32 %v1213_v40, %v1202_v38 }
  0xdd   : > { %v1271_v10 = vpop.permute.xlu1 %1270  ;;  %v1212_v41 = vmul.f32 %v6050_v24, %v6015_v8 }
  0xde   : > { %v1274_v29 = vmul.f32 %v4752_v18, %v1271_v10 }
  0xdf   : > { %v1214_v6 = vadd.f32 %v1212_v41, %v1201_v39 }
  0xe0   : > { %v6019_v11 = vpop.permute.xlu0 %1266 }
  0xe1   : > { %v1281_v12 = vpop.permute.xlu1 %1280  ;;  %v1273_v42 = vmul.f32 %v4752_v18, %v6019_v11 }
  0xe2   : > { %v1284_v30 = vmul.f32 %v4753_v17, %v1281_v12 }
  0xe4   : > { %v1277_v13 = vpop.permute.xlu0 %1276  ;;  %v1286_v43 = vadd.f32 %v1284_v30, %v1274_v29 }
  0xe5   : > { %v1294_v14 = vpop.permute.xlu1 %1293  ;;  %v1283_v44 = vmul.f32 %v4753_v17, %v1277_v13 }
  0xe6   : > { %v1297_v45 = vmul.f32 %v6050_v24, %v1294_v14 }
  0xe7   : > { %v1285_v7 = vadd.f32 %v1283_v44, %v1273_v42  ;;  %v1061_v42 = vld [vmem:[%s5744_s13] sm:$0xff] }
  0xe8   : > { %v6027_v15 = vpop.permute.xlu0 %1288  ;;  %v1299_v8 = vadd.f32 %v1297_v45, %v1286_v43 }
  0xe9   : > { %v1355_v16 = vpop.permute.xlu1 %1354  ;;  %v1296_v10 = vmul.f32 %v6050_v24, %v6027_v15 }
  0xea   : > { %v1358_v46 = vmul.f32 %v4752_v18, %v1355_v16 }
  0xec   : > { %v1351_v19 = vpop.permute.xlu0 %1350 }
  0xed   : > { %v1365_v31 = vpop.permute.xlu1 %1364  ;;  %v1357_v12 = vmul.f32 %v4752_v18, %v1351_v19 }
  0xee   : > { %v1368_v47 = vmul.f32 %v4753_v17, %v1365_v31 }
  0xf0   : > { %v1361_v37 = vpop.permute.xlu0 %1360  ;;  %v1370_v13 = vadd.f32 %v1368_v47, %v1358_v46 }
  0xf1   : > { %v1378_v60 = vpop.permute.xlu1 %1377  ;;  %v1367_v14 = vmul.f32 %v4753_v17, %v1361_v37 }
  0xf2   : > { %v1381_v16 = vmul.f32 %v6050_v24, %v1378_v60 }
  0xf3   : > { %v1369_v47 = vadd.f32 %v1367_v14, %v1357_v12 }
  0xf4   : > { %v1373_v11 = vpop.permute.xlu0 %1372  ;;  %v1383_v12 = vadd.f32 %v1381_v16, %v1370_v13 }
 0x117   : > { %v1006_v20 = vpop.f32.mrb[0].mxu0  ;;  %v1054_v21 = vpop.f32.mrb[0].mxu1 }
 0x118   : > { %v1149_v22 = vmul.f32 %v1148_v32, %v1006_v20  ;;  %v1233_v23 = vmul.f32 %v1232_v48, %v1006_v20  ;;  %v1317_v25 = vmul.f32 %v1316_v49, %v1006_v20  ;;  %v1401_v26 = vmul.f32 %v1400_v61, %v1006_v20  ;;  %v5120_v27 = vpop.f32.mrb[1].mxu0  ;;  %v5126_v28 = vpop.f32.mrb[1].mxu1 }
 0x119   : > { %v1155_v29 = vmul.f32 %v1154_v62, %v1054_v21  ;;  %v1239_v30 = vmul.f32 %v1238_v63, %v1054_v21  ;;  %v1323_v31 = vmul.f32 %v1322_v0, %v1054_v21  ;;  %v1407_v33 = vmul.f32 %v1406_v5, %v1054_v21  ;;  %v1009_v15 = vpop.f32.mrb[2].mxu0  ;;  %v1057_v34 = vpop.f32.mrb[2].mxu1 }
 0x11a   : > { %v1150_v18 = vmul.f32 %v1148_v32, %v1009_v15  ;;  %v1234_v19 = vmul.f32 %v1232_v48, %v1009_v15  ;;  %v1318_v17 = vmul.f32 %v1316_v49, %v1009_v15  ;;  %v1402_v35 = vmul.f32 %v1400_v61, %v1009_v15  ;;  %v5121_v36 = vpop.f32.mrb[3].mxu0  ;;  %v5127_v37 = vpop.f32.mrb[3].mxu1 }
 0x11b   : > { %v1157_v38 = vadd.f32 %v1155_v29, %v1149_v22  ;;  %v1241_v39 = vadd.f32 %v1239_v30, %v1233_v23  ;;  %v1325_v40 = vadd.f32 %v1323_v31, %v1317_v25  ;;  %v1409_v41 = vadd.f32 %v1407_v33, %v1401_v26  ;;  %v1062_v25 = vld [vmem:[%s5744_s13 + $0x8] sm:$0xff] }
 0x11c   : > { %v1156_v43 = vmul.f32 %v1154_v62, %v1057_v34  ;;  %v1240_v44 = vmul.f32 %v1238_v63, %v1057_v34  ;;  %v1324_v45 = vmul.f32 %v1322_v0, %v1057_v34  ;;  %v1408_v46 = vmul.f32 %v1406_v5, %v1057_v34  ;;  %v6084_v26 = vld [vmem:[%s5759_s25 + $0x28] sm:$0xff]  }
 0x11d   : > { %v1380_v32 = vmul.f32 %v6050_v24, %v1373_v11  ;;  %v1159_v48 = vadd.f32 %v1157_v38, %v1130_v3  ;;  %v1243_v49 = vadd.f32 %v1241_v39, %v1214_v6  ;;  %v1298_v22 = vadd.f32 %v1296_v10, %v1285_v7  ;;  %v6087_v62 = vld [vmem:[%s5769_s3 + $0x28] sm:$0xff]   ;;  %5139 = vmatpush3.bf16.msra.mxu0 %v6084_v26 }
 0x11e   : > { %v1158_v60 = vadd.f32 %v1156_v43, %v1150_v18  ;;  %v1242_v61 = vadd.f32 %v1240_v44, %v1234_v19  ;;  %v1326_v20 = vadd.f32 %v1324_v45, %v1318_v17  ;;  %v1410_v21 = vadd.f32 %v1408_v46, %v1402_v35  ;;  %5155 = vmatpush3.bf16.msra.mxu1 %v6087_v62 }
 0x11f   : > { %v6080_v23 = vadd.f32 %v1159_v48, %v1061_v42  ;;  %v1382_v14 = vadd.f32 %v1380_v32, %v1369_v47  ;;  %v1327_v24 = vadd.f32 %v1325_v40, %v1298_v22  ;;  %v6091_v3 = vadd.f32 %v1243_v49, %v1061_v42  ;;  %5160 = vmatprep.subr.bf16.mxu0 %v5720_v2 }
 0x120   : > { %v1160_v63 = vadd.f32 %v1158_v60, %v1131_v1  ;;  %v1244_v0 = vadd.f32 %v1242_v61, %v1215_v4  ;;  %v1328_v5 = vadd.f32 %v1326_v20, %v1299_v8  ;;  %5176 = vmatprep.subr.bf16.mxu1 %v5720_v2  ;;  %v1412_v1 = vadd.f32 %v1410_v21, %v1383_v12 }
 0x121   : > { %v1427_v4 = vrot.slane %v6080_v23, 2  ;;  %v1417_v8 = vrot.slane %v6080_v23, 1  ;;  %v6103_v28 = vadd.f32 %v1327_v24, %v1061_v42  ;;  %v1411_v29 = vadd.f32 %v1409_v41, %v1382_v14 }
 0x122   : > { %v1162_v6 = vadd.f32 %v1160_v63, %v1062_v25  ;;  %v6093_v7 = vadd.f32 %v1244_v0, %v1062_v25  ;;  %v6099_v10 = vadd.f32 %v1328_v5, %v1062_v25  ;;  %v1666_v33 = vrot.slane %v6091_v3, 2 }
 0x123   : > { %v1657_v15 = vrot.slane %v6091_v3, 1  ;;  %v6109_v19 = vadd.f32 %v1412_v1, %v1062_v25  ;;  %v6117_v38 = vadd.f32 %v1411_v29, %v1061_v42  ;;  %v1792_v39 = vrot.slane %v6103_v28, 2 }
 0x124   : > { %v1428_v11 = vrot.slane %v1162_v6, 2  ;;  %v1418_v13 = vrot.slane %v1162_v6, 1  ;;  %v1667_v16 = vrot.slane %v6093_v7, 2  ;;  %v1658_v27 = vrot.slane %v6093_v7, 1 }
 0x125   : > { %v1793_v36 = vrot.slane %v6099_v10, 2  ;;  %v1784_v37 = vrot.slane %v6099_v10, 1  ;;  %v1783_v40 = vrot.slane %v6103_v28, 1  ;;  %v1919_v46 = vrot.slane %v6109_v19, 2 }
 0x126   : > { %v1429_v30 = vsel %vm1426_vm5, %v1427_v4, %v1428_v11  ;;  %v1419_v31 = vsel %vm1077_vm4, %v1417_v8, %v1418_v13  ;;  %v1668_v17 = vsel %vm1426_vm5, %v1666_v33, %v1667_v16  ;;  %v1659_v35 = vsel %vm1077_vm4, %v1657_v15, %v1658_v27 }
 0x127   : > { %v5372_v34 = vpack.i.bf16 %v1428_v11, %v1429_v30  ;;  %v5367_v18 = vpack.i.bf16 %v1418_v13, %v1419_v31  ;;  %v5382_v41 = vpack.i.bf16 %v1667_v16, %v1668_v17  ;;  %v5377_v43 = vpack.i.bf16 %v1658_v27, %v1659_v35 }
 0x128   : > { %v1794_v44 = vsel %vm1426_vm5, %v1792_v39, %v1793_v36  ;;  %v1785_v45 = vsel %vm1077_vm4, %v1783_v40, %v1784_v37  ;;  %v1910_v47 = vrot.slane %v6109_v19, 1  ;;  %v1918_v42 = vrot.slane %v6117_v38, 2 }
 0x129   : > { %5373 = vrot.lane.b32.xlu1 %v5372_v34, %s5723_s21  ;;  %5368 = vrot.lane.b32.xlu0 %v5367_v18, %s5724_s22  ;;  %v1909_v32 = vrot.slane %v6117_v38, 1  ;;  %v5392_v48 = vpack.i.bf16 %v1793_v36, %v1794_v44  ;;  %v5387_v49 = vpack.i.bf16 %v1784_v37, %v1785_v45 }
 0x12a   : > { %v1920_v60 = vsel %vm1426_vm5, %v1918_v42, %v1919_v46 }
 0x12b   : > { %v1911_v61 = vsel %vm1077_vm4, %v1909_v32, %v1910_v47  ;;  %v5402_v20 = vpack.i.bf16 %v1919_v46, %v1920_v60 }
 0x12c   : > { %v5397_v21 = vpack.i.bf16 %v1910_v47, %v1911_v61 }
 0x12d   : > { %5383 = vrot.lane.b32.xlu1 %v5382_v41, %s5723_s21  ;;  %5378 = vrot.lane.b32.xlu0 %v5377_v43, %s5724_s22 }
 0x131   : > { %5393 = vrot.lane.b32.xlu1 %v5392_v48, %s5723_s21  ;;  %5388 = vrot.lane.b32.xlu0 %v5387_v49, %s5724_s22 }
 0x135   : > { %5403 = vrot.lane.b32.xlu1 %v5402_v20, %s5723_s21  ;;  %5398 = vrot.lane.b32.xlu0 %v5397_v21, %s5724_s22 }
 0x19b   : > { %v5374_v22 = vpop.permute.xlu1 %5373  ;;  %v5369_v25 = vpop.permute.xlu0 %5368 }
 0x19c   : > { %v5376_v63 = vunpack.i.h.bf16 %v5374_v22  ;;  %v5375_v0 = vunpack.i.l.bf16 %v5374_v22  ;;  %v5371_v5 = vunpack.i.h.bf16 %v5369_v25  ;;  %v5370_v12 = vunpack.i.l.bf16 %v5369_v25 }
 0x19e   : > { %v1438_v14 = vsel %vm1436_vm6, %v1162_v6, %v5371_v5  ;;  %v1437_v24 = vsel %vm1436_vm6, %v6080_v23, %v5370_v12 }
 0x19f   : > { %v1441_v1 = vsel %vm1439_vm7, %v1438_v14, %v5376_v63  ;;  %v1440_v4 = vsel %vm1439_vm7, %v1437_v24, %v5375_v0  ;;  %v5379_v23 = vpop.permute.xlu0 %5378  ;;  %v5384_v6 = vpop.permute.xlu1 %5383  ;;  %v6268_v0 = vld [vmem:[%s5764_s29] ss:$0 sm:$0xff] }
 0x1a0   : > { %v1442_v8 = vpack.c.bf16 %v1441_v1, %v1440_v4  ;;  %v5381_v11 = vunpack.i.h.bf16 %v5379_v23  ;;  %v5380_v13 = vunpack.i.l.bf16 %v5379_v23  ;;  %v5386_v16 = vunpack.i.h.bf16 %v5384_v6 }
 0x1a1   : > { %v5385_v27 = vunpack.i.l.bf16 %v5384_v6 }
 0x1a2   : > { %5141 = vmatmul.mubr.msk.bf16.vlgmr.msra.gmra.mrb[4].mxu0 %vm1498_vm8, %v1442_v8  ;;  %5157 = vmatmul.mubr.msk.bf16.vlgmr.msra.gmra.mrb[4].mxu1 %vm1498_vm8, %v1442_v8  ;;  %v1676_v29 = vsel %vm1436_vm6, %v6093_v7, %v5381_v11  ;;  %v1675_v30 = vsel %vm1436_vm6, %v6091_v3, %v5380_v13 }
 0x1a3   : > { %5161 = vmatpush3.bf16.msra.mxu0 %v5943_v50  ;;  %5177 = vmatpush3.bf16.msra.mxu1 %v5946_v51  ;;  %v1678_v31 = vsel %vm1439_vm7, %v1676_v29, %v5386_v16  ;;  %v1677_v33 = vsel %vm1439_vm7, %v1675_v30, %v5385_v27  ;;  %v5389_v3 = vpop.permute.xlu0 %5388  ;;  %v5394_v15 = vpop.permute.xlu1 %5393 }
 0x1a4   : > { %5162 = vmatprep.subr.bf16.mxu0 %v5720_v2  ;;  %5178 = vmatprep.subr.bf16.mxu1 %v5720_v2  ;;  %v1679_v7 = vpack.c.bf16 %v1678_v31, %v1677_v33  ;;  %v5391_v34 = vunpack.i.h.bf16 %v5389_v3  ;;  %v5390_v18 = vunpack.i.l.bf16 %v5389_v3  ;;  %v5396_v17 = vunpack.i.h.bf16 %v5394_v15 }
 0x1a5   : > { %5172 = vmatprep.mubr.msk.bf16.mxu0 %vm5721_vm2, %v5720_v2  ;;  %5188 = vmatprep.mubr.msk.bf16.mxu1 %vm5721_vm2, %v5720_v2  ;;  %v5395_v35 = vunpack.i.l.bf16 %v5394_v15 }
 0x1a6   : > { %v1802_v36 = vsel %vm1436_vm6, %v6099_v10, %v5391_v34  ;;  %v1801_v37 = vsel %vm1436_vm6, %v6103_v28, %v5390_v18 }
 0x1a7   : > { %5163 = vmatpush3.bf16.msra.mxu0 %v5951_v52  ;;  %5179 = vmatpush3.bf16.msra.mxu1 %v5954_v53  ;;  %v1804_v39 = vsel %vm1439_vm7, %v1802_v36, %v5396_v17  ;;  %v1803_v40 = vsel %vm1439_vm7, %v1801_v37, %v5395_v35 }
 0x1a8   : > { %5164 = vmatprep.subr.bf16.mxu0 %v5720_v2  ;;  %5180 = vmatprep.subr.bf16.mxu1 %v5720_v2  ;;  %v1805_v10 = vpack.c.bf16 %v1804_v39, %v1803_v40 }
 0x1ab   : > { %5165 = vmatpush3.bf16.msra.mxu0 %v5959_v54  ;;  %5181 = vmatpush3.bf16.msra.mxu1 %v5962_v55 }
 0x1ac   : > { %5166 = vmatprep.subr.bf16.mxu0 %v5720_v2  ;;  %5182 = vmatprep.subr.bf16.mxu1 %v5720_v2 }
 0x1af   : > { %5167 = vmatpush3.bf16.msra.mxu0 %v5971_v56  ;;  %5183 = vmatpush3.bf16.msra.mxu1 %v5974_v57 }
 0x1b0   : > { %5168 = vmatprep.subr.bf16.mxu0 %v5720_v2  ;;  %5184 = vmatprep.subr.bf16.mxu1 %v5720_v2 }
 0x1b3   : > { %5169 = vmatpush3.bf16.msra.mxu0 %v5981_v58  ;;  %5185 = vmatpush3.bf16.msra.mxu1 %v5984_v59 }
 0x1b4   : > { %5170 = vmatprep.subr.bf16.mxu0 %v5720_v2  ;;  %5186 = vmatprep.subr.bf16.mxu1 %v5720_v2 }
 0x1b7   : > { %5171 = vmatpush3.bf16.msra.mxu0 %v6084_v26  ;;  %5187 = vmatpush3.bf16.msra.mxu1 %v6087_v62 }
 0x1b8   : > { %5192 = vmatprep.subr.bf16.mxu0 %v5720_v2  ;;  %5208 = vmatprep.subr.bf16.mxu1 %v5720_v2 }
 0x1ba   : > { %5173 = vmatmul.mubr.msk.bf16.vlgmr.msra.gmra.mrb[8].mxu0 %vm1498_vm8, %v1679_v7  ;;  %5189 = vmatmul.mubr.msk.bf16.vlgmr.msra.gmra.mrb[8].mxu1 %vm1498_vm8, %v1679_v7 }
 0x1bb   : > { %5193 = vmatpush3.bf16.msra.mxu0 %v5943_v50  ;;  %5209 = vmatpush3.bf16.msra.mxu1 %v5946_v51 }
 0x1bc   : > { %5194 = vmatprep.subr.bf16.mxu0 %v5720_v2  ;;  %5210 = vmatprep.subr.bf16.mxu1 %v5720_v2 }
 0x1bd   : > { %5204 = vmatprep.mubr.msk.bf16.mxu0 %vm5721_vm2, %v5720_v2  ;;  %5220 = vmatprep.mubr.msk.bf16.mxu1 %vm5721_vm2, %v5720_v2 }
 0x1bf   : > { %5195 = vmatpush3.bf16.msra.mxu0 %v5951_v52  ;;  %5211 = vmatpush3.bf16.msra.mxu1 %v5954_v53 }
 0x1c0   : > { %5196 = vmatprep.subr.bf16.mxu0 %v5720_v2  ;;  %5212 = vmatprep.subr.bf16.mxu1 %v5720_v2 }
 0x1c3   : > { %5197 = vmatpush3.bf16.msra.mxu0 %v5959_v54  ;;  %5213 = vmatpush3.bf16.msra.mxu1 %v5962_v55 }
 0x1c4   : > { %5198 = vmatprep.subr.bf16.mxu0 %v5720_v2  ;;  %5214 = vmatprep.subr.bf16.mxu1 %v5720_v2 }
 0x1c7   : > { %5199 = vmatpush3.bf16.msra.mxu0 %v5971_v56  ;;  %5215 = vmatpush3.bf16.msra.mxu1 %v5974_v57 }
 0x1c8   : > { %5200 = vmatprep.subr.bf16.mxu0 %v5720_v2  ;;  %5216 = vmatprep.subr.bf16.mxu1 %v5720_v2 }
 0x1cb   : > { %5201 = vmatpush3.bf16.msra.mxu0 %v5981_v58  ;;  %5217 = vmatpush3.bf16.msra.mxu1 %v5984_v59 }
 0x1cc   : > { %5202 = vmatprep.subr.bf16.mxu0 %v5720_v2  ;;  %5218 = vmatprep.subr.bf16.mxu1 %v5720_v2 }
 0x1cf   : > { %5203 = vmatpush3.bf16.msra.mxu0 %v6084_v26  ;;  %5219 = vmatpush3.bf16.msra.mxu1 %v6087_v62 }
 0x1d0   : > { %5224 = vmatprep.subr.bf16.mxu0 %v5720_v2  ;;  %5240 = vmatprep.subr.bf16.mxu1 %v5720_v2 }
 0x1d2   : > { %5205 = vmatmul.mubr.msk.bf16.vlgmr.msra.gmra.mrb[12].mxu0 %vm1498_vm8, %v1805_v10  ;;  %5221 = vmatmul.mubr.msk.bf16.vlgmr.msra.gmra.mrb[12].mxu1 %vm1498_vm8, %v1805_v10 }
 0x1d3   : > { %5225 = vmatpush3.bf16.msra.mxu0 %v5943_v50  ;;  %5241 = vmatpush3.bf16.msra.mxu1 %v5946_v51  ;;  %v5399_v50 = vpop.permute.xlu0 %5398  ;;  %v5404_v51 = vpop.permute.xlu1 %5403 }
 0x1d4   : > { %5226 = vmatprep.subr.bf16.mxu0 %v5720_v2  ;;  %5242 = vmatprep.subr.bf16.mxu1 %v5720_v2  ;;  %v5401_v28 = vunpack.i.h.bf16 %v5399_v50  ;;  %v5400_v41 = vunpack.i.l.bf16 %v5399_v50 }
 0x1d5   : > { %5236 = vmatprep.mubr.msk.bf16.mxu0 %vm5721_vm2, %v5720_v2  ;;  %5252 = vmatprep.mubr.msk.bf16.mxu1 %vm5721_vm2, %v5720_v2 }
 0x1d7   : > { %5227 = vmatpush3.bf16.msra.mxu0 %v5951_v52  ;;  %5243 = vmatpush3.bf16.msra.mxu1 %v5954_v53  ;;  %v5406_v52 = vunpack.i.h.bf16 %v5404_v51  ;;  %v5405_v53 = vunpack.i.l.bf16 %v5404_v51 }
 0x1d8   : > { %5228 = vmatprep.subr.bf16.mxu0 %v5720_v2  ;;  %5244 = vmatprep.subr.bf16.mxu1 %v5720_v2 }
 0x1db   : > { %5229 = vmatpush3.bf16.msra.mxu0 %v5959_v54  ;;  %5245 = vmatpush3.bf16.msra.mxu1 %v5962_v55  ;;  %v1928_v54 = vsel %vm1436_vm6, %v6109_v19, %v5401_v28  ;;  %v1927_v55 = vsel %vm1436_vm6, %v6117_v38, %v5400_v41  ;;  %v6263_v38 = vld [vmem:[%s5774_s8] ss:$0 sm:$0xff] }
 0x1dc   : > { %5230 = vmatprep.subr.bf16.mxu0 %v5720_v2  ;;  %5246 = vmatprep.subr.bf16.mxu1 %v5720_v2 }
 0x1df   : > { %5231 = vmatpush3.bf16.msra.mxu0 %v5971_v56  ;;  %5247 = vmatpush3.bf16.msra.mxu1 %v5974_v57  ;;  %v1930_v56 = vsel %vm1439_vm7, %v1928_v54, %v5406_v52  ;;  %v1929_v57 = vsel %vm1439_vm7, %v1927_v55, %v5405_v53 }
 0x1e0   : > { %5232 = vmatprep.subr.bf16.mxu0 %v5720_v2  ;;  %5248 = vmatprep.subr.bf16.mxu1 %v5720_v2  ;;  %v1931_v19 = vpack.c.bf16 %v1930_v56, %v1929_v57 }
 0x1e3   : > { %5233 = vmatpush3.bf16.msra.mxu0 %v5981_v58  ;;  %5249 = vmatpush3.bf16.msra.mxu1 %v5984_v59  ;;  %v5449_v58 = vld [vmem:[%s5779_s14] sm:$0xff]   ;;  %v5450_v59 = vld [vmem:[%s5779_s14 + $0x8] sm:$0xff]  }
 0x1e4   : > { %5234 = vmatprep.subr.bf16.mxu0 %v5720_v2  ;;  %5250 = vmatprep.subr.bf16.mxu1 %v5720_v2 }
 0x1e7   : > { %5235 = vmatpush3.bf16.msra.mxu0 %v6084_v26  ;;  %5251 = vmatpush3.bf16.msra.mxu1 %v6087_v62  ;;  %v5451_v26 = vld [vmem:[%s5779_s14 + $0x10] sm:$0xff]   ;;  %v5452_v62 = vld [vmem:[%s5779_s14 + $0x18] sm:$0xff]  }
 0x1e8   : > { %5256 = vmatprep.subr.bf16.mxu0 %v5720_v2  ;;  %5268 = vmatprep.subr.bf16.mxu1 %v5720_v2 }
 0x1ea   : > { %5237 = vmatmul.mubr.msk.bf16.vlgmr.msra.gmra.mrb[16].mxu0 %vm1498_vm8, %v1931_v19  ;;  %5253 = vmatmul.mubr.msk.bf16.vlgmr.msra.gmra.mrb[16].mxu1 %vm1498_vm8, %v1931_v19 }
 0x1eb   : > { %5264 = vmatprep.mubr.msk.bf16.mxu0 %vm5721_vm2, %v5720_v2  ;;  %5274 = vmatprep.mubr.msk.bf16.mxu1 %vm5721_vm2, %v5720_v2 }
 0x1ec   : > { %5257 = vmatpush3.bf16.msra.mxu0 %v5449_v58 }
 0x1ed   : > { %5258 = vmatprep.subr.bf16.mxu0 %v5720_v2 }
 0x1f0   : > { %5259 = vmatpush3.bf16.msra.mxu0 %v5450_v59 }
 0x1f1   : > { %5260 = vmatprep.subr.bf16.mxu0 %v5720_v2 }
 0x1f4   : > { %5261 = vmatpush3.bf16.msra.mxu0 %v5451_v26 }
 0x1f5   : > { %5262 = vmatprep.subr.bf16.mxu0 %v5720_v2 }
 0x1f8   : > { %5263 = vmatpush3.bf16.msra.mxu0 %v5452_v62 }
 0x1f9   : > { %2520 = vmatprep.subr.bf16.mxu0 %v5722_v9 }
 0x275   : > { %v1536_v43 = vpop.f32.mrb[4].mxu0  ;;  %v1632_v44 = vpop.f32.mrb[4].mxu1 }
 0x276   : > { %v1633_v45 = vadd.f32 %v6263_v38, %v1632_v44  ;;  %v5142_v46 = vpop.f32.mrb[5].mxu0  ;;  %v5158_v47 = vpop.f32.mrb[5].mxu1  ;;  %v1537_v23 = vadd.f32 %v6268_v0, %v1536_v43 }
 0x277   : > { %v1539_v42 = vpop.f32.mrb[6].mxu0  ;;  %v1635_v32 = vpop.f32.mrb[6].mxu1 }
 0x278   : > { %v4790_v48 = vmul.f32 -1.442695, %v1633_v45  ;;  %v1636_v49 = vadd.f32 %v6263_v38, %v1635_v32  ;;  %v5143_v60 = vpop.f32.mrb[7].mxu0  ;;  %v5159_v61 = vpop.f32.mrb[7].mxu1  ;;  %v1540_v30 = vadd.f32 %v6268_v0, %v1539_v42 }
 0x27a   : > { %5589 = vpow2.f32 %v4790_v48  ;;  %v4791_v20 = vmul.f32 -1.442695, %v1636_v49 }
 0x27c   : > { %5591 = vpow2.f32 %v4791_v20 }
 0x284   : > { %v5590_v21 = vpop.eup %5589 }
 0x285   : > { %v1645_v22 = vadd.f32 1.0, %v5590_v21 }
 0x286   : > { %v5592_v25 = vpop.eup %5591 }
 0x287   : > { %5593 = vrcp.f32 %v1645_v22  ;;  %v1646_v63 = vadd.f32 1.0, %v5592_v25 }
 0x289   : > { %5595 = vrcp.f32 %v1646_v63 }
 0x28d   : > { %v1717_v5 = vpop.f32.mrb[8].mxu0  ;;  %v1758_v12 = vpop.f32.mrb[8].mxu1 }
 0x28e   : > { %v1759_v14 = vadd.f32 %v6263_v38, %v1758_v12  ;;  %v5174_v24 = vpop.f32.mrb[9].mxu0  ;;  %v5190_v1 = vpop.f32.mrb[9].mxu1  ;;  %v1718_v50 = vadd.f32 %v6268_v0, %v1717_v5 }
 0x28f   : > { %v1720_v4 = vpop.f32.mrb[10].mxu0  ;;  %v1761_v8 = vpop.f32.mrb[10].mxu1 }
 0x290   : > { %v4794_v6 = vmul.f32 -1.442695, %v1759_v14  ;;  %v1762_v11 = vadd.f32 %v6263_v38, %v1761_v8  ;;  %v5175_v13 = vpop.f32.mrb[11].mxu0  ;;  %v5191_v16 = vpop.f32.mrb[11].mxu1  ;;  %v1721_v54 = vadd.f32 %v6268_v0, %v1720_v4 }
 0x291   : > { %v5594_v27 = vpop.eup %5593 }
 0x292   : > { %v1651_v29 = vadd.f32 %v5594_v27, %v1537_v23  ;;  %5597 = vpow2.f32 %v4794_v6  ;;  %v4795_v31 = vmul.f32 -1.442695, %v1762_v11 }
 0x293   : > { %v5596_v33 = vpop.eup %5595 }
 0x294   : > { %v1652_v7 = vadd.f32 %v5596_v33, %v1540_v30  ;;  %5599 = vpow2.f32 %v4795_v31  ;;  %v1653_v55 = vmax.f32 %v1651_v29, 0.0 }
 0x296   : > { %v1654_v58 = vmax.f32 %v1652_v7, 0.0  ;;  %v2033_v62 = vmul.f32 0.25, %v1653_v55 }
 0x298   : > { %v2034_v45 = vmul.f32 0.25, %v1654_v58 }
 0x29c   : > { %v5598_v3 = vpop.eup %5597 }
 0x29d   : > { %v1771_v15 = vadd.f32 1.0, %v5598_v3 }
 0x29e   : > { %v5600_v34 = vpop.eup %5599 }
 0x29f   : > { %5601 = vrcp.f32 %v1771_v15  ;;  %v1772_v18 = vadd.f32 1.0, %v5600_v34 }
 0x2a1   : > { %5603 = vrcp.f32 %v1772_v18 }
 0x2a5   : > { %v1843_v17 = vpop.f32.mrb[12].mxu0  ;;  %v1884_v35 = vpop.f32.mrb[12].mxu1 }
 0x2a6   : > { %v1885_v36 = vadd.f32 %v6263_v38, %v1884_v35  ;;  %v5206_v37 = vpop.f32.mrb[13].mxu0  ;;  %v5222_v39 = vpop.f32.mrb[13].mxu1  ;;  %v1844_v12 = vadd.f32 %v6268_v0, %v1843_v17 }
 0x2a7   : > { %v1846_v40 = vpop.f32.mrb[14].mxu0  ;;  %v1887_v10 = vpop.f32.mrb[14].mxu1 }
 0x2a8   : > { %v4798_v51 = vmul.f32 -1.442695, %v1885_v36  ;;  %v1888_v28 = vadd.f32 %v6263_v38, %v1887_v10  ;;  %v5207_v41 = vpop.f32.mrb[15].mxu0  ;;  %v5223_v52 = vpop.f32.mrb[15].mxu1  ;;  %v1847_v6 = vadd.f32 %v6268_v0, %v1846_v40 }
 0x2a9   : > { %v5602_v53 = vpop.eup %5601 }
 0x2aa   : > { %v1777_v56 = vadd.f32 %v5602_v53, %v1718_v50  ;;  %5605 = vpow2.f32 %v4798_v51  ;;  %v4799_v57 = vmul.f32 -1.442695, %v1888_v28  ;;  %v5453_v53 = vld [vmem:[%s5784_s19] sm:$0xff]  }
 0x2ab   : > { %v5604_v19 = vpop.eup %5603  ;;  %5269 = vmatpush3.bf16.msra.mxu1 %v5453_v53 }
 0x2ac   : > { %v1779_v59 = vmax.f32 %v1777_v56, 0.0  ;;  %v1778_v26 = vadd.f32 %v5604_v19, %v1721_v54  ;;  %5607 = vpow2.f32 %v4799_v57  ;;  %v5454_v54 = vld [vmem:[%s5784_s19 + $0x8] sm:$0xff]   ;;  %5270 = vmatprep.subr.bf16.mxu1 %v5720_v2 }
 0x2ae   : > { %v2035_v43 = vmul.f32 0.25, %v1779_v59  ;;  %v1780_v44 = vmax.f32 %v1778_v26, 0.0 }
 0x2af   : > { %5271 = vmatpush3.bf16.msra.mxu1 %v5454_v54 }
 0x2b0   : > { %v2036_v46 = vmul.f32 0.25, %v1780_v44  ;;  %v2037_v47 = vadd.f32 %v2035_v43, %v2033_v62  ;;  %5272 = vmatprep.subr.bf16.mxu1 %v5720_v2 }
 0x2b2   : > { %v2038_v42 = vadd.f32 %v2036_v46, %v2034_v45 }
 0x2b4   : > { %v5606_v32 = vpop.eup %5605 }
 0x2b5   : > { %v1897_v48 = vadd.f32 1.0, %v5606_v32 }
 0x2b6   : > { %v5608_v49 = vpop.eup %5607 }
 0x2b7   : > { %5609 = vrcp.f32 %v1897_v48  ;;  %v1898_v60 = vadd.f32 1.0, %v5608_v49 }
 0x2b9   : > { %5611 = vrcp.f32 %v1898_v60 }
 0x2bd   : > { %v1969_v61 = vpop.f32.mrb[16].mxu0  ;;  %v2010_v20 = vpop.f32.mrb[16].mxu1 }
 0x2be   : > { %v2011_v21 = vadd.f32 %v6263_v38, %v2010_v20  ;;  %v5238_v22 = vpop.f32.mrb[17].mxu0  ;;  %v5254_v25 = vpop.f32.mrb[17].mxu1  ;;  %v1970_v18 = vadd.f32 %v6268_v0, %v1969_v61 }
 0x2bf   : > { %v1972_v63 = vpop.f32.mrb[18].mxu0  ;;  %v2013_v5 = vpop.f32.mrb[18].mxu1 }
 0x2c0   : > { %v4802_v14 = vmul.f32 -1.442695, %v2011_v21  ;;  %v2014_v24 = vadd.f32 %v6263_v38, %v2013_v5  ;;  %v5239_v1 = vpop.f32.mrb[19].mxu0  ;;  %v5255_v4 = vpop.f32.mrb[19].mxu1  ;;  %v1973_v36 = vadd.f32 %v6268_v0, %v1972_v63  ;;  %v5455_v0 = vld [vmem:[%s5784_s19 + $0x10] sm:$0xff]   ;;  %v5456_v5 = vld [vmem:[%s5794_s30] sm:$0xff]  }
 0x2c1   : > { %v5610_v8 = vpop.eup %5609  ;;  %5273 = vmatpush3.bf16.msra.mxu1 %v5455_v0  ;;  %v6310_v1 = vld [vmem:[%s5814_s27] sm:$0xff]  }
 0x2c2   : > { %v1903_v23 = vadd.f32 %v5610_v8, %v1844_v12  ;;  %5613 = vpow2.f32 %v4802_v14  ;;  %v4803_v11 = vmul.f32 -1.442695, %v2014_v24  ;;  %5278 = vmatprep.subr.bf16.mxu1 %v5720_v2  ;;  %v5457_v14 = vld [vmem:[%s5794_s30 + $0x8] sm:$0xff]   ;;  %v5458_v24 = vld [vmem:[%s5794_s30 + $0x10] sm:$0xff]   ;;  %v6313_v4 = vld [vmem:[%s5824_s12] sm:$0xff]  }
 0x2c3   : > { %v5612_v13 = vpop.eup %5611  ;;  %v6318_v8 = vld [vmem:[%s5814_s27 + $0x8] sm:$0xff]  }
 0x2c4   : > { %v1905_v16 = vmax.f32 %v1903_v23, 0.0  ;;  %v1904_v27 = vadd.f32 %v5612_v13, %v1847_v6  ;;  %5615 = vpow2.f32 %v4803_v11  ;;  %v6321_v23 = vld [vmem:[%s5824_s12 + $0x8] sm:$0xff]   ;;  %v6328_v6 = vld [vmem:[%s5814_s27 + $0x10] sm:$0xff]   ;;  %v6338_v13 = vld [vmem:[%s5814_s27 + $0x18] sm:$0xff]  }
 0x2c5   : > { %v6331_v11 = vld [vmem:[%s5824_s12 + $0x10] sm:$0xff]  }
 0x2c6   : > { %v2039_v29 = vmul.f32 0.25, %v1905_v16  ;;  %v1906_v30 = vmax.f32 %v1904_v27, 0.0  ;;  %v6341_v16 = vld [vmem:[%s5824_s12 + $0x18] sm:$0xff]   ;;  %v6348_v27 = vld [vmem:[%s5814_s27 + $0x20] sm:$0xff]  }
 0x2c8   : > { %v2040_v31 = vmul.f32 0.25, %v1906_v30  ;;  %v2041_v33 = vadd.f32 %v2039_v29, %v2037_v47  ;;  %v6351_v29 = vld [vmem:[%s5824_s12 + $0x20] sm:$0xff]   ;;  %v6358_v30 = vld [vmem:[%s5814_s27 + $0x28] sm:$0xff]  }
 0x2ca   : > { %v2042_v7 = vadd.f32 %v2040_v31, %v2038_v42  ;;  %v6361_v31 = vld [vmem:[%s5824_s12 + $0x28] sm:$0xff]  }
 0x2cc   : > { %v5614_v3 = vpop.eup %5613 }
 0x2cd   : > { %v2023_v15 = vadd.f32 1.0, %v5614_v3  ;;  %v6378_v3 = vld [vmem:[%s5814_s27 + $0x38] sm:$0xff]  }
 0x2ce   : > { %v5616_v38 = vpop.eup %5615 }
 0x2cf   : > { %5617 = vrcp.f32 %v2023_v15  ;;  %v2024_v34 = vadd.f32 1.0, %v5616_v38  ;;  %v6381_v15 = vld [vmem:[%s5824_s12 + $0x38] sm:$0xff]   ;;  %v6388_v38 = vld [vmem:[%s5814_s27 + $0x40] sm:$0xff]  }
 0x2d1   : > { %5619 = vrcp.f32 %v2024_v34  ;;  %v6391_v34 = vld [vmem:[%s5824_s12 + $0x40] sm:$0xff]  }
 0x2d9   : > { %v5618_v17 = vpop.eup %5617 }
 0x2da   : > { %v2029_v35 = vadd.f32 %v5618_v17, %v1970_v18  ;;  %v6398_v18 = vld [vmem:[%s5814_s27 + $0x48] sm:$0xff]  }
 0x2db   : > { %v5620_v37 = vpop.eup %5619  ;;  %v6401_v17 = vld [vmem:[%s5824_s12 + $0x48] sm:$0xff]  }
 0x2dc   : > { %v2031_v39 = vmax.f32 %v2029_v35, 0.0  ;;  %v2030_v40 = vadd.f32 %v5620_v37, %v1973_v36  ;;  %v6408_v35 = vld [vmem:[%s5814_s27 + $0x50] sm:$0xff]  }
 0x2dd   : > { %v6411_v36 = vld [vmem:[%s5824_s12 + $0x50] sm:$0xff]  }
 0x2de   : > { %v2032_v10 = vmax.f32 %v2030_v40, 0.0  ;;  %v2043_v50 = vmul.f32 0.25, %v2031_v39 }
 0x2e0   : > { %v2044_v51 = vmul.f32 0.25, %v2032_v10  ;;  %v2045_v28 = vadd.f32 %v2043_v50, %v2041_v33  ;;  %v6368_v33 = vld [vmem:[%s5814_s27 + $0x30] sm:$0xff]   ;;  %v4814_v50 = vld [vmem:[%s6984_s23] ss:$0 sm:$0xff]  ;;  %s6998_s23 = sld [smem:[#allocation17_spill]] }
 0x2e2   : > { %v2046_v41 = vadd.f32 %v2044_v51, %v2042_v7  ;;  %v6371_v7 = vld [vmem:[%s5824_s12 + $0x30] sm:$0xff]  }
 0x2e4   : > { %v2047_v52 = vpack.c.bf16 %v2046_v41, %v2045_v28 }
 0x2e6   : > { %5265 = vmatmul.mubr.msk.bf16.vlgmr.msra.gmra.mrb[20].mxu0 %vm1439_vm7, %v2047_v52 }
 0x2e7   : > { %2521 = vmatpush1.bf16.msra.mxu0 %v6310_v1 }
 0x2e8   : > { %2522 = vmatprep.subr.bf16.mxu0 %v5722_v9 }
 0x2eb   : > { %2523 = vmatpush1.bf16.msra.mxu0 %v6318_v8 }
 0x2ec   : > { %2524 = vmatprep.subr.bf16.mxu0 %v5722_v9 }
 0x2ef   : > { %2525 = vmatpush1.bf16.msra.mxu0 %v6328_v6 }
 0x2f0   : > { %2526 = vmatprep.subr.bf16.mxu0 %v5722_v9 }
 0x2f3   : > { %2527 = vmatpush1.bf16.msra.mxu0 %v6338_v13 }
 0x2f4   : > { %2528 = vmatprep.subr.bf16.mxu0 %v5722_v9 }
 0x2f7   : > { %2529 = vmatpush1.bf16.msra.mxu0 %v6348_v27 }
 0x2f8   : > { %2530 = vmatprep.subr.bf16.mxu0 %v5722_v9 }
 0x2fb   : > { %2531 = vmatpush1.bf16.msra.mxu0 %v6358_v30 }
 0x2fc   : > { %2532 = vmatprep.subr.bf16.mxu0 %v5722_v9 }
 0x2ff   : > { %2533 = vmatpush1.bf16.msra.mxu0 %v6368_v33 }
 0x300   : > { %2534 = vmatprep.subr.bf16.mxu0 %v5722_v9 }
 0x303   : > { %2535 = vmatpush1.bf16.msra.mxu0 %v6378_v3 }
 0x304   : > { %2536 = vmatprep.subr.bf16.mxu0 %v5722_v9 }
 0x307   : > { %2537 = vmatpush1.bf16.msra.mxu0 %v6388_v38 }
 0x308   : > { %2538 = vmatprep.subr.bf16.mxu0 %v5722_v9 }
 0x30b   : > { %2539 = vmatpush1.bf16.msra.mxu0 %v6398_v18 }
 0x30c   : > { %2540 = vmatprep.subr.bf16.mxu0 %v5722_v9 }
 0x30f   : > { %2541 = vmatpush1.bf16.msra.mxu0 %v6408_v35 }
 0x310   : > { %2542 = vmatprep.subr.bf16.mxu0 %v5722_v9 }
 0x3b9   : > { %v2117_v55 = vpop.f32.mrb[20].mxu0 }
 0x3ba   : > { %v2124_v56 = vmax.f32 %v2117_v55, 0.0  ;;  %v5266_v57 = vpop.f32.mrb[21].mxu0 }
 0x3bb   : > { %v2120_v19 = vpop.f32.mrb[22].mxu0 }
 0x3bc   : > { %v2125_v58 = vmax.f32 %v2120_v19, 0.0  ;;  %v5267_v59 = vpop.f32.mrb[23].mxu0  ;;  %v2128_v26 = vrot.slane %v2124_v56, 1  ;;  %v2137_v62 = vrot.slane %v2124_v56, 2 }
 0x3bd   : > { %v4809_v59 = vld [vmem:[%s6985_s28] ss:$0 sm:$0xff] }
 0x3be   : > { %v2129_v43 = vrot.slane %v2125_v58, 1  ;;  %v2138_v44 = vrot.slane %v2125_v58, 2 }
 0x3c0   : > { %v2139_v45 = vsel %vm1426_vm5, %v2137_v62, %v2138_v44  ;;  %v2130_v46 = vsel %vm1077_vm4, %v2128_v26, %v2129_v43 }
 0x3c1   : > { %v5412_v47 = vpack.i.bf16 %v2138_v44, %v2139_v45  ;;  %v5407_v42 = vpack.i.bf16 %v2129_v43, %v2130_v46  ;;  %v4824_v46 = vld [vmem:[%s6986_s2 + $0x1] ss:$0 sm:$0xff] }
 0x3c3   : > { %5413 = vrot.lane.b32.xlu1 %v5412_v47, %s5724_s22  ;;  %5408 = vrot.lane.b32.xlu0 %v5407_v42, %s5725_s26  ;;  %v4821_v47 = vld [vmem:[%s6986_s2] ss:$0 sm:$0xff]  ;;  %v4832_v42 = vld [vmem:[%s6986_s2 + $0x3] ss:$0 sm:$0xff] }
 0x435   : > { %v5414_v32 = vpop.permute.xlu1 %5413  ;;  %v5409_v48 = vpop.permute.xlu0 %5408 }
 0x436   : > { %v5416_v49 = vunpack.i.h.bf16 %v5414_v32  ;;  %v5415_v60 = vunpack.i.l.bf16 %v5414_v32  ;;  %v5411_v61 = vunpack.i.h.bf16 %v5409_v48  ;;  %v5410_v20 = vunpack.i.l.bf16 %v5409_v48 }
 0x438   : > { %v2148_v21 = vsel %vm2146_vm9, %v2125_v58, %v5411_v61  ;;  %v2147_v22 = vsel %vm2146_vm9, %v2124_v56, %v5410_v20  ;;  %v4822_v61 = vld [vmem:[%s6987_s7] ss:$0 sm:$0xff]  ;;  %v6428_v20 = vld [vmem:[%s5814_s27 + $0x58] sm:$0xff]  }
 0x439   : > { %v2150_v25 = vsel %vm1436_vm6, %v2148_v21, %v5416_v49  ;;  %v2149_v63 = vsel %vm1436_vm6, %v2147_v22, %v5415_v60  ;;  %v4826_v49 = vld [vmem:[%s6987_s7 + $0x1] ss:$0 sm:$0xff]  ;;  %v4828_v60 = vld [vmem:[%s6986_s2 + $0x2] ss:$0 sm:$0xff]  ;;  %v6431_v21 = vld [vmem:[%s5824_s12 + $0x58] sm:$0xff]   ;;  %2543 = vmatpush1.bf16.msra.mxu0 %v6428_v20 }
 0x43a   : > { %v2151_v12 = vpack.c.bf16 %v2150_v25, %v2149_v63  ;;  %2744 = vmatprep.subr.bf16.mxu0 %v5722_v9 }
 0x43c   : > { %5275 = vmatmul.mubr.msk.bf16.vlgmr.msra.gmra.mrb[20].mxu1 %vm2183_vm10, %v2151_v12 }
 0x43d   : > { %5279 = vmatpush3.bf16.msra.mxu1 %v5456_v5  ;;  %5284 = vmatprep.mubr.msk.bf16.mxu1 %vm5721_vm2, %v5720_v2 }
 0x43e   : > { %5280 = vmatprep.subr.bf16.mxu1 %v5720_v2 }
 0x441   : > { %5281 = vmatpush3.bf16.msra.mxu1 %v5457_v14 }
 0x442   : > { %5282 = vmatprep.subr.bf16.mxu1 %v5720_v2 }
 0x445   : > { %5283 = vmatpush3.bf16.msra.mxu1 %v5458_v24  ;;  %v4830_v24 = vld [vmem:[%s6987_s7 + $0x2] ss:$0 sm:$0xff] }
 0x446   : > { %2664 = vmatprep.subr.bf16.mxu1 %v5722_v9 }
 0x448   : > { %5285 = vmatmul.mubr.msk.bf16.vlgmr.msra.gmra.mrb[24].mxu1 %vm2183_vm10, %v2151_v12  ;;  %v4834_v12 = vld [vmem:[%s6987_s7 + $0x3] ss:$0 sm:$0xff] }
 0x449   : > { %2665 = vmatpush1.bf16.msra.mxu1 %v6313_v4 }
 0x44a   : > { %2666 = vmatprep.subr.bf16.mxu1 %v5722_v9 }
 0x44d   : > { %2667 = vmatpush1.bf16.msra.mxu1 %v6321_v23 }
 0x44e   : > { %2668 = vmatprep.subr.bf16.mxu1 %v5722_v9 }
 0x451   : > { %2669 = vmatpush1.bf16.msra.mxu1 %v6331_v11 }
 0x452   : > { %2670 = vmatprep.subr.bf16.mxu1 %v5722_v9 }
 0x455   : > { %2671 = vmatpush1.bf16.msra.mxu1 %v6341_v16 }
 0x456   : > { %2672 = vmatprep.subr.bf16.mxu1 %v5722_v9 }
 0x459   : > { %2673 = vmatpush1.bf16.msra.mxu1 %v6351_v29 }
 0x45a   : > { %2674 = vmatprep.subr.bf16.mxu1 %v5722_v9 }
 0x45d   : > { %2675 = vmatpush1.bf16.msra.mxu1 %v6361_v31 }
 0x45e   : > { %2676 = vmatprep.subr.bf16.mxu1 %v5722_v9 }
 0x461   : > { %2677 = vmatpush1.bf16.msra.mxu1 %v6371_v7 }
 0x462   : > { %2678 = vmatprep.subr.bf16.mxu1 %v5722_v9 }
 0x465   : > { %2679 = vmatpush1.bf16.msra.mxu1 %v6381_v15 }
 0x466   : > { %2680 = vmatprep.subr.bf16.mxu1 %v5722_v9 }
 0x469   : > { %2681 = vmatpush1.bf16.msra.mxu1 %v6391_v34 }
 0x46a   : > { %2682 = vmatprep.subr.bf16.mxu1 %v5722_v9 }
 0x46d   : > { %2683 = vmatpush1.bf16.msra.mxu1 %v6401_v17 }
 0x46e   : > { %2684 = vmatprep.subr.bf16.mxu1 %v5722_v9 }
 0x471   : > { %2685 = vmatpush1.bf16.msra.mxu1 %v6411_v36 }
 0x472   : > { %2686 = vmatprep.subr.bf16.mxu1 %v5722_v9 }
 0x475   : > { %2687 = vmatpush1.bf16.msra.mxu1 %v6431_v21 }
 0x476   : > { %2785 = vmatprep.subr.bf16.mxu1 %v5722_v9 }
 0x50f   : > { %v2221_v37 = vpop.f32.mrb[20].mxu1 }
 0x510   : > { %v5276_v39 = vpop.f32.mrb[21].mxu1  ;;  %v2222_v26 = vadd.f32 %v4809_v59, %v2221_v37 }
 0x511   : > { %v2224_v40 = vpop.f32.mrb[22].mxu1 }
 0x512   : > { %v5277_v10 = vpop.f32.mrb[23].mxu1  ;;  %v2225_v43 = vadd.f32 %v4809_v59, %v2224_v40 }
 0x51b   : > { %v2293_v51 = vpop.f32.mrb[24].mxu1 }
 0x51c   : > { %v2294_v28 = vadd.f32 %v4814_v50, %v2293_v51  ;;  %v5286_v41 = vpop.f32.mrb[25].mxu1 }
 0x51d   : > { %v2296_v52 = vpop.f32.mrb[26].mxu1 }
 0x51e   : > { %v4819_v53 = vmul.f32 -1.442695, %v2294_v28  ;;  %v2297_v54 = vadd.f32 %v4814_v50, %v2296_v52  ;;  %v5287_v0 = vpop.f32.mrb[27].mxu1 }
 0x520   : > { %5621 = vpow2.f32 %v4819_v53  ;;  %v4820_v55 = vmul.f32 -1.442695, %v2297_v54 }
 0x522   : > { %5623 = vpow2.f32 %v4820_v55 }
 0x52a   : > { %v5622_v56 = vpop.eup %5621 }
 0x52b   : > { %v2306_v57 = vadd.f32 1.0, %v5622_v56 }
 0x52c   : > { %v5624_v19 = vpop.eup %5623 }
 0x52d   : > { %5625 = vrcp.f32 %v2306_v57  ;;  %v2307_v58 = vadd.f32 1.0, %v5624_v19 }
 0x52f   : > { %5627 = vrcp.f32 %v2307_v58 }
 0x537   : > { %v5626_v62 = vpop.eup %5625 }
 0x538   : > { %v2312_v44 = vadd.f32 %v5626_v62, %v2222_v26 }
 0x539   : > { %v5628_v45 = vpop.eup %5627 }
 0x53a   : > { %v2314_v32 = vmax.f32 %v2312_v44, 0.0  ;;  %v2313_v48 = vadd.f32 %v5628_v45, %v2225_v43 }
 0x53c   : > { %v2315_v22 = vmax.f32 %v2313_v48, 0.0  ;;  %v2342_v25 = vmul.f32 %v4824_v46, %v2314_v32  ;;  %v2323_v63 = vmul.f32 %v4821_v47, %v2314_v32  ;;  %v2382_v5 = vmul.f32 %v4832_v42, %v2314_v32 }
 0x53d   : > { %v2362_v14 = vmul.f32 %v4828_v60, %v2314_v32 }
 0x53e   : > { %v2343_v37 = vmul.f32 %v4824_v46, %v2315_v22  ;;  %v6437_v39 = vadd.f32 %v4826_v49, %v2342_v25  ;;  %v2324_v40 = vmul.f32 %v4821_v47, %v2315_v22  ;;  %v2332_v10 = vadd.f32 %v4822_v61, %v2323_v63 }
 0x53f   : > { %v2383_v50 = vmul.f32 %v4832_v42, %v2315_v22  ;;  %v2363_v51 = vmul.f32 %v4828_v60, %v2315_v22  ;;  %v6443_v52 = vadd.f32 %v4834_v12, %v2382_v5  ;;  %v6445_v53 = vadd.f32 %v4830_v24, %v2362_v14 }
 0x540   : > { %v6441_v28 = vadd.f32 %v4826_v49, %v2343_v37  ;;  %v2333_v41 = vadd.f32 %v4822_v61, %v2324_v40  ;;  %v2723_v54 = vrot.slane %v6437_v39, 1  ;;  %v2405_v0 = vrot.slane %v2332_v10, 2 }
 0x541   : > { %v6448_v55 = vadd.f32 %v4834_v12, %v2383_v50  ;;  %v6450_v56 = vadd.f32 %v4830_v24, %v2363_v51  ;;  %v2396_v58 = vrot.slane %v2332_v10, 1  ;;  %v2965_v46 = vrot.slane %v6443_v52, 1 }
 0x542   : > { %v2724_v57 = vrot.slane %v6441_v28, 1  ;;  %v2406_v19 = vrot.slane %v2333_v41, 2  ;;  %v2397_v59 = vrot.slane %v2333_v41, 1  ;;  %v2844_v48 = vrot.slane %v6445_v53, 1 }
 0x543   : > { %v2966_v26 = vrot.slane %v6448_v55, 1  ;;  %v2845_v62 = vrot.slane %v6450_v56, 1  ;;  %v2733_v25 = vrot.slane %v6441_v28, 2  ;;  %v2732_v14 = vrot.slane %v6437_v39, 2 }
 0x544   : > { %v2725_v43 = vsel %vm1077_vm4, %v2723_v54, %v2724_v57  ;;  %v2407_v44 = vsel %vm1426_vm5, %v2405_v0, %v2406_v19  ;;  %v2398_v45 = vsel %vm1077_vm4, %v2396_v58, %v2397_v59  ;;  %v2854_v0 = vrot.slane %v6450_v56, 2 }
 0x545   : > { %v5422_v47 = vpack.i.bf16 %v2724_v57, %v2725_v43  ;;  %v2413_v42 = vpack.c.bf16 %v2406_v19, %v2407_v44  ;;  %v5417_v32 = vpack.i.bf16 %v2397_v59, %v2398_v45  ;;  %v2967_v49 = vsel %vm1077_vm4, %v2965_v46, %v2966_v26 }
 0x546   : > { %v2846_v60 = vsel %vm1077_vm4, %v2844_v48, %v2845_v62  ;;  %v5432_v61 = vpack.i.bf16 %v2966_v26, %v2967_v49  ;;  %v2734_v40 = vsel %vm1426_vm5, %v2732_v14, %v2733_v25  ;;  %v2853_v57 = vrot.slane %v6445_v53, 2  ;;  %v5484_v14 = vld [vmem:[%s6990_s15 + $0x8] sm:$0xff]  }
 0x547   : > { %5423 = vrot.lane.b32.xlu1 %v5422_v47, %s5723_s21  ;;  %4848 = vmatprep.mubr.msk.bf16.mxu0 %vm1439_vm7, %v2413_v42  ;;  %v5427_v22 = vpack.i.bf16 %v2845_v62, %v2846_v60  ;;  %v2740_v51 = vpack.c.bf16 %v2733_v25, %v2734_v40  ;;  %v2975_v44 = vrot.slane %v6448_v55, 2  ;;  %v2974_v47 = vrot.slane %v6443_v52, 2 }
 0x548   : > { %4862 = vmatprep.mubr.msk.bf16.mxu1 %vm1439_vm7, %v2413_v42  ;;  %5418 = vrot.lane.b32.xlu0 %v5417_v32, %s5723_s21  ;;  %v2855_v59 = vsel %vm1426_vm5, %v2853_v57, %v2854_v0 }
 0x549   : > { %v2861_v62 = vpack.c.bf16 %v2854_v0, %v2855_v59  ;;  %v2976_v42 = vsel %vm1426_vm5, %v2974_v47, %v2975_v44  ;;  %v5486_v0 = vld [vmem:[%s6990_s15 + $0x18] sm:$0xff]  }
 0x54b   : > { %5433 = vrot.lane.b32.xlu1 %v5432_v61, %s5723_s21  ;;  %v5483_v61 = vld [vmem:[%s6990_s15] sm:$0xff]  }
 0x54c   : > { %5428 = vrot.lane.b32.xlu0 %v5427_v22, %s5723_s21 }
 0x5ba   : > { %v5419_v63 = vpop.permute.xlu0 %5418 }
 0x5bb   : > { %v5421_v5 = vunpack.i.h.bf16 %v5419_v63  ;;  %v5420_v12 = vunpack.i.l.bf16 %v5419_v63 }
 0x5bd   : > { %v2411_v24 = vsel %vm1439_vm7, %v2333_v41, %v5421_v5  ;;  %v2410_v37 = vsel %vm1439_vm7, %v2332_v10, %v5420_v12  ;;  %v5424_v10 = vpop.permute.xlu1 %5423 }
 0x5be   : > { %v2412_v50 = vpack.c.bf16 %v2411_v24, %v2410_v37  ;;  %v5426_v41 = vunpack.i.h.bf16 %v5424_v10  ;;  %v5425_v54 = vunpack.i.l.bf16 %v5424_v10 }
 0x5c0   : > { %2553 = vmatmul.mubr.bf16.vlgmr.msra.gmra.mrb[24].mxu0 %v2412_v50  ;;  %2697 = vmatmul.mubr.bf16.vlgmr.msra.gmra.mrb[28].mxu1 %v2412_v50  ;;  %v2738_v19 = vsel %vm1439_vm7, %v6441_v28, %v5426_v41  ;;  %v2737_v58 = vsel %vm1439_vm7, %v6437_v39, %v5425_v54  ;;  %v5429_v39 = vpop.permute.xlu0 %5428  ;;  %v5485_v41 = vld [vmem:[%s6990_s15 + $0x10] sm:$0xff]  }
 0x5c1   : > { %2745 = vmatpush1.bf16.msra.mxu0 %v6310_v1  ;;  %2786 = vmatpush1.bf16.msra.mxu1 %v6313_v4  ;;  %v2739_v26 = vpack.c.bf16 %v2738_v19, %v2737_v58  ;;  %v5431_v28 = vunpack.i.h.bf16 %v5429_v39  ;;  %v5430_v43 = vunpack.i.l.bf16 %v5429_v39 }
 0x5c2   : > { %4865 = vmatprep.mubr.msk.bf16.mxu0 %vm1439_vm7, %v2740_v51  ;;  %4866 = vmatprep.mubr.msk.bf16.mxu1 %vm1439_vm7, %v2740_v51 }
 0x5c3   : > { %2746 = vmatprep.subr.bf16.mxu0 %v5722_v9  ;;  %2787 = vmatprep.subr.bf16.mxu1 %v5722_v9  ;;  %v2859_v45 = vsel %vm1439_vm7, %v6450_v56, %v5431_v28  ;;  %v2858_v46 = vsel %vm1439_vm7, %v6445_v53, %v5430_v43  ;;  %v2982_v56 = vpack.c.bf16 %v2975_v44, %v2976_v42 }
 0x5c4   : > { %v2860_v32 = vpack.c.bf16 %v2859_v45, %v2858_v46 }
 0x5c5   : > { %2747 = vmatpush1.bf16.msra.mxu0 %v6318_v8  ;;  %2788 = vmatpush1.bf16.msra.mxu1 %v6321_v23 }
 0x5c6   : > { %2748 = vmatprep.subr.bf16.mxu0 %v5722_v9  ;;  %2789 = vmatprep.subr.bf16.mxu1 %v5722_v9 }
 0x5c9   : > { %2749 = vmatpush1.bf16.msra.mxu0 %v6328_v6  ;;  %2790 = vmatpush1.bf16.msra.mxu1 %v6331_v11 }
 0x5ca   : > { %2750 = vmatprep.subr.bf16.mxu0 %v5722_v9  ;;  %2791 = vmatprep.subr.bf16.mxu1 %v5722_v9 }
 0x5cd   : > { %2751 = vmatpush1.bf16.msra.mxu0 %v6338_v13  ;;  %2792 = vmatpush1.bf16.msra.mxu1 %v6341_v16 }
 0x5ce   : > { %2752 = vmatprep.subr.bf16.mxu0 %v5722_v9  ;;  %2793 = vmatprep.subr.bf16.mxu1 %v5722_v9 }
 0x5d1   : > { %2753 = vmatpush1.bf16.msra.mxu0 %v6348_v27  ;;  %2794 = vmatpush1.bf16.msra.mxu1 %v6351_v29 }
 0x5d2   : > { %2754 = vmatprep.subr.bf16.mxu0 %v5722_v9  ;;  %2795 = vmatprep.subr.bf16.mxu1 %v5722_v9 }
 0x5d5   : > { %2755 = vmatpush1.bf16.msra.mxu0 %v6358_v30  ;;  %2796 = vmatpush1.bf16.msra.mxu1 %v6361_v31 }
 0x5d6   : > { %2756 = vmatprep.subr.bf16.mxu0 %v5722_v9  ;;  %2797 = vmatprep.subr.bf16.mxu1 %v5722_v9 }
 0x5d9   : > { %2757 = vmatpush1.bf16.msra.mxu0 %v6368_v33  ;;  %2798 = vmatpush1.bf16.msra.mxu1 %v6371_v7 }
 0x5da   : > { %2758 = vmatprep.subr.bf16.mxu0 %v5722_v9  ;;  %2799 = vmatprep.subr.bf16.mxu1 %v5722_v9 }
 0x5dd   : > { %2759 = vmatpush1.bf16.msra.mxu0 %v6378_v3  ;;  %2800 = vmatpush1.bf16.msra.mxu1 %v6381_v15 }
 0x5de   : > { %2760 = vmatprep.subr.bf16.mxu0 %v5722_v9  ;;  %2801 = vmatprep.subr.bf16.mxu1 %v5722_v9 }
 0x5e1   : > { %2761 = vmatpush1.bf16.msra.mxu0 %v6388_v38  ;;  %2802 = vmatpush1.bf16.msra.mxu1 %v6391_v34 }
 0x5e2   : > { %2762 = vmatprep.subr.bf16.mxu0 %v5722_v9  ;;  %2803 = vmatprep.subr.bf16.mxu1 %v5722_v9 }
 0x5e5   : > { %2763 = vmatpush1.bf16.msra.mxu0 %v6398_v18  ;;  %2804 = vmatpush1.bf16.msra.mxu1 %v6401_v17 }
 0x5e6   : > { %2764 = vmatprep.subr.bf16.mxu0 %v5722_v9  ;;  %2805 = vmatprep.subr.bf16.mxu1 %v5722_v9 }
 0x5e9   : > { %2765 = vmatpush1.bf16.msra.mxu0 %v6408_v35  ;;  %2806 = vmatpush1.bf16.msra.mxu1 %v6411_v36 }
 0x5ea   : > { %2766 = vmatprep.subr.bf16.mxu0 %v5722_v9  ;;  %2807 = vmatprep.subr.bf16.mxu1 %v5722_v9 }
 0x5ed   : > { %2767 = vmatpush1.bf16.msra.mxu0 %v6428_v20  ;;  %2808 = vmatpush1.bf16.msra.mxu1 %v6431_v21 }
 0x5ee   : > { %2865 = vmatprep.subr.bf16.mxu0 %v5722_v9  ;;  %2906 = vmatprep.subr.bf16.mxu1 %v5722_v9 }
 0x5f0   : > { %2777 = vmatmul.mubr.bf16.vlgmr.msra.gmra.mrb[28].mxu0 %v2739_v26  ;;  %2818 = vmatmul.mubr.bf16.vlgmr.msra.gmra.mrb[32].mxu1 %v2739_v26 }
 0x5f1   : > { %2866 = vmatpush1.bf16.msra.mxu0 %v6310_v1  ;;  %4869 = vmatprep.mubr.msk.bf16.mxu0 %vm1439_vm7, %v2861_v62 }
 0x5f2   : > { %2907 = vmatpush1.bf16.msra.mxu1 %v6313_v4  ;;  %4870 = vmatprep.mubr.msk.bf16.mxu1 %vm1439_vm7, %v2861_v62 }
 0x5f3   : > { %2867 = vmatprep.subr.bf16.mxu0 %v5722_v9  ;;  %2908 = vmatprep.subr.bf16.mxu1 %v5722_v9 }
 0x5f5   : > { %2868 = vmatpush1.bf16.msra.mxu0 %v6318_v8 }
 0x5f6   : > { %2909 = vmatpush1.bf16.msra.mxu1 %v6321_v23  ;;  %2869 = vmatprep.subr.bf16.mxu0 %v5722_v9 }
 0x5f7   : > { %2910 = vmatprep.subr.bf16.mxu1 %v5722_v9 }
 0x5f9   : > { %2870 = vmatpush1.bf16.msra.mxu0 %v6328_v6 }
 0x5fa   : > { %2911 = vmatpush1.bf16.msra.mxu1 %v6331_v11  ;;  %2871 = vmatprep.subr.bf16.mxu0 %v5722_v9 }
 0x5fb   : > { %2912 = vmatprep.subr.bf16.mxu1 %v5722_v9 }
 0x5fd   : > { %2872 = vmatpush1.bf16.msra.mxu0 %v6338_v13 }
 0x5fe   : > { %2913 = vmatpush1.bf16.msra.mxu1 %v6341_v16  ;;  %2873 = vmatprep.subr.bf16.mxu0 %v5722_v9 }
 0x5ff   : > { %2914 = vmatprep.subr.bf16.mxu1 %v5722_v9 }
 0x601   : > { %2874 = vmatpush1.bf16.msra.mxu0 %v6348_v27 }
 0x602   : > { %2915 = vmatpush1.bf16.msra.mxu1 %v6351_v29  ;;  %2875 = vmatprep.subr.bf16.mxu0 %v5722_v9 }
 0x603   : > { %2916 = vmatprep.subr.bf16.mxu1 %v5722_v9 }
 0x605   : > { %2876 = vmatpush1.bf16.msra.mxu0 %v6358_v30 }
 0x606   : > { %2917 = vmatpush1.bf16.msra.mxu1 %v6361_v31  ;;  %2877 = vmatprep.subr.bf16.mxu0 %v5722_v9 }
 0x607   : > { %2918 = vmatprep.subr.bf16.mxu1 %v5722_v9 }
 0x609   : > { %2878 = vmatpush1.bf16.msra.mxu0 %v6368_v33 }
 0x60a   : > { %2919 = vmatpush1.bf16.msra.mxu1 %v6371_v7  ;;  %2879 = vmatprep.subr.bf16.mxu0 %v5722_v9 }
 0x60b   : > { %2920 = vmatprep.subr.bf16.mxu1 %v5722_v9 }
 0x60d   : > { %2880 = vmatpush1.bf16.msra.mxu0 %v6378_v3 }
 0x60e   : > { %2921 = vmatpush1.bf16.msra.mxu1 %v6381_v15  ;;  %2881 = vmatprep.subr.bf16.mxu0 %v5722_v9 }
 0x60f   : > { %2922 = vmatprep.subr.bf16.mxu1 %v5722_v9 }
 0x611   : > { %2882 = vmatpush1.bf16.msra.mxu0 %v6388_v38 }
 0x612   : > { %2923 = vmatpush1.bf16.msra.mxu1 %v6391_v34  ;;  %2883 = vmatprep.subr.bf16.mxu0 %v5722_v9 }
 0x613   : > { %2924 = vmatprep.subr.bf16.mxu1 %v5722_v9 }
 0x615   : > { %2884 = vmatpush1.bf16.msra.mxu0 %v6398_v18 }
 0x616   : > { %2925 = vmatpush1.bf16.msra.mxu1 %v6401_v17  ;;  %2885 = vmatprep.subr.bf16.mxu0 %v5722_v9 }
 0x617   : > { %2926 = vmatprep.subr.bf16.mxu1 %v5722_v9 }
 0x619   : > { %2886 = vmatpush1.bf16.msra.mxu0 %v6408_v35 }
 0x61a   : > { %2927 = vmatpush1.bf16.msra.mxu1 %v6411_v36  ;;  %2887 = vmatprep.subr.bf16.mxu0 %v5722_v9 }
 0x61b   : > { %2928 = vmatprep.subr.bf16.mxu1 %v5722_v9 }
 0x61d   : > { %2888 = vmatpush1.bf16.msra.mxu0 %v6428_v20 }
 0x61e   : > { %2929 = vmatpush1.bf16.msra.mxu1 %v6431_v21  ;;  %2986 = vmatprep.subr.bf16.mxu0 %v5722_v9 }
 0x61f   : > { %3027 = vmatprep.subr.bf16.mxu1 %v5722_v9 }
 0x620   : > { %2898 = vmatmul.mubr.bf16.vlgmr.msra.gmra.mrb[32].mxu0 %v2860_v32 }
 0x621   : > { %2939 = vmatmul.mubr.bf16.vlgmr.msra.gmra.mrb[36].mxu1 %v2860_v32  ;;  %2987 = vmatpush1.bf16.msra.mxu0 %v6310_v1  ;;  %v5434_v1 = vpop.permute.xlu1 %5433 }
 0x622   : > { %4873 = vmatprep.mubr.msk.bf16.mxu0 %vm1439_vm7, %v2982_v56  ;;  %3028 = vmatpush1.bf16.msra.mxu1 %v6313_v4  ;;  %v5436_v4 = vunpack.i.h.bf16 %v5434_v1 }
 0x623   : > { %4874 = vmatprep.mubr.msk.bf16.mxu1 %vm1439_vm7, %v2982_v56  ;;  %2988 = vmatprep.subr.bf16.mxu0 %v5722_v9 }
 0x624   : > { %3029 = vmatprep.subr.bf16.mxu1 %v5722_v9 }
 0x625   : > { %2989 = vmatpush1.bf16.msra.mxu0 %v6318_v8  ;;  %v5435_v8 = vunpack.i.l.bf16 %v5434_v1 }
 0x626   : > { %3030 = vmatpush1.bf16.msra.mxu1 %v6321_v23  ;;  %2990 = vmatprep.subr.bf16.mxu0 %v5722_v9  ;;  %v2980_v23 = vsel %vm1439_vm7, %v6448_v55, %v5436_v4 }
 0x627   : > { %3031 = vmatprep.subr.bf16.mxu1 %v5722_v9 }
 0x629   : > { %2991 = vmatpush1.bf16.msra.mxu0 %v6328_v6  ;;  %v2979_v6 = vsel %vm1439_vm7, %v6443_v52, %v5435_v8 }
 0x62a   : > { %3032 = vmatpush1.bf16.msra.mxu1 %v6331_v11  ;;  %2992 = vmatprep.subr.bf16.mxu0 %v5722_v9  ;;  %v2981_v11 = vpack.c.bf16 %v2980_v23, %v2979_v6 }
 0x62b   : > { %3033 = vmatprep.subr.bf16.mxu1 %v5722_v9 }
 0x62d   : > { %2993 = vmatpush1.bf16.msra.mxu0 %v6338_v13  ;;  %v6646_v13 = vld [vmem:[%s6988_s11] ss:$0 sm:$0xff] }
 0x62e   : > { %3034 = vmatpush1.bf16.msra.mxu1 %v6341_v16  ;;  %2994 = vmatprep.subr.bf16.mxu0 %v5722_v9 }
 0x62f   : > { %3035 = vmatprep.subr.bf16.mxu1 %v5722_v9 }
 0x631   : > { %2995 = vmatpush1.bf16.msra.mxu0 %v6348_v27 }
 0x632   : > { %3036 = vmatpush1.bf16.msra.mxu1 %v6351_v29  ;;  %2996 = vmatprep.subr.bf16.mxu0 %v5722_v9 }
 0x633   : > { %3037 = vmatprep.subr.bf16.mxu1 %v5722_v9 }
 0x635   : > { %2997 = vmatpush1.bf16.msra.mxu0 %v6358_v30 }
 0x636   : > { %3038 = vmatpush1.bf16.msra.mxu1 %v6361_v31  ;;  %2998 = vmatprep.subr.bf16.mxu0 %v5722_v9 }
 0x637   : > { %3039 = vmatprep.subr.bf16.mxu1 %v5722_v9 }
 0x639   : > { %2999 = vmatpush1.bf16.msra.mxu0 %v6368_v33 }
 0x63a   : > { %3040 = vmatpush1.bf16.msra.mxu1 %v6371_v7  ;;  %3000 = vmatprep.subr.bf16.mxu0 %v5722_v9 }
 0x63b   : > { %3041 = vmatprep.subr.bf16.mxu1 %v5722_v9 }
 0x63d   : > { %3001 = vmatpush1.bf16.msra.mxu0 %v6378_v3 }
 0x63e   : > { %3042 = vmatpush1.bf16.msra.mxu1 %v6381_v15  ;;  %3002 = vmatprep.subr.bf16.mxu0 %v5722_v9 }
 0x63f   : > { %3043 = vmatprep.subr.bf16.mxu1 %v5722_v9 }
 0x641   : > { %3003 = vmatpush1.bf16.msra.mxu0 %v6388_v38 }
 0x642   : > { %3044 = vmatpush1.bf16.msra.mxu1 %v6391_v34  ;;  %3004 = vmatprep.subr.bf16.mxu0 %v5722_v9 }
 0x643   : > { %3045 = vmatprep.subr.bf16.mxu1 %v5722_v9 }
 0x645   : > { %3005 = vmatpush1.bf16.msra.mxu0 %v6398_v18 }
 0x646   : > { %3046 = vmatpush1.bf16.msra.mxu1 %v6401_v17  ;;  %3006 = vmatprep.subr.bf16.mxu0 %v5722_v9 }
 0x647   : > { %3047 = vmatprep.subr.bf16.mxu1 %v5722_v9 }
 0x649   : > { %3007 = vmatpush1.bf16.msra.mxu0 %v6408_v35 }
 0x64a   : > { %3048 = vmatpush1.bf16.msra.mxu1 %v6411_v36  ;;  %3008 = vmatprep.subr.bf16.mxu0 %v5722_v9 }
 0x64b   : > { %3049 = vmatprep.subr.bf16.mxu1 %v5722_v9 }
 0x64d   : > { %3009 = vmatpush1.bf16.msra.mxu0 %v6428_v20 }
 0x64e   : > { %3050 = vmatpush1.bf16.msra.mxu1 %v6431_v21  ;;  %5288 = vmatprep.subr.bf16.mxu0 %v5720_v2  ;;  %v6651_v21 = vld [vmem:[%s6989_s10] ss:$0 sm:$0xff] }
 0x64f   : > { %5300 = vmatprep.subr.bf16.mxu1 %v5720_v2 }
 0x650   : > { %3019 = vmatmul.mubr.bf16.vlgmr.msra.gmra.mrb[36].mxu0 %v2981_v11 }
 0x651   : > { %3060 = vmatmul.mubr.bf16.vlgmr.msra.gmra.mrb[40].mxu1 %v2981_v11  ;;  %5296 = vmatprep.mubr.msk.bf16.mxu0 %vm5721_vm2, %v5720_v2 }
 0x652   : > { %5306 = vmatprep.mubr.msk.bf16.mxu1 %vm5721_vm2, %v5720_v2  ;;  %5289 = vmatpush3.bf16.msra.mxu0 %v5483_v61 }
 0x653   : > { %5290 = vmatprep.subr.bf16.mxu0 %v5720_v2 }
 0x656   : > { %5291 = vmatpush3.bf16.msra.mxu0 %v5484_v14 }
 0x657   : > { %5292 = vmatprep.subr.bf16.mxu0 %v5720_v2 }
 0x65a   : > { %5293 = vmatpush3.bf16.msra.mxu0 %v5485_v41 }
 0x65b   : > { %5294 = vmatprep.subr.bf16.mxu0 %v5720_v2 }
 0x65e   : > { %5295 = vmatpush3.bf16.msra.mxu0 %v5486_v0 }
 0x65f   : > { %5310 = vmatprep.subr.bf16.mxu0 %v5720_v2 }
 0x693   : > { %v2554_v16 = vpop.f32.mrb[24].mxu0  ;;  %v2698_v27 = vpop.f32.mrb[28].mxu1 }
 0x694   : > { %v2699_v29 = vadd.f32 %v6646_v13, %v2698_v27  ;;  %v2556_v30 = vpop.f32.mrb[25].mxu0  ;;  %v2700_v31 = vpop.f32.mrb[29].mxu1  ;;  %v2555_v52 = vadd.f32 %v6651_v21, %v2554_v16 }
 0x695   : > { %v2557_v33 = vpop.f32.mrb[26].mxu0  ;;  %v2701_v7 = vpop.f32.mrb[30].mxu1 }
 0x696   : > { %v4863_v3 = vmul.f32 -1.442695, %v2699_v29  ;;  %v2702_v15 = vadd.f32 %v6646_v13, %v2701_v7  ;;  %v2559_v38 = vpop.f32.mrb[27].mxu0  ;;  %v2703_v34 = vpop.f32.mrb[31].mxu1  ;;  %v2558_v48 = vadd.f32 %v6651_v21, %v2557_v33 }
 0x698   : > { %5629 = vpow2.f32 %v4863_v3  ;;  %v4864_v18 = vmul.f32 -1.442695, %v2702_v15 }
 0x69a   : > { %5631 = vpow2.f32 %v4864_v18 }
 0x6a2   : > { %v5630_v17 = vpop.eup %5629 }
 0x6a3   : > { %v2711_v35 = vadd.f32 1.0, %v5630_v17 }
 0x6a4   : > { %v5632_v36 = vpop.eup %5631 }
 0x6a5   : > { %5633 = vrcp.f32 %v2711_v35  ;;  %v2712_v20 = vadd.f32 1.0, %v5632_v36 }
 0x6a7   : > { %5635 = vrcp.f32 %v2712_v20 }
 0x6af   : > { %v5634_v53 = vpop.eup %5633 }
 0x6b0   : > { %v2717_v55 = vadd.f32 %v5634_v53, %v2555_v52 }
 0x6b1   : > { %v5636_v49 = vpop.eup %5635 }
 0x6b2   : > { %v2718_v60 = vadd.f32 %v5636_v49, %v2558_v48  ;;  %v2719_v39 = vmax.f32 %v2717_v55, 0.0 }
 0x6b4   : > { %v2720_v45 = vmax.f32 %v2718_v60, 0.0  ;;  %v3084_v42 = vmul.f32 0.25, %v2719_v39 }
 0x6b6   : > { %v3085_v1 = vmul.f32 0.25, %v2720_v45 }
 0x6c3   : > { %v2778_v22 = vpop.f32.mrb[28].mxu0  ;;  %v2819_v25 = vpop.f32.mrb[32].mxu1 }
 0x6c4   : > { %v2820_v63 = vadd.f32 %v6646_v13, %v2819_v25  ;;  %v2780_v5 = vpop.f32.mrb[29].mxu0  ;;  %v2821_v12 = vpop.f32.mrb[33].mxu1  ;;  %v2779_v26 = vadd.f32 %v6651_v21, %v2778_v22 }
 0x6c5   : > { %v2781_v24 = vpop.f32.mrb[30].mxu0  ;;  %v2822_v37 = vpop.f32.mrb[34].mxu1 }
 0x6c6   : > { %v4867_v40 = vmul.f32 -1.442695, %v2820_v63  ;;  %v2823_v50 = vadd.f32 %v6646_v13, %v2822_v37  ;;  %v2783_v51 = vpop.f32.mrb[31].mxu0  ;;  %v2824_v10 = vpop.f32.mrb[35].mxu1  ;;  %v2782_v43 = vadd.f32 %v6651_v21, %v2781_v24 }
 0x6c8   : > { %5637 = vpow2.f32 %v4867_v40  ;;  %v4868_v54 = vmul.f32 -1.442695, %v2823_v50 }
 0x6ca   : > { %5639 = vpow2.f32 %v4868_v54 }
 0x6d2   : > { %v5638_v57 = vpop.eup %5637 }
 0x6d3   : > { %v2832_v19 = vadd.f32 1.0, %v5638_v57 }
 0x6d4   : > { %v5640_v58 = vpop.eup %5639 }
 0x6d5   : > { %5641 = vrcp.f32 %v2832_v19  ;;  %v2833_v59 = vadd.f32 1.0, %v5640_v58 }
 0x6d7   : > { %5643 = vrcp.f32 %v2833_v59 }
 0x6df   : > { %v5642_v62 = vpop.eup %5641 }
 0x6e0   : > { %v2838_v28 = vadd.f32 %v5642_v62, %v2779_v26 }
 0x6e1   : > { %v5644_v44 = vpop.eup %5643 }
 0x6e2   : > { %v2840_v46 = vmax.f32 %v2838_v28, 0.0  ;;  %v2839_v47 = vadd.f32 %v5644_v44, %v2782_v43 }
 0x6e4   : > { %v3086_v32 = vmul.f32 0.25, %v2840_v46  ;;  %v2841_v56 = vmax.f32 %v2839_v47, 0.0 }
 0x6e6   : > { %v3087_v4 = vmul.f32 0.25, %v2841_v56  ;;  %v3088_v8 = vadd.f32 %v3086_v32, %v3084_v42 }
 0x6e8   : > { %v3089_v23 = vadd.f32 %v3087_v4, %v3085_v1  ;;  %v5487_v1 = vld [vmem:[%s6991_s18] sm:$0xff]   ;;  %v5489_v4 = vld [vmem:[%s6991_s18 + $0x8] sm:$0xff]  }
 0x6e9   : > { %5301 = vmatpush3.bf16.msra.mxu1 %v5487_v1 }
 0x6ea   : > { %5302 = vmatprep.subr.bf16.mxu1 %v5720_v2 }
 0x6ed   : > { %5303 = vmatpush3.bf16.msra.mxu1 %v5489_v4 }
 0x6ee   : > { %5304 = vmatprep.subr.bf16.mxu1 %v5720_v2 }
 0x6f3   : > { %v2899_v6 = vpop.f32.mrb[32].mxu0 }
 0x6f4   : > { %v2940_v11 = vpop.f32.mrb[36].mxu1  ;;  %v2901_v16 = vpop.f32.mrb[33].mxu0  ;;  %v2900_v36 = vadd.f32 %v6651_v21, %v2899_v6  ;;  %v5492_v6 = vld [vmem:[%s6992_s5 + $0x10] sm:$0xff]  }
 0x6f5   : > { %v2941_v27 = vadd.f32 %v6646_v13, %v2940_v11  ;;  %v2942_v29 = vpop.f32.mrb[37].mxu1  ;;  %v2902_v30 = vpop.f32.mrb[34].mxu0 }
 0x6f6   : > { %v2943_v31 = vpop.f32.mrb[38].mxu1  ;;  %v2904_v33 = vpop.f32.mrb[35].mxu0  ;;  %v2903_v53 = vadd.f32 %v6651_v21, %v2902_v30 }
 0x6f7   : > { %v4871_v7 = vmul.f32 -1.442695, %v2941_v27  ;;  %v2944_v3 = vadd.f32 %v6646_v13, %v2943_v31  ;;  %v2945_v15 = vpop.f32.mrb[39].mxu1 }
 0x6f9   : > { %5645 = vpow2.f32 %v4871_v7  ;;  %v4872_v38 = vmul.f32 -1.442695, %v2944_v3 }
 0x6fb   : > { %5647 = vpow2.f32 %v4872_v38 }
 0x703   : > { %v5646_v34 = vpop.eup %5645 }
 0x704   : > { %v2953_v18 = vadd.f32 1.0, %v5646_v34 }
 0x705   : > { %v5648_v17 = vpop.eup %5647 }
 0x706   : > { %5649 = vrcp.f32 %v2953_v18  ;;  %v2954_v35 = vadd.f32 1.0, %v5648_v17 }
 0x708   : > { %5651 = vrcp.f32 %v2954_v35 }
 0x710   : > { %v5650_v20 = vpop.eup %5649 }
 0x711   : > { %v2959_v52 = vadd.f32 %v5650_v20, %v2900_v36  ;;  %v5493_v20 = vld [vmem:[%s6993_s1] sm:$0xff]  }
 0x712   : > { %v5652_v55 = vpop.eup %5651 }
 0x713   : > { %v2961_v48 = vmax.f32 %v2959_v52, 0.0  ;;  %v2960_v49 = vadd.f32 %v5652_v55, %v2903_v53  ;;  %v5494_v52 = vld [vmem:[%s5879_s4] sm:$0xff]   ;;  %v5495_v53 = vld [vmem:[%s6993_s1 + $0x8] sm:$0xff]  }
 0x714   : > { %v5496_v55 = vld [vmem:[%s5879_s4 + $0x8] sm:$0xff]  }
 0x715   : > { %v3090_v60 = vmul.f32 0.25, %v2961_v48  ;;  %v2962_v61 = vmax.f32 %v2960_v49, 0.0  ;;  %v5497_v48 = vld [vmem:[%s6993_s1 + $0x10] sm:$0xff]  }
 0x716   : > { %v5498_v49 = vld [vmem:[%s5879_s4 + $0x10] sm:$0xff]  }
 0x717   : > { %v3091_v22 = vmul.f32 0.25, %v2962_v61  ;;  %v3092_v25 = vadd.f32 %v3090_v60, %v3088_v8  ;;  %v5490_v8 = vld [vmem:[%s6992_s5 + $0x8] sm:$0xff]   ;;  %v5499_v60 = vld [vmem:[%s6993_s1 + $0x18] sm:$0xff]  }
 0x718   : > { %v5500_v61 = vld [vmem:[%s5879_s4 + $0x18] sm:$0xff]  }
 0x719   : > { %v3093_v63 = vadd.f32 %v3091_v22, %v3089_v23  ;;  %v5491_v23 = vld [vmem:[%s6991_s18 + $0x10] sm:$0xff]   ;;  %v5501_v22 = vld [vmem:[%s6993_s1 + $0x20] sm:$0xff]  }
 0x71a   : > { %5305 = vmatpush3.bf16.msra.mxu1 %v5491_v23 }
 0x71b   : > { %3533 = vmatprep.subr.bf16.mxu1 %v5722_v9 }
 0x723   : > { %v3020_v5 = vpop.f32.mrb[36].mxu0 }
 0x724   : > { %v3061_v12 = vpop.f32.mrb[40].mxu1  ;;  %v3022_v14 = vpop.f32.mrb[37].mxu0  ;;  %v3021_v26 = vadd.f32 %v6651_v21, %v3020_v5  ;;  %v5504_v5 = vld [vmem:[%s5879_s4 + $0x28] sm:$0xff]  }
 0x725   : > { %v3062_v24 = vadd.f32 %v6646_v13, %v3061_v12  ;;  %v3063_v37 = vpop.f32.mrb[41].mxu1  ;;  %v3023_v40 = vpop.f32.mrb[38].mxu0  ;;  %v5505_v12 = vld [vmem:[%s6993_s1 + $0x30] sm:$0xff]  }
 0x726   : > { %v3064_v50 = vpop.f32.mrb[42].mxu1  ;;  %v3025_v51 = vpop.f32.mrb[39].mxu0  ;;  %v3024_v28 = vadd.f32 %v6651_v21, %v3023_v40  ;;  %v5488_v21 = vld [vmem:[%s6992_s5] sm:$0xff]   ;;  %v5506_v14 = vld [vmem:[%s5879_s4 + $0x30] sm:$0xff]   ;;  %v5508_v37 = vld [vmem:[%s5879_s4 + $0x38] sm:$0xff]  }
 0x727   : > { %v4875_v10 = vmul.f32 -1.442695, %v3062_v24  ;;  %v3065_v41 = vadd.f32 %v6646_v13, %v3064_v50  ;;  %v3066_v54 = vpop.f32.mrb[43].mxu1  ;;  %v5507_v24 = vld [vmem:[%s6993_s1 + $0x38] sm:$0xff]   ;;  %v5509_v40 = vld [vmem:[%s6993_s1 + $0x40] sm:$0xff]   ;;  %v5511_v51 = vld [vmem:[%s6993_s1 + $0x48] sm:$0xff]  }
 0x728   : > { %v5510_v50 = vld [vmem:[%s5879_s4 + $0x40] sm:$0xff]   ;;  %v5514_v54 = vld [vmem:[%s5879_s4 + $0x50] sm:$0xff]  }
 0x729   : > { %5653 = vpow2.f32 %v4875_v10  ;;  %v4876_v0 = vmul.f32 -1.442695, %v3065_v41  ;;  %v5512_v10 = vld [vmem:[%s5879_s4 + $0x48] sm:$0xff]   ;;  %v5513_v41 = vld [vmem:[%s6993_s1 + $0x50] sm:$0xff]  }
 0x72b   : > { %5655 = vpow2.f32 %v4876_v0  ;;  %v5515_v0 = vld [vmem:[%s6993_s1 + $0x58] sm:$0xff]  }
 0x733   : > { %v5654_v57 = vpop.eup %5653 }
 0x734   : > { %v3074_v19 = vadd.f32 1.0, %v5654_v57  ;;  %v5516_v57 = vld [vmem:[%s5879_s4 + $0x58] sm:$0xff]  }
 0x735   : > { %v5656_v58 = vpop.eup %5655 }
 0x736   : > { %5657 = vrcp.f32 %v3074_v19  ;;  %v3075_v59 = vadd.f32 1.0, %v5656_v58  ;;  %v4887_v19 = vld [vmem:[%s6994_s16] ss:$0 sm:$0xff] }
 0x738   : > { %5659 = vrcp.f32 %v3075_v59 }
 0x740   : > { %v5658_v62 = vpop.eup %5657 }
 0x741   : > { %v3080_v39 = vadd.f32 %v5658_v62, %v3021_v26 }
 0x742   : > { %v5660_v13 = vpop.eup %5659 }
 0x743   : > { %v3082_v43 = vmax.f32 %v3080_v39, 0.0  ;;  %v3081_v44 = vadd.f32 %v5660_v13, %v3024_v28 }
 0x745   : > { %v3083_v45 = vmax.f32 %v3081_v44, 0.0  ;;  %v3094_v46 = vmul.f32 0.25, %v3082_v43 }
 0x747   : > { %v3095_v47 = vmul.f32 0.25, %v3083_v45  ;;  %v3096_v42 = vadd.f32 %v3094_v46, %v3092_v25  ;;  %v5502_v25 = vld [vmem:[%s5879_s4 + $0x20] sm:$0xff]  }
 0x749   : > { %v3097_v32 = vadd.f32 %v3095_v47, %v3093_v63  ;;  %v5503_v63 = vld [vmem:[%s6993_s1 + $0x28] sm:$0xff]  }
 0x74b   : > { %v3098_v56 = vpack.c.bf16 %v3097_v32, %v3096_v42  ;;  %v4882_v42 = vld [vmem:[%s6995_s9] ss:$0 sm:$0xff] }
 0x74d   : > { %5297 = vmatmul.mubr.msk.bf16.vlgmr.msra.gmra.mrb[40].mxu0 %vm1439_vm7, %v3098_v56 }
 0x74e   : > { %5316 = vmatprep.mubr.msk.bf16.mxu0 %vm5721_vm2, %v5720_v2  ;;  %5311 = vmatpush3.bf16.msra.mxu0 %v5488_v21 }
 0x74f   : > { %5312 = vmatprep.subr.bf16.mxu0 %v5720_v2 }
 0x752   : > { %5313 = vmatpush3.bf16.msra.mxu0 %v5490_v8 }
 0x753   : > { %5314 = vmatprep.subr.bf16.mxu0 %v5720_v2 }
 0x756   : > { %5315 = vmatpush3.bf16.msra.mxu0 %v5492_v6 }
 0x757   : > { %3676 = vmatprep.subr.bf16.mxu0 %v5722_v9 }
 0x820   : > { %v3168_v11 = vpop.f32.mrb[40].mxu0 }
 0x821   : > { %v3175_v16 = vmax.f32 %v3168_v11, 0.0  ;;  %v5298_v27 = vpop.f32.mrb[41].mxu0  ;;  %v4898_v11 = vld [vmem:[%s6998_s23 + $0x1] ss:$0 sm:$0xff] }
 0x822   : > { %v3171_v29 = vpop.f32.mrb[42].mxu0 }
 0x823   : > { %v3176_v30 = vmax.f32 %v3171_v29, 0.0  ;;  %v5299_v31 = vpop.f32.mrb[43].mxu0  ;;  %v3179_v33 = vrot.slane %v3175_v16, 1  ;;  %v3185_v7 = vrot.slane %v3175_v16, 2 }
 0x824   : > { %v4906_v31 = vld [vmem:[%s6998_s23 + $0x3] ss:$0 sm:$0xff] }
 0x825   : > { %v3180_v3 = vrot.slane %v3176_v30, 1  ;;  %v3186_v2 = vrot.slane %v3176_v30, 2 }
 0x827   : > { %v3187_v15 = vsel %vm1426_vm5, %v3185_v7, %v3186_v2  ;;  %v3181_v38 = vsel %vm1077_vm4, %v3179_v33, %v3180_v3  ;;  %v4902_v7 = vld [vmem:[%s6998_s23 + $0x2] ss:$0 sm:$0xff] }
 0x828   : > { %3188 = vrot.lane.b32.xlu1 %v3187_v15, %s5724_s22  ;;  %3182 = vrot.lane.b32.xlu0 %v3181_v38, %s5725_s26  ;;  %s6996_s22 = sld [smem:[#allocation16_spill]] }
 0x82e   : > { %s6997_s26 = smov %s6996_s22  ;;  %v4896_v21 = vld [vmem:[%s6996_s22 + $0x1] ss:$0 sm:$0xff] }
 0x82f   : > { %v4893_v4 = vld [vmem:[%s6997_s26] ss:$0 sm:$0xff]  ;;  %v4904_v8 = vld [vmem:[%s6997_s26 + $0x3] ss:$0 sm:$0xff]  ;;  %v4900_v23 = vld [vmem:[%s6997_s26 + $0x2] ss:$0 sm:$0xff] }
 0x89a   : > { %v3189_v34 = vpop.permute.xlu1 %3188  ;;  %v3183_v18 = vpop.permute.xlu0 %3182 }
 0x89b   : > { %v3191_v17 = vsel %vm2146_vm9, %v3175_v16, %v3183_v18  ;;  %v4894_v16 = vld [vmem:[%s6998_s23] ss:$0 sm:$0xff] }
 0x89c   : > { %v3192_v35 = vsel %vm1436_vm6, %v3191_v17, %v3189_v34 }
 0x89d   : > { %v3193_v36 = vpack.c.bf16 %v3192_v35, %v3192_v35 }
 0x89f   : > { %5307 = vmatmul.mubr.msk.bf16.vlgmr.msra.gmra.mrb[44].mxu1 %vm2183_vm10, %v3193_v36  ;;  %5317 = vmatmul.mubr.msk.bf16.vlgmr.msra.gmra.mrb[44].mxu0 %vm2183_vm10, %v3193_v36 }
 0x8a0   : > { %3534 = vmatpush1.bf16.msra.mxu1 %v5493_v20  ;;  %3677 = vmatpush1.bf16.msra.mxu0 %v5494_v52 }
 0x8a1   : > { %3535 = vmatprep.subr.bf16.mxu1 %v5722_v9  ;;  %3678 = vmatprep.subr.bf16.mxu0 %v5722_v9 }
 0x8a4   : > { %3536 = vmatpush1.bf16.msra.mxu1 %v5495_v53  ;;  %3679 = vmatpush1.bf16.msra.mxu0 %v5496_v55 }
 0x8a5   : > { %3537 = vmatprep.subr.bf16.mxu1 %v5722_v9  ;;  %3680 = vmatprep.subr.bf16.mxu0 %v5722_v9 }
 0x8a8   : > { %3538 = vmatpush1.bf16.msra.mxu1 %v5497_v48  ;;  %3681 = vmatpush1.bf16.msra.mxu0 %v5498_v49  ;;  %v5517_v48 = vld [vmem:[%s6993_s1] sm:$0xff]  }
 0x8a9   : > { %3539 = vmatprep.subr.bf16.mxu1 %v5722_v9  ;;  %3682 = vmatprep.subr.bf16.mxu0 %v5722_v9  ;;  %v5518_v49 = vld [vmem:[%s5879_s4] sm:$0xff]  }
 0x8ac   : > { %3540 = vmatpush1.bf16.msra.mxu1 %v5499_v60  ;;  %3683 = vmatpush1.bf16.msra.mxu0 %v5500_v61 }
 0x8ad   : > { %3541 = vmatprep.subr.bf16.mxu1 %v5722_v9  ;;  %3684 = vmatprep.subr.bf16.mxu0 %v5722_v9 }
 0x8b0   : > { %3542 = vmatpush1.bf16.msra.mxu1 %v5501_v22  ;;  %3685 = vmatpush1.bf16.msra.mxu0 %v5502_v25  ;;  %v5519_v22 = vld [vmem:[%s6993_s1 + $0x8] sm:$0xff]  }
 0x8b1   : > { %3543 = vmatprep.subr.bf16.mxu1 %v5722_v9  ;;  %3686 = vmatprep.subr.bf16.mxu0 %v5722_v9  ;;  %v5520_v25 = vld [vmem:[%s5879_s4 + $0x8] sm:$0xff]  }
 0x8b4   : > { %3544 = vmatpush1.bf16.msra.mxu1 %v5503_v63  ;;  %3687 = vmatpush1.bf16.msra.mxu0 %v5504_v5  ;;  %v5521_v63 = vld [vmem:[%s6993_s1 + $0x10] sm:$0xff]  }
 0x8b5   : > { %3545 = vmatprep.subr.bf16.mxu1 %v5722_v9  ;;  %3688 = vmatprep.subr.bf16.mxu0 %v5722_v9  ;;  %v5522_v5 = vld [vmem:[%s5879_s4 + $0x10] sm:$0xff]  }
 0x8b8   : > { %3546 = vmatpush1.bf16.msra.mxu1 %v5505_v12  ;;  %3689 = vmatpush1.bf16.msra.mxu0 %v5506_v14  ;;  %v5523_v12 = vld [vmem:[%s6993_s1 + $0x18] sm:$0xff]  }
 0x8b9   : > { %3547 = vmatprep.subr.bf16.mxu1 %v5722_v9  ;;  %3690 = vmatprep.subr.bf16.mxu0 %v5722_v9  ;;  %v5524_v14 = vld [vmem:[%s5879_s4 + $0x18] sm:$0xff]  }
 0x8bc   : > { %3548 = vmatpush1.bf16.msra.mxu1 %v5507_v24  ;;  %3691 = vmatpush1.bf16.msra.mxu0 %v5508_v37  ;;  %v5525_v24 = vld [vmem:[%s6993_s1 + $0x20] sm:$0xff]  }
 0x8bd   : > { %3549 = vmatprep.subr.bf16.mxu1 %v5722_v9  ;;  %3692 = vmatprep.subr.bf16.mxu0 %v5722_v9  ;;  %v5526_v37 = vld [vmem:[%s5879_s4 + $0x20] sm:$0xff]  }
 0x8c0   : > { %3550 = vmatpush1.bf16.msra.mxu1 %v5509_v40  ;;  %3693 = vmatpush1.bf16.msra.mxu0 %v5510_v50  ;;  %v5527_v40 = vld [vmem:[%s6993_s1 + $0x28] sm:$0xff]  }
 0x8c1   : > { %3551 = vmatprep.subr.bf16.mxu1 %v5722_v9  ;;  %3694 = vmatprep.subr.bf16.mxu0 %v5722_v9  ;;  %v5528_v50 = vld [vmem:[%s5879_s4 + $0x28] sm:$0xff]  }
 0x8c4   : > { %3552 = vmatpush1.bf16.msra.mxu1 %v5511_v51  ;;  %3695 = vmatpush1.bf16.msra.mxu0 %v5512_v10  ;;  %v5529_v51 = vld [vmem:[%s6993_s1 + $0x30] sm:$0xff]  }
 0x8c5   : > { %3553 = vmatprep.subr.bf16.mxu1 %v5722_v9  ;;  %3696 = vmatprep.subr.bf16.mxu0 %v5722_v9  ;;  %v5530_v10 = vld [vmem:[%s5879_s4 + $0x30] sm:$0xff]  }
 0x8c8   : > { %3554 = vmatpush1.bf16.msra.mxu1 %v5513_v41  ;;  %3697 = vmatpush1.bf16.msra.mxu0 %v5514_v54  ;;  %v5531_v41 = vld [vmem:[%s6993_s1 + $0x38] sm:$0xff]  }
 0x8c9   : > { %3555 = vmatprep.subr.bf16.mxu1 %v5722_v9  ;;  %3698 = vmatprep.subr.bf16.mxu0 %v5722_v9  ;;  %v5532_v54 = vld [vmem:[%s5879_s4 + $0x38] sm:$0xff]  }
 0x8cc   : > { %3556 = vmatpush1.bf16.msra.mxu1 %v5515_v0  ;;  %3699 = vmatpush1.bf16.msra.mxu0 %v5516_v57  ;;  %v5533_v0 = vld [vmem:[%s6993_s1 + $0x40] sm:$0xff]  }
 0x8cd   : > { %3842 = vmatprep.subr.bf16.mxu1 %v5722_v9  ;;  %3985 = vmatprep.subr.bf16.mxu0 %v5722_v9  ;;  %v5534_v57 = vld [vmem:[%s5879_s4 + $0x40] sm:$0xff]  }
 0x972   : > { %v3262_v58 = vpop.f32.mrb[44].mxu1  ;;  %v3333_v59 = vpop.f32.mrb[44].mxu0 }
 0x973   : > { %v3334_v26 = vadd.f32 %v4887_v19, %v3333_v59  ;;  %v5308_v62 = vpop.f32.mrb[45].mxu1  ;;  %v5318_v39 = vpop.f32.mrb[45].mxu0  ;;  %v3263_v32 = vadd.f32 %v4882_v42, %v3262_v58  ;;  %v5535_v19 = vld [vmem:[%s6993_s1 + $0x48] sm:$0xff]   ;;  %v5537_v59 = vld [vmem:[%s6993_s1 + $0x50] sm:$0xff]  }
 0x974   : > { %v3265_v28 = vpop.f32.mrb[46].mxu1  ;;  %v3336_v13 = vpop.f32.mrb[46].mxu0  ;;  %v5536_v58 = vld [vmem:[%s5879_s4 + $0x48] sm:$0xff]   ;;  %v5539_v39 = vld [vmem:[%s6993_s1 + $0x58] sm:$0xff]  }
 0x975   : > { %v4892_v43 = vmul.f32 -1.442695, %v3334_v26  ;;  %v5309_v44 = vpop.f32.mrb[47].mxu1  ;;  %v5319_v45 = vpop.f32.mrb[47].mxu0  ;;  %v5538_v26 = vld [vmem:[%s5879_s4 + $0x50] sm:$0xff]   ;;  %v5540_v28 = vld [vmem:[%s5879_s4 + $0x58] sm:$0xff]  }
 0x976   : > { %v5541_v44 = vld [vmem:[%s6993_s1] sm:$0xff]   ;;  %v5543_v42 = vld [vmem:[%s6993_s1 + $0x8] sm:$0xff]  }
 0x977   : > { %5661 = vpow2.f32 %v4892_v43 }
 0x981   : > { %v5662_v46 = vpop.eup %5661 }
 0x982   : > { %v3342_v47 = vadd.f32 1.0, %v5662_v46  ;;  %v5542_v46 = vld [vmem:[%s5879_s4] sm:$0xff]  }
 0x984   : > { %5663 = vrcp.f32 %v3342_v47 }
 0x98e   : > { %v5664_v56 = vpop.eup %5663 }
 0x98f   : > { %v3345_v1 = vadd.f32 %v5664_v56, %v3263_v32  ;;  %v5544_v32 = vld [vmem:[%s5879_s4 + $0x8] sm:$0xff]   ;;  %v5545_v56 = vld [vmem:[%s6993_s1 + $0x10] sm:$0xff]  }
 0x991   : > { %v3346_v6 = vmax.f32 %v3345_v1, 0.0  ;;  %v5546_v1 = vld [vmem:[%s5879_s4 + $0x10] sm:$0xff]  }
 0x993   : > { %v3371_v27 = vmul.f32 %v4896_v21, %v3346_v6  ;;  %v3354_v29 = vmul.f32 %v4893_v4, %v3346_v6  ;;  %v3407_v30 = vmul.f32 %v4904_v8, %v3346_v6  ;;  %v3389_v33 = vmul.f32 %v4900_v23, %v3346_v6  ;;  %v5547_v21 = vld [vmem:[%s6993_s1 + $0x18] sm:$0xff]   ;;  %v5549_v8 = vld [vmem:[%s6993_s1 + $0x20] sm:$0xff]   ;;  %v5551_v6 = vld [vmem:[%s6993_s1 + $0x28] sm:$0xff]  }
 0x994   : > { %v5548_v4 = vld [vmem:[%s5879_s4 + $0x18] sm:$0xff]   ;;  %v5550_v23 = vld [vmem:[%s5879_s4 + $0x20] sm:$0xff]  }
 0x995   : > { %v6756_v3 = vadd.f32 %v4898_v11, %v3371_v27  ;;  %v3362_v2 = vadd.f32 %v4894_v16, %v3354_v29  ;;  %v6758_v15 = vadd.f32 %v4906_v31, %v3407_v30  ;;  %v6761_v17 = vadd.f32 %v4902_v7, %v3389_v33  ;;  %v5552_v11 = vld [vmem:[%s5879_s4 + $0x28] sm:$0xff]   ;;  %v5553_v16 = vld [vmem:[%s6993_s1 + $0x30] sm:$0xff]   ;;  %v5555_v29 = vld [vmem:[%s6993_s1 + $0x38] sm:$0xff]  }
 0x996   : > { %v5554_v27 = vld [vmem:[%s5879_s4 + $0x30] sm:$0xff]   ;;  %v5556_v30 = vld [vmem:[%s5879_s4 + $0x38] sm:$0xff]   ;;  %v5557_v31 = vld [vmem:[%s6993_s1 + $0x40] sm:$0xff]  }
 0x997   : > { %v3727_v38 = vrot.slane %v6756_v3, 1  ;;  %v3418_v34 = vrot.slane %v3362_v2, 1  ;;  %v3422_v18 = vrot.slane %v3362_v2, 2  ;;  %v4345_v36 = vrot.slane %v6758_v15, 1  ;;  %v5558_v33 = vld [vmem:[%s5879_s4 + $0x40] sm:$0xff]   ;;  %v5559_v7 = vld [vmem:[%s6993_s1 + $0x48] sm:$0xff]  }
 0x998   : > { %v4036_v20 = vrot.slane %v6761_v17, 1  ;;  %v3731_v53 = vrot.slane %v6756_v3, 2  ;;  %v4040_v43 = vrot.slane %v6761_v17, 2 }
 0x999   : > { %3728 = vrot.lane.b32.xlu1 %v3727_v38, %s5723_s21  ;;  %3419 = vrot.lane.b32.xlu0 %v3418_v34, %s5723_s21  ;;  %v3426_v35 = vpack.c.bf16 %v3422_v18, %v3422_v18  ;;  %v5562_v38 = vld [vmem:[%s5879_s4 + $0x50] sm:$0xff]   ;;  %v5563_v18 = vld [vmem:[%s6993_s1 + $0x58] sm:$0xff]  }
 0x99a   : > { %v3735_v61 = vpack.c.bf16 %v3731_v53, %v3731_v53  ;;  %v4044_v47 = vpack.c.bf16 %v4040_v43, %v4040_v43 }
 0x99b   : > { %4920 = vmatprep.mubr.msk.bf16.mxu1 %vm1439_vm7, %v3426_v35  ;;  %4934 = vmatprep.mubr.msk.bf16.mxu0 %vm1439_vm7, %v3426_v35  ;;  %v5564_v35 = vld [vmem:[%s5879_s4 + $0x58] sm:$0xff]  }
 0x99d   : > { %4346 = vrot.lane.b32.xlu1 %v4345_v36, %s5723_s21  ;;  %4037 = vrot.lane.b32.xlu0 %v4036_v20, %s5723_s21  ;;  %v4349_v20 = vrot.slane %v6758_v15, 2  ;;  %s5029_s21 = sshll.u32 %s5916_s0, 5 }
 0x99e   : > { %s6936_s28 = scalar_lea.vmem %s5889_s20, %s5029_s21 }
 0xa0b   : > { %v3420_v52 = vpop.permute.xlu0 %3419  ;;  %v3729_v62 = vpop.permute.xlu1 %3728 }
 0xa0c   : > { %v3424_v55 = vsel %vm1439_vm7, %v3362_v2, %v3420_v52  ;;  %v3733_v13 = vsel %vm1439_vm7, %v6756_v3, %v3729_v62  ;;  %v5560_v3 = vld [vmem:[%s5879_s4 + $0x48] sm:$0xff]   ;;  %v5561_v2 = vld [vmem:[%s6993_s1 + $0x50] sm:$0xff]   ;;  %v5565_v52 = vld [vmem:[%s6993_s1] sm:$0xff]  }
 0xa0d   : > { %v3425_v60 = vpack.c.bf16 %v3424_v55, %v3424_v55  ;;  %v3734_v45 = vpack.c.bf16 %v3733_v13, %v3733_v13  ;;  %v5566_v55 = vld [vmem:[%s5879_s4] sm:$0xff]  }
 0xa0f   : > { %3566 = vmatmul.mubr.bf16.vlgmr.msra.gmra.mrb[48].mxu1 %v3425_v60  ;;  %3709 = vmatmul.mubr.bf16.vlgmr.msra.gmra.mrb[48].mxu0 %v3425_v60  ;;  %v4038_v34 = vpop.permute.xlu0 %4037  ;;  %v5569_v60 = vld [vmem:[%s6993_s1 + $0x10] sm:$0xff]  }
 0xa10   : > { %3843 = vmatpush1.bf16.msra.mxu1 %v5517_v48  ;;  %3986 = vmatpush1.bf16.msra.mxu0 %v5518_v49  ;;  %v4042_v36 = vsel %vm1439_vm7, %v6761_v17, %v4038_v34  ;;  %v4353_v48 = vpack.c.bf16 %v4349_v20, %v4349_v20  ;;  %v5567_v17 = vld [vmem:[%s6993_s1 + $0x8] sm:$0xff]  }
 0xa11   : > { %4949 = vmatprep.mubr.msk.bf16.mxu1 %vm1439_vm7, %v3735_v61  ;;  %4963 = vmatprep.mubr.msk.bf16.mxu0 %vm1439_vm7, %v3735_v61  ;;  %v4043_v53 = vpack.c.bf16 %v4042_v36, %v4042_v36  ;;  %v5568_v49 = vld [vmem:[%s5879_s4 + $0x8] sm:$0xff]   ;;  %v5570_v61 = vld [vmem:[%s5879_s4 + $0x10] sm:$0xff]  }
 0xa12   : > { %3844 = vmatprep.subr.bf16.mxu1 %v5722_v9  ;;  %3987 = vmatprep.subr.bf16.mxu0 %v5722_v9 }
 0xa14   : > { %3845 = vmatpush1.bf16.msra.mxu1 %v5519_v22  ;;  %3988 = vmatpush1.bf16.msra.mxu0 %v5520_v25  ;;  %v5571_v22 = vld [vmem:[%s6993_s1 + $0x18] sm:$0xff]  }
 0xa15   : > { %3846 = vmatprep.subr.bf16.mxu1 %v5722_v9  ;;  %3989 = vmatprep.subr.bf16.mxu0 %v5722_v9  ;;  %v5572_v25 = vld [vmem:[%s5879_s4 + $0x18] sm:$0xff]  }
 0xa18   : > { %3847 = vmatpush1.bf16.msra.mxu1 %v5521_v63  ;;  %3990 = vmatpush1.bf16.msra.mxu0 %v5522_v5  ;;  %v5573_v63 = vld [vmem:[%s6993_s1 + $0x20] sm:$0xff]  }
 0xa19   : > { %3848 = vmatprep.subr.bf16.mxu1 %v5722_v9  ;;  %3991 = vmatprep.subr.bf16.mxu0 %v5722_v9  ;;  %v5574_v5 = vld [vmem:[%s5879_s4 + $0x20] sm:$0xff]  }
 0xa1c   : > { %3849 = vmatpush1.bf16.msra.mxu1 %v5523_v12  ;;  %3992 = vmatpush1.bf16.msra.mxu0 %v5524_v14  ;;  %v5575_v12 = vld [vmem:[%s6993_s1 + $0x28] sm:$0xff]  }
 0xa1d   : > { %3850 = vmatprep.subr.bf16.mxu1 %v5722_v9  ;;  %3993 = vmatprep.subr.bf16.mxu0 %v5722_v9  ;;  %v5576_v14 = vld [vmem:[%s5879_s4 + $0x28] sm:$0xff]  }
 0xa20   : > { %3851 = vmatpush1.bf16.msra.mxu1 %v5525_v24  ;;  %3994 = vmatpush1.bf16.msra.mxu0 %v5526_v37  ;;  %v5577_v24 = vld [vmem:[%s6993_s1 + $0x30] sm:$0xff]  }
 0xa21   : > { %3852 = vmatprep.subr.bf16.mxu1 %v5722_v9  ;;  %3995 = vmatprep.subr.bf16.mxu0 %v5722_v9  ;;  %v5578_v37 = vld [vmem:[%s5879_s4 + $0x30] sm:$0xff]  }
 0xa24   : > { %3853 = vmatpush1.bf16.msra.mxu1 %v5527_v40  ;;  %3996 = vmatpush1.bf16.msra.mxu0 %v5528_v50  ;;  %v5579_v40 = vld [vmem:[%s6993_s1 + $0x38] sm:$0xff]  }
 0xa25   : > { %3854 = vmatprep.subr.bf16.mxu1 %v5722_v9  ;;  %3997 = vmatprep.subr.bf16.mxu0 %v5722_v9  ;;  %v5580_v50 = vld [vmem:[%s5879_s4 + $0x38] sm:$0xff]  }
 0xa28   : > { %3855 = vmatpush1.bf16.msra.mxu1 %v5529_v51  ;;  %3998 = vmatpush1.bf16.msra.mxu0 %v5530_v10  ;;  %v5581_v51 = vld [vmem:[%s6993_s1 + $0x40] sm:$0xff]  }
 0xa29   : > { %3856 = vmatprep.subr.bf16.mxu1 %v5722_v9  ;;  %3999 = vmatprep.subr.bf16.mxu0 %v5722_v9  ;;  %v5582_v10 = vld [vmem:[%s5879_s4 + $0x40] sm:$0xff]  }
 0xa2c   : > { %3857 = vmatpush1.bf16.msra.mxu1 %v5531_v41  ;;  %4000 = vmatpush1.bf16.msra.mxu0 %v5532_v54  ;;  %v5583_v41 = vld [vmem:[%s6993_s1 + $0x48] sm:$0xff]  }
 0xa2d   : > { %3858 = vmatprep.subr.bf16.mxu1 %v5722_v9  ;;  %4001 = vmatprep.subr.bf16.mxu0 %v5722_v9  ;;  %v5584_v54 = vld [vmem:[%s5879_s4 + $0x48] sm:$0xff]  }
 0xa30   : > { %3859 = vmatpush1.bf16.msra.mxu1 %v5533_v0  ;;  %4002 = vmatpush1.bf16.msra.mxu0 %v5534_v57  ;;  %v5585_v0 = vld [vmem:[%s6993_s1 + $0x50] sm:$0xff]  }
 0xa31   : > { %3860 = vmatprep.subr.bf16.mxu1 %v5722_v9  ;;  %4003 = vmatprep.subr.bf16.mxu0 %v5722_v9  ;;  %v5586_v57 = vld [vmem:[%s5879_s4 + $0x50] sm:$0xff]  }
 0xa34   : > { %3861 = vmatpush1.bf16.msra.mxu1 %v5535_v19  ;;  %4004 = vmatpush1.bf16.msra.mxu0 %v5536_v58  ;;  %v4347_v19 = vpop.permute.xlu1 %4346  ;;  %v5587_v58 = vld [vmem:[%s6993_s1 + $0x58] sm:$0xff]  }
 0xa35   : > { %3862 = vmatprep.subr.bf16.mxu1 %v5722_v9  ;;  %4005 = vmatprep.subr.bf16.mxu0 %v5722_v9 }
 0xa38   : > { %3863 = vmatpush1.bf16.msra.mxu1 %v5537_v59  ;;  %4006 = vmatpush1.bf16.msra.mxu0 %v5538_v26  ;;  %v5588_v59 = vld [vmem:[%s5879_s4 + $0x58] sm:$0xff]   ;;  %v4351_v26 = vsel %vm1439_vm7, %v6758_v15, %v4347_v19 }
 0xa39   : > { %3864 = vmatprep.subr.bf16.mxu1 %v5722_v9  ;;  %4007 = vmatprep.subr.bf16.mxu0 %v5722_v9  ;;  %v4352_v62 = vpack.c.bf16 %v4351_v26, %v4351_v26 }
 0xa3c   : > { %3865 = vmatpush1.bf16.msra.mxu1 %v5539_v39  ;;  %4008 = vmatpush1.bf16.msra.mxu0 %v5540_v28  ;;  %v6930_v39 = vld [vmem:[%s5884_s6] ss:$0 sm:$0xff] }
 0xa3d   : > { %4151 = vmatprep.subr.bf16.mxu1 %v5722_v9  ;;  %4294 = vmatprep.subr.bf16.mxu0 %v5722_v9 }
 0xa3f   : > { %3875 = vmatmul.mubr.bf16.vlgmr.msra.gmra.mrb[52].mxu1 %v3734_v45  ;;  %4018 = vmatmul.mubr.bf16.vlgmr.msra.gmra.mrb[52].mxu0 %v3734_v45 }
 0xa40   : > { %4152 = vmatpush1.bf16.msra.mxu1 %v5541_v44  ;;  %4979 = vmatprep.mubr.msk.bf16.mxu1 %vm1439_vm7, %v4044_v47 }
 0xa41   : > { %4295 = vmatpush1.bf16.msra.mxu0 %v5542_v46  ;;  %4993 = vmatprep.mubr.msk.bf16.mxu0 %vm1439_vm7, %v4044_v47 }
 0xa42   : > { %4153 = vmatprep.subr.bf16.mxu1 %v5722_v9  ;;  %4296 = vmatprep.subr.bf16.mxu0 %v5722_v9 }
 0xa44   : > { %4154 = vmatpush1.bf16.msra.mxu1 %v5543_v42 }
 0xa45   : > { %4297 = vmatpush1.bf16.msra.mxu0 %v5544_v32  ;;  %4155 = vmatprep.subr.bf16.mxu1 %v5722_v9 }
 0xa46   : > { %4298 = vmatprep.subr.bf16.mxu0 %v5722_v9 }
 0xa48   : > { %4156 = vmatpush1.bf16.msra.mxu1 %v5545_v56 }
 0xa49   : > { %4299 = vmatpush1.bf16.msra.mxu0 %v5546_v1  ;;  %4157 = vmatprep.subr.bf16.mxu1 %v5722_v9  ;;  %v4907_v1 = vld [vmem:[%s5874_s24] ss:$0 sm:$0xff] }
 0xa4a   : > { %4300 = vmatprep.subr.bf16.mxu0 %v5722_v9 }
 0xa4c   : > { %4158 = vmatpush1.bf16.msra.mxu1 %v5547_v21 }
 0xa4d   : > { %4301 = vmatpush1.bf16.msra.mxu0 %v5548_v4  ;;  %4159 = vmatprep.subr.bf16.mxu1 %v5722_v9 }
 0xa4e   : > { %4302 = vmatprep.subr.bf16.mxu0 %v5722_v9 }
 0xa50   : > { %4160 = vmatpush1.bf16.msra.mxu1 %v5549_v8 }
 0xa51   : > { %4303 = vmatpush1.bf16.msra.mxu0 %v5550_v23  ;;  %4161 = vmatprep.subr.bf16.mxu1 %v5722_v9 }
 0xa52   : > { %4304 = vmatprep.subr.bf16.mxu0 %v5722_v9 }
 0xa54   : > { %4162 = vmatpush1.bf16.msra.mxu1 %v5551_v6 }
 0xa55   : > { %4305 = vmatpush1.bf16.msra.mxu0 %v5552_v11  ;;  %4163 = vmatprep.subr.bf16.mxu1 %v5722_v9 }
 0xa56   : > { %4306 = vmatprep.subr.bf16.mxu0 %v5722_v9 }
 0xa58   : > { %4164 = vmatpush1.bf16.msra.mxu1 %v5553_v16 }
 0xa59   : > { %4307 = vmatpush1.bf16.msra.mxu0 %v5554_v27  ;;  %4165 = vmatprep.subr.bf16.mxu1 %v5722_v9 }
 0xa5a   : > { %4308 = vmatprep.subr.bf16.mxu0 %v5722_v9 }
 0xa5c   : > { %4166 = vmatpush1.bf16.msra.mxu1 %v5555_v29 }
 0xa5d   : > { %4309 = vmatpush1.bf16.msra.mxu0 %v5556_v30  ;;  %4167 = vmatprep.subr.bf16.mxu1 %v5722_v9 }
 0xa5e   : > { %4310 = vmatprep.subr.bf16.mxu0 %v5722_v9 }
 0xa60   : > { %4168 = vmatpush1.bf16.msra.mxu1 %v5557_v31 }
 0xa61   : > { %4311 = vmatpush1.bf16.msra.mxu0 %v5558_v33  ;;  %4169 = vmatprep.subr.bf16.mxu1 %v5722_v9 }
 0xa62   : > { %4312 = vmatprep.subr.bf16.mxu0 %v5722_v9 }
 0xa64   : > { %4170 = vmatpush1.bf16.msra.mxu1 %v5559_v7 }
 0xa65   : > { %4313 = vmatpush1.bf16.msra.mxu0 %v5560_v3  ;;  %4171 = vmatprep.subr.bf16.mxu1 %v5722_v9 }
 0xa66   : > { %4314 = vmatprep.subr.bf16.mxu0 %v5722_v9 }
 0xa68   : > { %4172 = vmatpush1.bf16.msra.mxu1 %v5561_v2 }
 0xa69   : > { %4315 = vmatpush1.bf16.msra.mxu0 %v5562_v38  ;;  %4173 = vmatprep.subr.bf16.mxu1 %v5722_v9 }
 0xa6a   : > { %4316 = vmatprep.subr.bf16.mxu0 %v5722_v9 }
 0xa6c   : > { %4174 = vmatpush1.bf16.msra.mxu1 %v5563_v18 }
 0xa6d   : > { %4317 = vmatpush1.bf16.msra.mxu0 %v5564_v35  ;;  %4460 = vmatprep.subr.bf16.mxu1 %v5722_v9 }
 0xa6e   : > { %4603 = vmatprep.subr.bf16.mxu0 %v5722_v9 }
 0xa6f   : > { %4184 = vmatmul.mubr.bf16.vlgmr.msra.gmra.mrb[56].mxu1 %v4043_v53 }
 0xa70   : > { %4327 = vmatmul.mubr.bf16.vlgmr.msra.gmra.mrb[56].mxu0 %v4043_v53  ;;  %4461 = vmatpush1.bf16.msra.mxu1 %v5565_v52 }
 0xa71   : > { %5009 = vmatprep.mubr.msk.bf16.mxu1 %vm1439_vm7, %v4353_v48  ;;  %4604 = vmatpush1.bf16.msra.mxu0 %v5566_v55 }
 0xa72   : > { %5023 = vmatprep.mubr.msk.bf16.mxu0 %vm1439_vm7, %v4353_v48  ;;  %4462 = vmatprep.subr.bf16.mxu1 %v5722_v9 }
 0xa73   : > { %4605 = vmatprep.subr.bf16.mxu0 %v5722_v9 }
 0xa74   : > { %4463 = vmatpush1.bf16.msra.mxu1 %v5567_v17 }
 0xa75   : > { %4606 = vmatpush1.bf16.msra.mxu0 %v5568_v49  ;;  %4464 = vmatprep.subr.bf16.mxu1 %v5722_v9 }
 0xa76   : > { %4607 = vmatprep.subr.bf16.mxu0 %v5722_v9 }
 0xa78   : > { %4465 = vmatpush1.bf16.msra.mxu1 %v5569_v60 }
 0xa79   : > { %4608 = vmatpush1.bf16.msra.mxu0 %v5570_v61  ;;  %4466 = vmatprep.subr.bf16.mxu1 %v5722_v9 }
 0xa7a   : > { %4609 = vmatprep.subr.bf16.mxu0 %v5722_v9 }
 0xa7c   : > { %4467 = vmatpush1.bf16.msra.mxu1 %v5571_v22 }
 0xa7d   : > { %4610 = vmatpush1.bf16.msra.mxu0 %v5572_v25  ;;  %4468 = vmatprep.subr.bf16.mxu1 %v5722_v9 }
 0xa7e   : > { %4611 = vmatprep.subr.bf16.mxu0 %v5722_v9 }
 0xa80   : > { %4469 = vmatpush1.bf16.msra.mxu1 %v5573_v63 }
 0xa81   : > { %4612 = vmatpush1.bf16.msra.mxu0 %v5574_v5  ;;  %4470 = vmatprep.subr.bf16.mxu1 %v5722_v9 }
 0xa82   : > { %4613 = vmatprep.subr.bf16.mxu0 %v5722_v9 }
 0xa84   : > { %4471 = vmatpush1.bf16.msra.mxu1 %v5575_v12 }
 0xa85   : > { %4614 = vmatpush1.bf16.msra.mxu0 %v5576_v14  ;;  %4472 = vmatprep.subr.bf16.mxu1 %v5722_v9 }
 0xa86   : > { %4615 = vmatprep.subr.bf16.mxu0 %v5722_v9 }
 0xa88   : > { %4473 = vmatpush1.bf16.msra.mxu1 %v5577_v24 }
 0xa89   : > { %4616 = vmatpush1.bf16.msra.mxu0 %v5578_v37  ;;  %4474 = vmatprep.subr.bf16.mxu1 %v5722_v9 }
 0xa8a   : > { %4617 = vmatprep.subr.bf16.mxu0 %v5722_v9 }
 0xa8c   : > { %4475 = vmatpush1.bf16.msra.mxu1 %v5579_v40 }
 0xa8d   : > { %4618 = vmatpush1.bf16.msra.mxu0 %v5580_v50  ;;  %4476 = vmatprep.subr.bf16.mxu1 %v5722_v9 }
 0xa8e   : > { %4619 = vmatprep.subr.bf16.mxu0 %v5722_v9 }
 0xa90   : > { %4477 = vmatpush1.bf16.msra.mxu1 %v5581_v51 }
 0xa91   : > { %4620 = vmatpush1.bf16.msra.mxu0 %v5582_v10  ;;  %4478 = vmatprep.subr.bf16.mxu1 %v5722_v9 }
 0xa92   : > { %4621 = vmatprep.subr.bf16.mxu0 %v5722_v9 }
 0xa94   : > { %4479 = vmatpush1.bf16.msra.mxu1 %v5583_v41 }
 0xa95   : > { %4622 = vmatpush1.bf16.msra.mxu0 %v5584_v54  ;;  %4480 = vmatprep.subr.bf16.mxu1 %v5722_v9 }
 0xa96   : > { %4623 = vmatprep.subr.bf16.mxu0 %v5722_v9 }
 0xa98   : > { %4481 = vmatpush1.bf16.msra.mxu1 %v5585_v0 }
 0xa99   : > { %4624 = vmatpush1.bf16.msra.mxu0 %v5586_v57  ;;  %4482 = vmatprep.subr.bf16.mxu1 %v5722_v9 }
 0xa9a   : > { %4625 = vmatprep.subr.bf16.mxu0 %v5722_v9 }
 0xa9c   : > { %4483 = vmatpush1.bf16.msra.mxu1 %v5587_v58 }
 0xa9d   : > { %4626 = vmatpush1.bf16.msra.mxu0 %v5588_v59 }
 0xa9f   : > { %4493 = vmatmul.mubr.bf16.vlgmr.msra.gmra.mrb[60].mxu1 %v4352_v62 }
 0xaa0   : > { %4636 = vmatmul.mubr.bf16.vlgmr.msra.gmra.mrb[60].mxu0 %v4352_v62 }
 0xae2   : > { %v3567_v28 = vpop.f32.mrb[48].mxu1  ;;  %v3710_v13 = vpop.f32.mrb[48].mxu0 }
 0xae3   : > { %v3711_v43 = vadd.f32 %v6930_v39, %v3710_v13  ;;  %v3569_v44 = vpop.f32.mrb[49].mxu1  ;;  %v3712_v45 = vpop.f32.mrb[49].mxu0  ;;  %v3568_v21 = vadd.f32 %v4907_v1, %v3567_v28 }
 0xae4   : > { %v3570_v46 = vpop.f32.mrb[50].mxu1  ;;  %v3713_v15 = vpop.f32.mrb[50].mxu0 }
 0xae5   : > { %v4935_v47 = vmul.f32 -1.442695, %v3711_v43  ;;  %v3571_v9 = vpop.f32.mrb[51].mxu1  ;;  %v3714_v42 = vpop.f32.mrb[51].mxu0 }
 0xae7   : > { %5665 = vpow2.f32 %v4935_v47 }
 0xaf1   : > { %v5666_v32 = vpop.eup %5665 }
 0xaf2   : > { %v3719_v56 = vadd.f32 1.0, %v5666_v32 }
 0xaf4   : > { %5667 = vrcp.f32 %v3719_v56 }
 0xafe   : > { %v5668_v4 = vpop.eup %5667 }
 0xaff   : > { %v3722_v8 = vadd.f32 %v5668_v4, %v3568_v21 }
 0xb01   : > { %v3723_v23 = vmax.f32 %v3722_v8, 0.0 }
 0xb03   : > { %3725 = vst.msk [vmem:[%s6936_s28] sm:$0x3f] %vm3724_vm11, %v3723_v23 }
 0xb12   : > { %v3876_v6 = vpop.f32.mrb[52].mxu1  ;;  %v4019_v11 = vpop.f32.mrb[52].mxu0 }
 0xb13   : > { %v4020_v16 = vadd.f32 %v6930_v39, %v4019_v11  ;;  %v3878_v27 = vpop.f32.mrb[53].mxu1  ;;  %v4021_v29 = vpop.f32.mrb[53].mxu0  ;;  %v3877_v34 = vadd.f32 %v4907_v1, %v3876_v6 }
 0xb14   : > { %v3879_v30 = vpop.f32.mrb[54].mxu1  ;;  %v4022_v31 = vpop.f32.mrb[54].mxu0 }
 0xb15   : > { %v4964_v33 = vmul.f32 -1.442695, %v4020_v16  ;;  %v3880_v7 = vpop.f32.mrb[55].mxu1  ;;  %v4023_v3 = vpop.f32.mrb[55].mxu0 }
 0xb17   : > { %5669 = vpow2.f32 %v4964_v33 }
 0xb21   : > { %v5670_v2 = vpop.eup %5669 }
 0xb22   : > { %v4028_v38 = vadd.f32 1.0, %v5670_v2 }
 0xb24   : > { %5671 = vrcp.f32 %v4028_v38 }
 0xb2e   : > { %v5672_v18 = vpop.eup %5671 }
 0xb2f   : > { %v4031_v35 = vadd.f32 %v5672_v18, %v3877_v34 }
 0xb31   : > { %v4032_v36 = vmax.f32 %v4031_v35, 0.0 }
 0xb33   : > { %4965 = vst.msk [vmem:[%s6936_s28 + $0x8] sm:$0x3f] %vm3724_vm11, %v4032_v36 }
 0xb42   : > { %v4185_v20 = vpop.f32.mrb[56].mxu1 }
 0xb43   : > { %v4328_v52 = vpop.f32.mrb[56].mxu0  ;;  %v4187_v53 = vpop.f32.mrb[57].mxu1  ;;  %v4186_v5 = vadd.f32 %v4907_v1, %v4185_v20 }
 0xb44   : > { %v4329_v55 = vadd.f32 %v6930_v39, %v4328_v52  ;;  %v4330_v48 = vpop.f32.mrb[57].mxu0  ;;  %v4188_v17 = vpop.f32.mrb[58].mxu1 }
 0xb45   : > { %v4331_v49 = vpop.f32.mrb[58].mxu0  ;;  %v4189_v60 = vpop.f32.mrb[59].mxu1 }
 0xb46   : > { %v4994_v61 = vmul.f32 -1.442695, %v4329_v55  ;;  %v4332_v22 = vpop.f32.mrb[59].mxu0 }
 0xb48   : > { %5673 = vpow2.f32 %v4994_v61 }
 0xb52   : > { %v5674_v25 = vpop.eup %5673 }
 0xb53   : > { %v4337_v63 = vadd.f32 1.0, %v5674_v25 }
 0xb55   : > { %5675 = vrcp.f32 %v4337_v63 }
 0xb5f   : > { %v5676_v12 = vpop.eup %5675 }
 0xb60   : > { %v4340_v14 = vadd.f32 %v5676_v12, %v4186_v5 }
 0xb62   : > { %v4341_v24 = vmax.f32 %v4340_v14, 0.0 }
 0xb64   : > { %4995 = vst.msk [vmem:[%s6936_s28 + $0x10] sm:$0x3f] %vm3724_vm11, %v4341_v24 }
 0xb72   : > { %v4494_v37 = vpop.f32.mrb[60].mxu1 }
 0xb73   : > { %v4637_v40 = vpop.f32.mrb[60].mxu0  ;;  %v4496_v50 = vpop.f32.mrb[61].mxu1  ;;  %v4495_v26 = vadd.f32 %v4907_v1, %v4494_v37 }
 0xb74   : > { %v4638_v51 = vadd.f32 %v6930_v39, %v4637_v40  ;;  %v4639_v10 = vpop.f32.mrb[61].mxu0  ;;  %v4497_v41 = vpop.f32.mrb[62].mxu1 }
 0xb75   : > { %v4640_v54 = vpop.f32.mrb[62].mxu0  ;;  %v4498_v0 = vpop.f32.mrb[63].mxu1 }
 0xb76   : > { %v5024_v57 = vmul.f32 -1.442695, %v4638_v51  ;;  %v4641_v19 = vpop.f32.mrb[63].mxu0 }
 0xb78   : > { %5677 = vpow2.f32 %v5024_v57 }
 0xb82   : > { %v5678_v58 = vpop.eup %5677 }
 0xb83   : > { %v4646_v59 = vadd.f32 1.0, %v5678_v58 }
 0xb85   : > { %5679 = vrcp.f32 %v4646_v59 }
 0xb8f   : > { %v5680_v62 = vpop.eup %5679 }
 0xb90   : > { %v4649_v28 = vadd.f32 %v5680_v62, %v4495_v26 }
 0xb92   : > { %v4650_v13 = vmax.f32 %v4649_v28, 0.0 }
 0xb94   : > { %5025 = vst.msk [vmem:[%s6936_s28 + $0x18] sm:$0x3f] %vm3724_vm11, %v4650_v13 }
 0xb95 PF: > { %s6999_s0 = sld [smem:[#allocation19_spill]] }
 0xb9b   : > { %s73_s22 = sadd.s32 1, %s6999_s0  }
 0xb9c   : > { %p70_p6 = scmp.ge.s32.totalorder %s73_s22, 4  }
 0xb9e   :  { %72 = sbr.rel (!%p70_p6) target bundleno = 52 (0x34), region = 224 }

</bundles_post_ra>
